<compile_context>
chip_gen: v5e
topology: v5e:2x2
jax: 0.10.0
libtpu: 0.0.40
codegen_flags: <defaults>
</compile_context>

<pallas_src>
import functools

import jax
import jax.numpy as jnp
from jax.experimental import pallas as pl
from jax.experimental.pallas import tpu as pltpu


_ALIGN = 256                              # MXU-friendly on v6e/v7x, 128-aligned for v5e
_VMEM_BUDGET_BYTES = 40 * 1024 * 1024     # tile-footprint budget (headroom on v7x)
_VMEM_LIMIT_BYTES = 48 * 1024 * 1024      # compiler scoped-VMEM limit (< 64 MiB v7x)

_TM_PREF = 1024   # output rows per tile
_TK_PREF = 1024   # contraction tile


def _round_up(x, m):
    return ((x + m - 1) // m) * m


def _pick_tile(padded_dim, pref):
    """Largest multiple of _ALIGN <= pref that divides padded_dim.

    padded_dim is always a multiple of _ALIGN, so this never collapses below
    _ALIGN (256) — no silent 128-tile fallback on awkward sizes.
    """
    t = max(_ALIGN, (min(pref, padded_dim) // _ALIGN) * _ALIGN)
    while padded_dim % t != 0:
        t -= _ALIGN
    return t


# --------------------------------------------------------------------------
# Kernel 1: scaled feature transform  Y = diag(d) @ (X @ W)
# --------------------------------------------------------------------------
def _xw_kernel(x_ref, w_ref, d_ref, o_ref, acc_ref):
    @pl.when(pl.program_id(2) == 0)
    def _():
        acc_ref[...] = jnp.zeros_like(acc_ref)

    acc_ref[...] += jnp.dot(
        x_ref[...], w_ref[...], preferred_element_type=jnp.float32
    )

    @pl.when(pl.program_id(2) == pl.num_programs(2) - 1)
    def _():
        # D^{-1/2} applied in f32 on the accumulator, then downcast.
        o_ref[...] = (d_ref[...] * acc_ref[...]).astype(o_ref.dtype)


def _scaled_feature_transform(x, w, d_col, out_dtype):
    n_pad, fin_pad = x.shape
    fout_pad = w.shape[1]
    out_isz = jnp.dtype(out_dtype).itemsize

    tm = _pick_tile(n_pad, _TM_PREF)
    tk = _pick_tile(fin_pad, _TK_PREF)
    tn = fout_pad  # read X exactly once (j-grid collapses to 1)

    def footprint(tm, tk, tn):
        return (2 * tm * tk * x.dtype.itemsize        # X tiles (double-buffered)
                + 2 * tk * tn * w.dtype.itemsize      # W tiles
                + 2 * tm * 4 + 2 * tn * 4             # d / (none) scalars
                + 2 * tm * tn * out_isz               # output tiles
                + tm * tn * 4)                        # f32 accumulator

    while footprint(tm, tk, tn) > _VMEM_BUDGET_BYTES:
        if tk > _ALIGN:
            tk = _pick_tile(fin_pad, tk // 2)
        elif tm > _ALIGN:
            tm = _pick_tile(n_pad, tm // 2)
        elif tn > _ALIGN:
            tn = _pick_tile(fout_pad, max(tn // 2, _ALIGN))
        else:
            break

    grid = (n_pad // tm, fout_pad // tn, fin_pad // tk)

    cost = pl.CostEstimate(
        flops=2 * n_pad * fin_pad * fout_pad,
        transcendentals=0,
        bytes_accessed=(x.size * x.dtype.itemsize
                        + w.size * w.dtype.itemsize
                        + d_col.size * d_col.dtype.itemsize
                        + n_pad * fout_pad * out_isz),
    )

    return pl.pallas_call(
        _xw_kernel,
        out_shape=jax.ShapeDtypeStruct((n_pad, fout_pad), out_dtype),
        grid_spec=pltpu.PrefetchScalarGridSpec(
            num_scalar_prefetch=0,
            grid=grid,
            in_specs=[
                pl.BlockSpec((tm, tk), lambda i, j, k: (i, k)),   # X
                pl.BlockSpec((tk, tn), lambda i, j, k: (k, j)),   # W
                pl.BlockSpec((tm, 1), lambda i, j, k: (i, 0)),    # d (rows)
            ],
            out_specs=pl.BlockSpec((tm, tn), lambda i, j, k: (i, j)),
            scratch_shapes=[pltpu.VMEM((tm, tn), jnp.float32)],
        ),
        compiler_params=pltpu.CompilerParams(
            dimension_semantics=("parallel", "parallel", "arbitrary"),
            vmem_limit_bytes=_VMEM_LIMIT_BYTES,
        ),
        cost_estimate=cost,
    )(x, w, d_col)


# --------------------------------------------------------------------------
# Kernel 2: aggregation  out = diag(d) @ (A @ Y) + b   [+ relu]
# --------------------------------------------------------------------------
def _agg_kernel(a_ref, y_ref, d_ref, b_ref, o_ref, acc_ref, *,
                apply_relu, tk, y_resident):
    k = pl.program_id(2)

    @pl.when(k == 0)
    def _():
        acc_ref[...] = jnp.zeros_like(acc_ref)

    if y_resident:
        # Y is fully resident in VMEM; take the k-th contraction slab.
        start = pl.multiple_of(k * tk, 256)
        y = y_ref[pl.ds(start, tk), :]
    else:
        y = y_ref[...]

    acc_ref[...] += jnp.dot(a_ref[...], y, preferred_element_type=jnp.float32)

    @pl.when(k == pl.num_programs(2) - 1)
    def _():
        h = d_ref[...] * acc_ref[...] + b_ref[...]
        if apply_relu:
            h = jnp.maximum(h, 0.0)
        o_ref[...] = h.astype(o_ref.dtype)


def _aggregate(a, y, d_col, b_row, *, apply_relu, out_dtype):
    n_pad = a.shape[0]
    fout_pad = y.shape[1]
    out_isz = jnp.dtype(out_dtype).itemsize

    tm = _pick_tile(n_pad, _TM_PREF)
    tk = _pick_tile(n_pad, _TK_PREF)
    tn = fout_pad          # stream A exactly once (j-grid collapses to 1)
    y_resident = True      # hold Y in VMEM across the whole i/k sweep

    def footprint(tm, tk, tn, y_res):
        y_b = (2 * n_pad * tn if y_res else 2 * tk * tn) * y.dtype.itemsize
        return (2 * tm * tk * a.dtype.itemsize        # A tiles (double-buffered)
                + y_b                                  # Y (resident or streamed)
                + 2 * tm * 4 + 2 * tn * 4              # d / bias
                + 2 * tm * tn * out_isz                # output tiles
                + tm * tn * 4)                         # f32 accumulator

    while footprint(tm, tk, tn, y_resident) > _VMEM_BUDGET_BYTES:
        if y_resident:
            y_resident = False
        elif tk > _ALIGN:
            tk = _pick_tile(n_pad, tk // 2)
        elif tm > _ALIGN:
            tm = _pick_tile(n_pad, tm // 2)
        elif tn > _ALIGN:
            tn = _pick_tile(fout_pad, max(tn // 2, _ALIGN))
        else:
            break

    grid = (n_pad // tm, fout_pad // tn, n_pad // tk)

    if y_resident:
        y_spec = pl.BlockSpec((n_pad, tn), lambda i, j, k: (0, j))
    else:
        y_spec = pl.BlockSpec((tk, tn), lambda i, j, k: (k, j))

    cost = pl.CostEstimate(
        flops=2 * n_pad * n_pad * fout_pad,
        transcendentals=0,
        bytes_accessed=(a.size * a.dtype.itemsize
                        + y.size * y.dtype.itemsize
                        + d_col.size * d_col.dtype.itemsize
                        + b_row.size * b_row.dtype.itemsize
                        + n_pad * fout_pad * out_isz),
    )

    kernel = functools.partial(
        _agg_kernel, apply_relu=apply_relu, tk=tk, y_resident=y_resident)

    return pl.pallas_call(
        kernel,
        out_shape=jax.ShapeDtypeStruct((n_pad, fout_pad), out_dtype),
        grid_spec=pltpu.PrefetchScalarGridSpec(
            num_scalar_prefetch=0,
            grid=grid,
            in_specs=[
                pl.BlockSpec((tm, tk), lambda i, j, k: (i, k)),   # A (raw, bf16)
                y_spec,                                           # Y = D^{-1/2} XW
                pl.BlockSpec((tm, 1), lambda i, j, k: (i, 0)),    # d (rows)
                pl.BlockSpec((1, tn), lambda i, j, k: (0, j)),    # bias
            ],
            out_specs=pl.BlockSpec((tm, tn), lambda i, j, k: (i, j)),
            scratch_shapes=[pltpu.VMEM((tm, tn), jnp.float32)],
        ),
        compiler_params=pltpu.CompilerParams(
            dimension_semantics=("parallel", "parallel", "arbitrary"),
            vmem_limit_bytes=_VMEM_LIMIT_BYTES,
        ),
        cost_estimate=cost,
    )(a, y, d_col, b_row)


# --------------------------------------------------------------------------
# GraphConv layer + GCN forward
# --------------------------------------------------------------------------
def gcn_layer(a_bf16, d_col, x_bf16, w_bf16, b_row, *, apply_relu, out_dtype):
    """One GraphConv layer: D^{-1/2} A D^{-1/2} (X W) + b, optional ReLU."""
    y = _scaled_feature_transform(x_bf16, w_bf16, d_col, jnp.bfloat16)
    return _aggregate(a_bf16, y, d_col, b_row,
                      apply_relu=apply_relu, out_dtype=out_dtype)


def preprocess_graph(adj):
    """One-time graph preprocessing (hoist out of the jitted forward):
    pad adjacency to bf16 and compute the D^{-1/2} normalisation vector.
    NOTE: symmetric (undirected) adjacency assumed, matching DGL norm='both'."""
    n = adj.shape[0]
    n_pad = _round_up(n, _ALIGN)
    deg = jnp.sum(adj.astype(jnp.float32), axis=1)
    inv_sqrt = jnp.where(deg > 0, jax.lax.rsqrt(jnp.maximum(deg, 1e-12)), 0.0)
    d_col = jnp.zeros((n_pad, 1), jnp.float32).at[:n, 0].set(
        inv_sqrt.astype(jnp.float32))
    a_pad = jnp.zeros((n_pad, n_pad), jnp.bfloat16).at[:n, :n].set(
        adj.astype(jnp.bfloat16))
    return a_pad, d_col


def pad_features(x):
    n, f = x.shape
    n_pad = _round_up(n, _ALIGN)
    f_pad = _round_up(f, _ALIGN)
    return jnp.zeros((n_pad, f_pad), jnp.bfloat16).at[:n, :f].set(
        x.astype(jnp.bfloat16))


def pad_params(params):
    in_feats, h_feat = params["w1"].shape
    num_classes = params["w2"].shape[1]
    fin_pad = _round_up(in_feats, _ALIGN)
    fh_pad = _round_up(h_feat, _ALIGN)
    fc_pad = _round_up(num_classes, _ALIGN)
    w1 = jnp.zeros((fin_pad, fh_pad), jnp.bfloat16).at[:in_feats, :h_feat].set(
        params["w1"].astype(jnp.bfloat16))
    b1 = jnp.zeros((1, fh_pad), jnp.float32).at[0, :h_feat].set(
        params["b1"].astype(jnp.float32))
    w2 = jnp.zeros((fh_pad, fc_pad), jnp.bfloat16).at[:h_feat, :num_classes].set(
        params["w2"].astype(jnp.bfloat16))
    b2 = jnp.zeros((1, fc_pad), jnp.float32).at[0, :num_classes].set(
        params["b2"].astype(jnp.float32))
    return w1, b1, w2, b2


def gcn_forward_padded(a_pad, d_col, x_pad, w1, b1, w2, b2):
    """GCN.forward on pre-padded operands: h = relu(conv1(x)); out = conv2(h)."""
    h = gcn_layer(a_pad, d_col, x_pad, w1, b1,
                  apply_relu=True, out_dtype=jnp.bfloat16)
    return gcn_layer(a_pad, d_col, h, w2, b2,
                     apply_relu=False, out_dtype=jnp.float32)


def gcn_forward(adj, in_feat, params):
    """Convenience path (padding inlined). For repeated inference, hoist
    preprocess_graph / pad_features / pad_params and jit gcn_forward_padded."""
    n = adj.shape[0]
    num_classes = params["w2"].shape[1]
    a_pad, d_col = preprocess_graph(adj)
    out = gcn_forward_padded(a_pad, d_col, pad_features(in_feat),
                             *pad_params(params))
    return out[:n, :num_classes]


def init_params(key, in_feats, h_feat, num_classes, dtype=jnp.float32):
    k1, k2 = jax.random.split(key)
    lim1 = (6.0 / (in_feats + h_feat)) ** 0.5
    lim2 = (6.0 / (h_feat + num_classes)) ** 0.5
    return {
        "w1": jax.random.uniform(k1, (in_feats, h_feat), dtype, -lim1, lim1),
        "b1": jnp.zeros((h_feat,), dtype),
        "w2": jax.random.uniform(k2, (h_feat, num_classes), dtype, -lim2, lim2),
        "b2": jnp.zeros((num_classes,), dtype),
    }


def _reference_forward(adj, in_feat, params):
    """Pure-JAX f32 reference (same math as DGL GraphConv norm='both')."""
    deg = jnp.sum(adj, axis=1)
    d = jnp.where(deg > 0, deg ** -0.5, 0.0)
    a_norm = d[:, None] * adj * d[None, :]
    h = jnp.maximum(a_norm @ (in_feat @ params["w1"]) + params["b1"], 0.0)
    return a_norm @ (h @ params["w2"]) + params["b2"]


if __name__ == "__main__":
    key = jax.random.PRNGKey(0)
    k_graph, k_feat, k_param = jax.random.split(key, 3)

    # Small synthetic graph: N nodes, symmetric random adjacency + ring so no
    # node has degree zero (DGL would raise on zero in-degree by default).
    N = 16
    IN_FEATS = 16
    H_FEAT = 32
    NUM_CLASSES = 8

    rand = jax.random.bernoulli(k_graph, p=0.25, shape=(N, N)).astype(jnp.float32)
    adj = jnp.maximum(rand, rand.T)
    adj = adj * (1.0 - jnp.eye(N, dtype=jnp.float32))  # no self-loops (DGL default)
    ring = jnp.roll(jnp.eye(N, dtype=jnp.float32), 1, axis=1)
    adj = jnp.minimum(adj + ring + ring.T, 1.0)

    in_feat = jax.random.normal(k_feat, (N, IN_FEATS), dtype=jnp.float32)
    params = init_params(k_param, IN_FEATS, H_FEAT, NUM_CLASSES)

    # One-time preprocessing hoisted out of the jitted forward (perf review).
    a_pad, d_col = preprocess_graph(adj)
    x_pad = pad_features(in_feat)
    w1, b1, w2, b2 = pad_params(params)

    fwd = jax.jit(gcn_forward_padded)
    out_pad = jax.block_until_ready(fwd(a_pad, d_col, x_pad, w1, b1, w2, b2))
    out = out_pad[:N, :NUM_CLASSES]

    assert out.shape == (N, NUM_CLASSES)
    assert bool(jnp.all(jnp.isfinite(out)))

    # Loose tolerance: operands are bf16 (f32 accumulation) vs f32 reference.
    ref = _reference_forward(adj, in_feat, params)
    assert bool(jnp.allclose(out, ref, atol=1.5e-1, rtol=1.5e-1)), (
        float(jnp.max(jnp.abs(out - ref))))

    print("KERNEL_OK")
</pallas_src>

<mosaic_0001>
module attributes {stable_mosaic.version = 11 : i64} {
  func.func @_xw_kernel(%arg0: i32, %arg1: i32, %arg2: i32, %arg3: memref<256x256xbf16, #tpu.memory_space<vmem>>, %arg4: memref<256x256xbf16, #tpu.memory_space<vmem>>, %arg5: memref<256x1xf32, #tpu.memory_space<vmem>>, %arg6: memref<256x256xbf16, #tpu.memory_space<vmem>>, %arg7: memref<256x256xf32, #tpu.memory_space<vmem>>) attributes {dimension_semantics = [#tpu.dimension_semantics<parallel>, #tpu.dimension_semantics<parallel>, #tpu.dimension_semantics<arbitrary>], iteration_bounds = array<i64: 1, 1, 1>, scalar_prefetch = 0 : i64, scratch_operands = 1 : i64, tpu.core_type = #tpu.core_type<tc>, window_params = [{transform_indices = @transform_0, window_bounds = array<i64: 256, 256>}, {transform_indices = @transform_1, window_bounds = array<i64: 256, 256>}, {transform_indices = @transform_2, window_bounds = array<i64: 256, 1>}, {transform_indices = @transform_3, window_bounds = array<i64: 256, 256>}]} {
    %c0_i32 = arith.constant 0 : i32
    %0 = arith.cmpi eq, %arg2, %c0_i32 : i32
    %1 = arith.extui %0 : i1 to i32
    %c0_i32_0 = arith.constant 0 : i32
    %2 = arith.cmpi ne, %1, %c0_i32_0 : i32
    scf.if %2 {
      %cst_10 = arith.constant 0.000000e+00 : f32
      %12 = vector.broadcast %cst_10 : f32 to vector<256x256xf32>
      %c0_11 = arith.constant 0 : index
      %c0_12 = arith.constant 0 : index
      %13 = vector.load %arg7[%c0_11, %c0_12] : memref<256x256xf32, #tpu.memory_space<vmem>>, vector<256x256xf32>
      tpu.vector_store %arg7[%c0_11, %c0_12], %12 {strides = array<i32>} : memref<256x256xf32, #tpu.memory_space<vmem>>, vector<256x256xf32>,
    } else {
    }
    %c0 = arith.constant 0 : index
    %c0_1 = arith.constant 0 : index
    %3 = vector.load %arg7[%c0, %c0_1] : memref<256x256xf32, #tpu.memory_space<vmem>>, vector<256x256xf32>
    %c0_2 = arith.constant 0 : index
    %c0_3 = arith.constant 0 : index
    %4 = vector.load %arg3[%c0_2, %c0_3] : memref<256x256xbf16, #tpu.memory_space<vmem>>, vector<256x256xbf16>
    %c0_4 = arith.constant 0 : index
    %c0_5 = arith.constant 0 : index
    %5 = vector.load %arg4[%c0_4, %c0_5] : memref<256x256xbf16, #tpu.memory_space<vmem>>, vector<256x256xbf16>
    %cst = arith.constant dense<0.000000e+00> : vector<256x256xf32>
    %6 = tpu.matmul %4, %5, %cst {dimension_numbers = #tpu.dot_dimension_numbers<[1], [0], [0], [1], [0, 0, 1, 1], [], []>} : vector<256x256xbf16>, vector<256x256xbf16>, vector<256x256xf32> -> vector<256x256xf32>
    %7 = arith.addf %3, %6 : vector<256x256xf32>
    %c0_6 = arith.constant 0 : index
    %c0_7 = arith.constant 0 : index
    %8 = vector.load %arg7[%c0_6, %c0_7] : memref<256x256xf32, #tpu.memory_space<vmem>>, vector<256x256xf32>
    tpu.vector_store %arg7[%c0_6, %c0_7], %7 {strides = array<i32>} : memref<256x256xf32, #tpu.memory_space<vmem>>, vector<256x256xf32>,
    %c0_i32_8 = arith.constant 0 : i32
    %9 = arith.cmpi eq, %arg2, %c0_i32_8 : i32
    %10 = arith.extui %9 : i1 to i32
    %c0_i32_9 = arith.constant 0 : i32
    %11 = arith.cmpi ne, %10, %c0_i32_9 : i32
    scf.if %11 {
      %c0_10 = arith.constant 0 : index
      %c0_11 = arith.constant 0 : index
      %12 = vector.load %arg5[%c0_10, %c0_11] : memref<256x1xf32, #tpu.memory_space<vmem>>, vector<256x1xf32>
      %c0_12 = arith.constant 0 : index
      %c0_13 = arith.constant 0 : index
      %13 = vector.load %arg7[%c0_12, %c0_13] : memref<256x256xf32, #tpu.memory_space<vmem>>, vector<256x256xf32>
      %14 = vector.broadcast %12 : vector<256x1xf32> to vector<256x256xf32>
      %15 = arith.mulf %14, %13 : vector<256x256xf32>
      %16 = arith.truncf %15 : vector<256x256xf32> to vector<256x256xbf16>
      %c0_14 = arith.constant 0 : index
      %c0_15 = arith.constant 0 : index
      %17 = vector.load %arg6[%c0_14, %c0_15] : memref<256x256xbf16, #tpu.memory_space<vmem>>, vector<256x256xbf16>
      tpu.vector_store %arg6[%c0_14, %c0_15], %16 {strides = array<i32>} : memref<256x256xbf16, #tpu.memory_space<vmem>>, vector<256x256xbf16>,
    } else {
    }
    return
  }
  func.func @transform_0(%arg0: i32, %arg1: i32, %arg2: i32) -> (i32, i32) {
    %c0_i32 = arith.constant 0 : i32
    return %arg0, %arg2 : i32, i32
  }
  func.func @transform_1(%arg0: i32, %arg1: i32, %arg2: i32) -> (i32, i32) {
    %c0_i32 = arith.constant 0 : i32
    return %arg2, %arg1 : i32, i32
  }
  func.func @transform_2(%arg0: i32, %arg1: i32, %arg2: i32) -> (i32, i32) {
    %c0_i32 = arith.constant 0 : i32
    %c0_i32_0 = arith.constant 0 : i32
    return %arg0, %c0_i32 : i32, i32
  }
  func.func @transform_3(%arg0: i32, %arg1: i32, %arg2: i32) -> (i32, i32) {
    %c0_i32 = arith.constant 0 : i32
    return %arg0, %arg1 : i32, i32
  }
}

module attributes {stable_mosaic.version = 11 : i64} {
  func.func @_xw_kernel(%arg0: i32, %arg1: i32, %arg2: i32, %arg3: memref<256x256xbf16, #tpu.memory_space<vmem>>, %arg4: memref<256x256xbf16, #tpu.memory_space<vmem>>, %arg5: memref<256x1xf32, #tpu.memory_space<vmem>>, %arg6: memref<256x256xbf16, #tpu.memory_space<vmem>>, %arg7: memref<256x256xf32, #tpu.memory_space<vmem>>) attributes {dimension_semantics = [#tpu.dimension_semantics<parallel>, #tpu.dimension_semantics<parallel>, #tpu.dimension_semantics<arbitrary>], iteration_bounds = array<i64: 1, 1, 1>, scalar_prefetch = 0 : i64, scratch_operands = 1 : i64, tpu.core_type = #tpu.core_type<tc>, window_params = [{transform_indices = @transform_0, window_bounds = array<i64: 256, 256>}, {transform_indices = @transform_1, window_bounds = array<i64: 256, 256>}, {transform_indices = @transform_2, window_bounds = array<i64: 256, 1>}, {transform_indices = @transform_3, window_bounds = array<i64: 256, 256>}]} {
    %c0_i32 = arith.constant 0 : i32
    %0 = arith.cmpi eq, %arg2, %c0_i32 : i32
    %1 = arith.extui %0 : i1 to i32
    %c0_i32_0 = arith.constant 0 : i32
    %2 = arith.cmpi ne, %1, %c0_i32_0 : i32
    scf.if %2 {
      %cst_10 = arith.constant 0.000000e+00 : f32
      %12 = vector.broadcast %cst_10 : f32 to vector<256x256xf32>
      %c0_11 = arith.constant 0 : index
      %c0_12 = arith.constant 0 : index
      %13 = vector.load %arg7[%c0_11, %c0_12] : memref<256x256xf32, #tpu.memory_space<vmem>>, vector<256x256xf32>
      tpu.vector_store %arg7[%c0_11, %c0_12], %12 {strides = array<i32>} : memref<256x256xf32, #tpu.memory_space<vmem>>, vector<256x256xf32>,
    } else {
    }
    %c0 = arith.constant 0 : index
    %c0_1 = arith.constant 0 : index
    %3 = vector.load %arg7[%c0, %c0_1] : memref<256x256xf32, #tpu.memory_space<vmem>>, vector<256x256xf32>
    %c0_2 = arith.constant 0 : index
    %c0_3 = arith.constant 0 : index
    %4 = vector.load %arg3[%c0_2, %c0_3] : memref<256x256xbf16, #tpu.memory_space<vmem>>, vector<256x256xbf16>
    %c0_4 = arith.constant 0 : index
    %c0_5 = arith.constant 0 : index
    %5 = vector.load %arg4[%c0_4, %c0_5] : memref<256x256xbf16, #tpu.memory_space<vmem>>, vector<256x256xbf16>
    %cst = arith.constant dense<0.000000e+00> : vector<256x256xf32>
    %6 = tpu.matmul %4, %5, %cst {dimension_numbers = #tpu.dot_dimension_numbers<[1], [0], [0], [1], [0, 0, 1, 1], [], []>} : vector<256x256xbf16>, vector<256x256xbf16>, vector<256x256xf32> -> vector<256x256xf32>
    %7 = arith.addf %3, %6 : vector<256x256xf32>
    %c0_6 = arith.constant 0 : index
    %c0_7 = arith.constant 0 : index
    %8 = vector.load %arg7[%c0_6, %c0_7] : memref<256x256xf32, #tpu.memory_space<vmem>>, vector<256x256xf32>
    tpu.vector_store %arg7[%c0_6, %c0_7], %7 {strides = array<i32>} : memref<256x256xf32, #tpu.memory_space<vmem>>, vector<256x256xf32>,
    %c0_i32_8 = arith.constant 0 : i32
    %9 = arith.cmpi eq, %arg2, %c0_i32_8 : i32
    %10 = arith.extui %9 : i1 to i32
    %c0_i32_9 = arith.constant 0 : i32
    %11 = arith.cmpi ne, %10, %c0_i32_9 : i32
    scf.if %11 {
      %c0_10 = arith.constant 0 : index
      %c0_11 = arith.constant 0 : index
      %12 = vector.load %arg5[%c0_10, %c0_11] : memref<256x1xf32, #tpu.memory_space<vmem>>, vector<256x1xf32>
      %c0_12 = arith.constant 0 : index
      %c0_13 = arith.constant 0 : index
      %13 = vector.load %arg7[%c0_12, %c0_13] : memref<256x256xf32, #tpu.memory_space<vmem>>, vector<256x256xf32>
      %14 = vector.broadcast %12 : vector<256x1xf32> to vector<256x256xf32>
      %15 = arith.mulf %14, %13 : vector<256x256xf32>
      %16 = arith.truncf %15 : vector<256x256xf32> to vector<256x256xbf16>
      %c0_14 = arith.constant 0 : index
      %c0_15 = arith.constant 0 : index
      %17 = vector.load %arg6[%c0_14, %c0_15] : memref<256x256xbf16, #tpu.memory_space<vmem>>, vector<256x256xbf16>
      tpu.vector_store %arg6[%c0_14, %c0_15], %16 {strides = array<i32>} : memref<256x256xbf16, #tpu.memory_space<vmem>>, vector<256x256xbf16>,
    } else {
    }
    return
  }
  func.func @transform_0(%arg0: i32, %arg1: i32, %arg2: i32) -> (i32, i32) {
    %c0_i32 = arith.constant 0 : i32
    return %arg0, %arg2 : i32, i32
  }
  func.func @transform_1(%arg0: i32, %arg1: i32, %arg2: i32) -> (i32, i32) {
    %c0_i32 = arith.constant 0 : i32
    return %arg2, %arg1 : i32, i32
  }
  func.func @transform_2(%arg0: i32, %arg1: i32, %arg2: i32) -> (i32, i32) {
    %c0_i32 = arith.constant 0 : i32
    %c0_i32_0 = arith.constant 0 : i32
    return %arg0, %c0_i32 : i32, i32
  }
  func.func @transform_3(%arg0: i32, %arg1: i32, %arg2: i32) -> (i32, i32) {
    %c0_i32 = arith.constant 0 : i32
    return %arg0, %arg1 : i32, i32
  }
}

module attributes {stable_mosaic.version = 11 : i64} {
  func.func @_agg_kernel(%arg0: i32, %arg1: i32, %arg2: i32, %arg3: memref<256x256xbf16, #tpu.memory_space<vmem>>, %arg4: memref<256x256xbf16, #tpu.memory_space<vmem>>, %arg5: memref<256x1xf32, #tpu.memory_space<vmem>>, %arg6: memref<1x256xf32, #tpu.memory_space<vmem>>, %arg7: memref<256x256xbf16, #tpu.memory_space<vmem>>, %arg8: memref<256x256xf32, #tpu.memory_space<vmem>>) attributes {dimension_semantics = [#tpu.dimension_semantics<parallel>, #tpu.dimension_semantics<parallel>, #tpu.dimension_semantics<arbitrary>], iteration_bounds = array<i64: 1, 1, 1>, scalar_prefetch = 0 : i64, scratch_operands = 1 : i64, tpu.core_type = #tpu.core_type<tc>, window_params = [{transform_indices = @transform_0, window_bounds = array<i64: 256, 256>}, {transform_indices = @transform_1, window_bounds = array<i64: 256, 256>}, {transform_indices = @transform_2, window_bounds = array<i64: 256, 1>}, {transform_indices = @transform_3, window_bounds = array<i64: 1, 256>}, {transform_indices = @transform_4, window_bounds = array<i64: 256, 256>}]} {
    %c0_i32 = arith.constant 0 : i32
    %0 = arith.cmpi eq, %arg2, %c0_i32 : i32
    %1 = arith.extui %0 : i1 to i32
    %c0_i32_0 = arith.constant 0 : i32
    %2 = arith.cmpi ne, %1, %c0_i32_0 : i32
    scf.if %2 {
      %cst_9 = arith.constant 0.000000e+00 : f32
      %15 = vector.broadcast %cst_9 : f32 to vector<256x256xf32>
      %c0_10 = arith.constant 0 : index
      %c0_11 = arith.constant 0 : index
      %16 = vector.load %arg8[%c0_10, %c0_11] : memref<256x256xf32, #tpu.memory_space<vmem>>, vector<256x256xf32>
      tpu.vector_store %arg8[%c0_10, %c0_11], %15 {strides = array<i32>} : memref<256x256xf32, #tpu.memory_space<vmem>>, vector<256x256xf32>,
    } else {
    }
    %c256_i32 = arith.constant 256 : i32
    %3 = arith.muli %arg2, %c256_i32 : i32
    %4 = tpu.assume_multiple %3, 256 : i32
    %5 = arith.index_cast %4 : i32 to index
    %c0 = arith.constant 0 : index
    %6 = vector.load %arg4[%5, %c0] : memref<256x256xbf16, #tpu.memory_space<vmem>>, vector<256x256xbf16>
    %c0_1 = arith.constant 0 : index
    %c0_2 = arith.constant 0 : index
    %7 = vector.load %arg8[%c0_1, %c0_2] : memref<256x256xf32, #tpu.memory_space<vmem>>, vector<256x256xf32>
    %c0_3 = arith.constant 0 : index
    %c0_4 = arith.constant 0 : index
    %8 = vector.load %arg3[%c0_3, %c0_4] : memref<256x256xbf16, #tpu.memory_space<vmem>>, vector<256x256xbf16>
    %cst = arith.constant dense<0.000000e+00> : vector<256x256xf32>
    %9 = tpu.matmul %8, %6, %cst {dimension_numbers = #tpu.dot_dimension_numbers<[1], [0], [0], [1], [0, 0, 1, 1], [], []>} : vector<256x256xbf16>, vector<256x256xbf16>, vector<256x256xf32> -> vector<256x256xf32>
    %10 = arith.addf %7, %9 : vector<256x256xf32>
    %c0_5 = arith.constant 0 : index
    %c0_6 = arith.constant 0 : index
    %11 = vector.load %arg8[%c0_5, %c0_6] : memref<256x256xf32, #tpu.memory_space<vmem>>, vector<256x256xf32>
    tpu.vector_store %arg8[%c0_5, %c0_6], %10 {strides = array<i32>} : memref<256x256xf32, #tpu.memory_space<vmem>>, vector<256x256xf32>,
    %c0_i32_7 = arith.constant 0 : i32
    %12 = arith.cmpi eq, %arg2, %c0_i32_7 : i32
    %13 = arith.extui %12 : i1 to i32
    %c0_i32_8 = arith.constant 0 : i32
    %14 = arith.cmpi ne, %13, %c0_i32_8 : i32
    scf.if %14 {
      %c0_9 = arith.constant 0 : index
      %c0_10 = arith.constant 0 : index
      %15 = vector.load %arg5[%c0_9, %c0_10] : memref<256x1xf32, #tpu.memory_space<vmem>>, vector<256x1xf32>
      %c0_11 = arith.constant 0 : index
      %c0_12 = arith.constant 0 : index
      %16 = vector.load %arg8[%c0_11, %c0_12] : memref<256x256xf32, #tpu.memory_space<vmem>>, vector<256x256xf32>
      %17 = vector.broadcast %15 : vector<256x1xf32> to vector<256x256xf32>
      %18 = arith.mulf %17, %16 : vector<256x256xf32>
      %c0_13 = arith.constant 0 : index
      %c0_14 = arith.constant 0 : index
      %19 = vector.load %arg6[%c0_13, %c0_14] : memref<1x256xf32, #tpu.memory_space<vmem>>, vector<1x256xf32>
      %20 = vector.broadcast %19 : vector<1x256xf32> to vector<256x256xf32>
      %21 = arith.addf %18, %20 : vector<256x256xf32>
      %cst_15 = arith.constant 0.000000e+00 : f32
      %22 = vector.broadcast %cst_15 : f32 to vector<256x256xf32>
      %23 = arith.maximumf %21, %22 : vector<256x256xf32>
      %24 = arith.truncf %23 : vector<256x256xf32> to vector<256x256xbf16>
      %c0_16 = arith.constant 0 : index
      %c0_17 = arith.constant 0 : index
      %25 = vector.load %arg7[%c0_16, %c0_17] : memref<256x256xbf16, #tpu.memory_space<vmem>>, vector<256x256xbf16>
      tpu.vector_store %arg7[%c0_16, %c0_17], %24 {strides = array<i32>} : memref<256x256xbf16, #tpu.memory_space<vmem>>, vector<256x256xbf16>,
    } else {
    }
    return
  }
  func.func @transform_0(%arg0: i32, %arg1: i32, %arg2: i32) -> (i32, i32) {
    %c0_i32 = arith.constant 0 : i32
    return %arg0, %arg2 : i32, i32
  }
  func.func @transform_1(%arg0: i32, %arg1: i32, %arg2: i32) -> (i32, i32) {
    %c0_i32 = arith.constant 0 : i32
    %c0_i32_0 = arith.constant 0 : i32
    return %c0_i32, %arg1 : i32, i32
  }
  func.func @transform_2(%arg0: i32, %arg1: i32, %arg2: i32) -> (i32, i32) {
    %c0_i32 = arith.constant 0 : i32
    %c0_i32_0 = arith.constant 0 : i32
    return %arg0, %c0_i32 : i32, i32
  }
  func.func @transform_3(%arg0: i32, %arg1: i32, %arg2: i32) -> (i32, i32) {
    %c0_i32 = arith.constant 0 : i32
    %c0_i32_0 = arith.constant 0 : i32
    return %c0_i32, %arg1 : i32, i32
  }
  func.func @transform_4(%arg0: i32, %arg1: i32, %arg2: i32) -> (i32, i32) {
    %c0_i32 = arith.constant 0 : i32
    return %arg0, %arg1 : i32, i32
  }
}

module attributes {stable_mosaic.version = 11 : i64} {
  func.func @_agg_kernel(%arg0: i32, %arg1: i32, %arg2: i32, %arg3: memref<256x256xbf16, #tpu.memory_space<vmem>>, %arg4: memref<256x256xbf16, #tpu.memory_space<vmem>>, %arg5: memref<256x1xf32, #tpu.memory_space<vmem>>, %arg6: memref<1x256xf32, #tpu.memory_space<vmem>>, %arg7: memref<256x256xf32, #tpu.memory_space<vmem>>, %arg8: memref<256x256xf32, #tpu.memory_space<vmem>>) attributes {dimension_semantics = [#tpu.dimension_semantics<parallel>, #tpu.dimension_semantics<parallel>, #tpu.dimension_semantics<arbitrary>], iteration_bounds = array<i64: 1, 1, 1>, scalar_prefetch = 0 : i64, scratch_operands = 1 : i64, tpu.core_type = #tpu.core_type<tc>, window_params = [{transform_indices = @transform_0, window_bounds = array<i64: 256, 256>}, {transform_indices = @transform_1, window_bounds = array<i64: 256, 256>}, {transform_indices = @transform_2, window_bounds = array<i64: 256, 1>}, {transform_indices = @transform_3, window_bounds = array<i64: 1, 256>}, {transform_indices = @transform_4, window_bounds = array<i64: 256, 256>}]} {
    %c0_i32 = arith.constant 0 : i32
    %0 = arith.cmpi eq, %arg2, %c0_i32 : i32
    %1 = arith.extui %0 : i1 to i32
    %c0_i32_0 = arith.constant 0 : i32
    %2 = arith.cmpi ne, %1, %c0_i32_0 : i32
    scf.if %2 {
      %cst_9 = arith.constant 0.000000e+00 : f32
      %15 = vector.broadcast %cst_9 : f32 to vector<256x256xf32>
      %c0_10 = arith.constant 0 : index
      %c0_11 = arith.constant 0 : index
      %16 = vector.load %arg8[%c0_10, %c0_11] : memref<256x256xf32, #tpu.memory_space<vmem>>, vector<256x256xf32>
      tpu.vector_store %arg8[%c0_10, %c0_11], %15 {strides = array<i32>} : memref<256x256xf32, #tpu.memory_space<vmem>>, vector<256x256xf32>,
    } else {
    }
    %c256_i32 = arith.constant 256 : i32
    %3 = arith.muli %arg2, %c256_i32 : i32
    %4 = tpu.assume_multiple %3, 256 : i32
    %5 = arith.index_cast %4 : i32 to index
    %c0 = arith.constant 0 : index
    %6 = vector.load %arg4[%5, %c0] : memref<256x256xbf16, #tpu.memory_space<vmem>>, vector<256x256xbf16>
    %c0_1 = arith.constant 0 : index
    %c0_2 = arith.constant 0 : index
    %7 = vector.load %arg8[%c0_1, %c0_2] : memref<256x256xf32, #tpu.memory_space<vmem>>, vector<256x256xf32>
    %c0_3 = arith.constant 0 : index
    %c0_4 = arith.constant 0 : index
    %8 = vector.load %arg3[%c0_3, %c0_4] : memref<256x256xbf16, #tpu.memory_space<vmem>>, vector<256x256xbf16>
    %cst = arith.constant dense<0.000000e+00> : vector<256x256xf32>
    %9 = tpu.matmul %8, %6, %cst {dimension_numbers = #tpu.dot_dimension_numbers<[1], [0], [0], [1], [0, 0, 1, 1], [], []>} : vector<256x256xbf16>, vector<256x256xbf16>, vector<256x256xf32> -> vector<256x256xf32>
    %10 = arith.addf %7, %9 : vector<256x256xf32>
    %c0_5 = arith.constant 0 : index
    %c0_6 = arith.constant 0 : index
    %11 = vector.load %arg8[%c0_5, %c0_6] : memref<256x256xf32, #tpu.memory_space<vmem>>, vector<256x256xf32>
    tpu.vector_store %arg8[%c0_5, %c0_6], %10 {strides = array<i32>} : memref<256x256xf32, #tpu.memory_space<vmem>>, vector<256x256xf32>,
    %c0_i32_7 = arith.constant 0 : i32
    %12 = arith.cmpi eq, %arg2, %c0_i32_7 : i32
    %13 = arith.extui %12 : i1 to i32
    %c0_i32_8 = arith.constant 0 : i32
    %14 = arith.cmpi ne, %13, %c0_i32_8 : i32
    scf.if %14 {
      %c0_9 = arith.constant 0 : index
      %c0_10 = arith.constant 0 : index
      %15 = vector.load %arg5[%c0_9, %c0_10] : memref<256x1xf32, #tpu.memory_space<vmem>>, vector<256x1xf32>
      %c0_11 = arith.constant 0 : index
      %c0_12 = arith.constant 0 : index
      %16 = vector.load %arg8[%c0_11, %c0_12] : memref<256x256xf32, #tpu.memory_space<vmem>>, vector<256x256xf32>
      %17 = vector.broadcast %15 : vector<256x1xf32> to vector<256x256xf32>
      %18 = arith.mulf %17, %16 : vector<256x256xf32>
      %c0_13 = arith.constant 0 : index
      %c0_14 = arith.constant 0 : index
      %19 = vector.load %arg6[%c0_13, %c0_14] : memref<1x256xf32, #tpu.memory_space<vmem>>, vector<1x256xf32>
      %20 = vector.broadcast %19 : vector<1x256xf32> to vector<256x256xf32>
      %21 = arith.addf %18, %20 : vector<256x256xf32>
      %c0_15 = arith.constant 0 : index
      %c0_16 = arith.constant 0 : index
      %22 = vector.load %arg7[%c0_15, %c0_16] : memref<256x256xf32, #tpu.memory_space<vmem>>, vector<256x256xf32>
      tpu.vector_store %arg7[%c0_15, %c0_16], %21 {strides = array<i32>} : memref<256x256xf32, #tpu.memory_space<vmem>>, vector<256x256xf32>,
    } else {
    }
    return
  }
  func.func @transform_0(%arg0: i32, %arg1: i32, %arg2: i32) -> (i32, i32) {
    %c0_i32 = arith.constant 0 : i32
    return %arg0, %arg2 : i32, i32
  }
  func.func @transform_1(%arg0: i32, %arg1: i32, %arg2: i32) -> (i32, i32) {
    %c0_i32 = arith.constant 0 : i32
    %c0_i32_0 = arith.constant 0 : i32
    return %c0_i32, %arg1 : i32, i32
  }
  func.func @transform_2(%arg0: i32, %arg1: i32, %arg2: i32) -> (i32, i32) {
    %c0_i32 = arith.constant 0 : i32
    %c0_i32_0 = arith.constant 0 : i32
    return %arg0, %c0_i32 : i32, i32
  }
  func.func @transform_3(%arg0: i32, %arg1: i32, %arg2: i32) -> (i32, i32) {
    %c0_i32 = arith.constant 0 : i32
    %c0_i32_0 = arith.constant 0 : i32
    return %c0_i32, %arg1 : i32, i32
  }
  func.func @transform_4(%arg0: i32, %arg1: i32, %arg2: i32) -> (i32, i32) {
    %c0_i32 = arith.constant 0 : i32
    return %arg0, %arg1 : i32, i32
  }
}

</mosaic_0001>

<bundles_post_ra>
// kernel: gcn_forward_padded.4
= control target key start
LH: loop header
LB: loop body
LE: loop exit
PB: predicated region body
PF: predicated region fallthrough
CT: control target
= control target key end

     0   :  { %8 = vsyncpa [#allocation4], 0  ;;  %s1775_s15 = smov [#allocation3]   ;;  %s1776_s17 = smov 128   ;;  %s2186_s0 = inlined_call_operand.vmem [shape: bf16[256,256], index: 0, kind: input, shape index: {}]   ;;  %s2187_s1 = inlined_call_operand.hbm [shape: bf16[256,256], index: 1, kind: input, shape index: {}]   ;;  %s2188_s2 = inlined_call_operand.vmem [shape: f32[256,1], index: 2, kind: input, shape index: {}]   ;;  %s2189_s3 = inlined_call_operand.vmem [shape: bf16[256,256], index: 3, kind: output, shape index: {}]  }
   0x1   :  { %s15_s14 = sshll.u32 %s2187_s1, 4  ;;  %s17_s16 = sshll.u32 %s1775_s15, 4  ;;  %s16_s14 = int_to_ptr.hbm [resolvable:$true] %s15_s14  ;;  %s18_s16 = int_to_ptr.vmem [resolvable:$true] %s17_s16 }
   0x2   :  { %s1777_s18 = smov 8  }
   0x3   :  { %23 = dma.hbm_to_vmem [thread:$0]  %s16_s14, 4096, %s18_s16, [#allocation4], %s1776_s17, %s1776_s17, %s1777_s18  }
   0x4   :  { %1773 = dma.done.wait [#allocation4], 4096  }
   0x5   :  { %1774 = vsyncadd [#allocation4], 4294963200  ;;  %v1608_v0 = vld [vmem:[#allocation3 + $0x70] sm:$0xf]  ;;  %v1725_v1 = vld [vmem:[#allocation3 + $0x74] sm:$0xf0] }
   0x6   :  { %v1672_v2 = vld [vmem:[#allocation3 + $0xf0] sm:$0xf]  ;;  %v1609_v3 = vor.u32 %v1725_v1, %v1608_v0  ;;  %v1741_v4 = vld [vmem:[#allocation3 + $0xf4] sm:$0xf0]  ;;  %v1724_v5 = vld [vmem:[#allocation3 + $0x74] sm:$0xf] }
   0x7   :  { %v1610_v6 = vld [vmem:[#allocation3 + $0x78] sm:$0xf0]  ;;  %v1673_v7 = vor.u32 %v1741_v4, %v1672_v2  ;;  %v1740_v9 = vld [vmem:[#allocation3 + $0xf4] sm:$0xf]  ;;  %v1600_v11 = vld [vmem:[#allocation3 + $0x60] sm:$0xf] }
   0x8   :  { %v1613_v8 = vor.u32 %v1724_v5, %v1610_v6  ;;  %v1674_v10 = vld [vmem:[#allocation3 + $0xf8] sm:$0xf0]  ;;  %546 = vmatpush.bf16.msra.mxu0 %v1609_v3  ;;  %v1723_v13 = vld [vmem:[#allocation3 + $0x64] sm:$0xf0]  ;;  %v1664_v14 = vld [vmem:[#allocation3 + $0xe0] sm:$0xf] }
   0x9   :  { %v1677_v12 = vor.u32 %v1740_v9, %v1674_v10  ;;  %v1739_v15 = vld [vmem:[#allocation3 + $0xe4] sm:$0xf0]  ;;  %635 = vmatpush.bf16.msra.mxu1 %v1673_v7  ;;  %v1601_v16 = vor.u32 %v1723_v13, %v1600_v11  ;;  %v1722_v18 = vld [vmem:[#allocation3 + $0x64] sm:$0xf]  ;;  %v1602_v19 = vld [vmem:[#allocation3 + $0x68] sm:$0xf0] }
   0xa   :  { %724 = vmatpush.bf16.msra.mxu2 %v1613_v8  ;;  %v1665_v17 = vor.u32 %v1739_v15, %v1664_v14  ;;  %v1738_v20 = vld [vmem:[#allocation3 + $0xe4] sm:$0xf]  ;;  %v1605_v21 = vor.u32 %v1722_v18, %v1602_v19  ;;  %v1666_v22 = vld [vmem:[#allocation3 + $0xe8] sm:$0xf0]  ;;  %v1592_v23 = vld [vmem:[#allocation3 + $0x50] sm:$0xf] }
   0xb   :  { %813 = vmatpush.bf16.msra.mxu3 %v1677_v12  ;;  %v1721_v24 = vld [vmem:[#allocation3 + $0x54] sm:$0xf0]  ;;  %v1669_v25 = vor.u32 %v1738_v20, %v1666_v22  ;;  %v1656_v26 = vld [vmem:[#allocation3 + $0xd0] sm:$0xf]  ;;  %v1720_v28 = vld [vmem:[#allocation3 + $0x54] sm:$0xf] }
   0xc   :  { %v1737_v27 = vld [vmem:[#allocation3 + $0xd4] sm:$0xf0]  ;;  %547 = vmatpush.bf16.msra.mxu0 %v1601_v16  ;;  %v1593_v29 = vor.u32 %v1721_v24, %v1592_v23  ;;  %v1594_v30 = vld [vmem:[#allocation3 + $0x58] sm:$0xf0]  ;;  %v1736_v31 = vld [vmem:[#allocation3 + $0xd4] sm:$0xf] }
   0xd   :  { %v1658_v32 = vld [vmem:[#allocation3 + $0xd8] sm:$0xf0]  ;;  %636 = vmatpush.bf16.msra.mxu1 %v1665_v17  ;;  %v1657_v33 = vor.u32 %v1737_v27, %v1656_v26  ;;  %v1597_v34 = vor.u32 %v1720_v28, %v1594_v30  ;;  %v1584_v35 = vld [vmem:[#allocation3 + $0x40] sm:$0xf]  ;;  %v1719_v36 = vld [vmem:[#allocation3 + $0x44] sm:$0xf0] }
   0xe   :  { %725 = vmatpush.bf16.msra.mxu2 %v1605_v21  ;;  %v1648_v37 = vld [vmem:[#allocation3 + $0xc0] sm:$0xf]  ;;  %v1661_v38 = vor.u32 %v1736_v31, %v1658_v32  ;;  %v1735_v39 = vld [vmem:[#allocation3 + $0xc4] sm:$0xf0]  ;;  %v1718_v40 = vld [vmem:[#allocation3 + $0x44] sm:$0xf]  ;;  %v1585_v44 = vor.u32 %v1719_v36, %v1584_v35 }
   0xf   :  { %814 = vmatpush.bf16.msra.mxu3 %v1669_v25  ;;  %v1586_v41 = vld [vmem:[#allocation3 + $0x48] sm:$0xf0]  ;;  %v1734_v42 = vld [vmem:[#allocation3 + $0xc4] sm:$0xf]  ;;  %v1649_v45 = vor.u32 %v1735_v39, %v1648_v37  ;;  %v1576_v47 = vld [vmem:[#allocation3 + $0x30] sm:$0xf] }
  0x10   :  { %v1650_v43 = vld [vmem:[#allocation3 + $0xc8] sm:$0xf0]  ;;  %548 = vmatpush.bf16.msra.mxu0 %v1593_v29  ;;  %v1589_v46 = vor.u32 %v1718_v40, %v1586_v41  ;;  %v1717_v48 = vld [vmem:[#allocation3 + $0x34] sm:$0xf0]  ;;  %v1640_v49 = vld [vmem:[#allocation3 + $0xb0] sm:$0xf] }
  0x11   :  { %637 = vmatpush.bf16.msra.mxu1 %v1657_v33  ;;  %v1653_v50 = vor.u32 %v1734_v42, %v1650_v43  ;;  %v1733_v51 = vld [vmem:[#allocation3 + $0xb4] sm:$0xf0]  ;;  %v1716_v52 = vld [vmem:[#allocation3 + $0x34] sm:$0xf]  ;;  %v1578_v53 = vld [vmem:[#allocation3 + $0x38] sm:$0xf0]  ;;  %v1577_v56 = vor.u32 %v1717_v48, %v1576_v47 }
  0x12   :  { %726 = vmatpush.bf16.msra.mxu2 %v1597_v34  ;;  %v1732_v54 = vld [vmem:[#allocation3 + $0xb4] sm:$0xf]  ;;  %v1642_v55 = vld [vmem:[#allocation3 + $0xb8] sm:$0xf0]  ;;  %v1641_v57 = vor.u32 %v1733_v51, %v1640_v49  ;;  %v1581_v58 = vor.u32 %v1716_v52, %v1578_v53  ;;  %v1568_v59 = vld [vmem:[#allocation3 + $0x20] sm:$0xf] }
  0x13   :  { %815 = vmatpush.bf16.msra.mxu3 %v1661_v38  ;;  %v1715_v60 = vld [vmem:[#allocation3 + $0x24] sm:$0xf0]  ;;  %v1632_v61 = vld [vmem:[#allocation3 + $0xa0] sm:$0xf]  ;;  %v1645_v62 = vor.u32 %v1732_v54, %v1642_v55  ;;  %v1714_v0 = vld [vmem:[#allocation3 + $0x24] sm:$0xf] }
  0x14   :  { %549 = vmatpush.bf16.msra.mxu0 %v1585_v44  ;;  %v1731_v63 = vld [vmem:[#allocation3 + $0xa4] sm:$0xf0]  ;;  %v1570_v1 = vld [vmem:[#allocation3 + $0x28] sm:$0xf0]  ;;  %v1730_v2 = vld [vmem:[#allocation3 + $0xa4] sm:$0xf]  ;;  %v1569_v4 = vor.u32 %v1715_v60, %v1568_v59 }
  0x15   :  { %638 = vmatpush.bf16.msra.mxu1 %v1649_v45  ;;  %v1634_v3 = vld [vmem:[#allocation3 + $0xa8] sm:$0xf0]  ;;  %v1633_v5 = vor.u32 %v1731_v63, %v1632_v61  ;;  %v1573_v6 = vor.u32 %v1714_v0, %v1570_v1  ;;  %v1560_v7 = vld [vmem:[#allocation3 + $0x10] sm:$0xf]  ;;  %v1713_v8 = vld [vmem:[#allocation3 + $0x14] sm:$0xf0] }
  0x16   :  { %727 = vmatpush.bf16.msra.mxu2 %v1589_v46  ;;  %v1624_v9 = vld [vmem:[#allocation3 + $0x90] sm:$0xf]  ;;  %v1637_v10 = vor.u32 %v1730_v2, %v1634_v3  ;;  %v1729_v11 = vld [vmem:[#allocation3 + $0x94] sm:$0xf0]  ;;  %v1712_v12 = vld [vmem:[#allocation3 + $0x14] sm:$0xf]  ;;  %v1561_v17 = vor.u32 %v1713_v8, %v1560_v7 }
  0x17   :  { %816 = vmatpush.bf16.msra.mxu3 %v1653_v50  ;;  %v1562_v13 = vld [vmem:[#allocation3 + $0x18] sm:$0xf0]  ;;  %v1728_v14 = vld [vmem:[#allocation3 + $0x94] sm:$0xf]  ;;  %v1033_v16 = vld [vmem:[%s2188_s2] sm:$0xff]  ;;  %v1778_v19 = vmov 0   ;;  %v1625_v20 = vor.u32 %v1729_v11, %v1624_v9 }
  0x18   :  { %550 = vmatpush.bf16.msra.mxu0 %v1577_v56  ;;  %v1626_v15 = vld [vmem:[#allocation3 + $0x98] sm:$0xf0]  ;;  %v1552_v18 = vld [vmem:[#allocation3] sm:$0xf]  ;;  %1746 = vset.pattern.permute.xlu0 %v1778_v19  ;;  %v1565_v21 = vor.u32 %v1712_v12, %v1562_v13  ;;  %v1711_v22 = vld [vmem:[#allocation3 + $0x4] sm:$0xf0] }
  0x19   :  { %639 = vmatpush.bf16.msra.mxu1 %v1641_v57  ;;  %v1616_v23 = vld [vmem:[#allocation3 + $0x80] sm:$0xf]  ;;  %v1035_v24 = vld [vmem:[%s2188_s2 + $0x10] sm:$0xff]  ;;  %v1629_v25 = vor.u32 %v1728_v14, %v1626_v15  ;;  %v1727_v26 = vld [vmem:[#allocation3 + $0x84] sm:$0xf0]  ;;  %1131 = vperm.xlu0 %1746, %v1033_v16   ;;  %v1553_v31 = vor.u32 %v1711_v22, %v1552_v18 }
  0x1a   :  { %728 = vmatpush.bf16.msra.mxu2 %v1581_v58  ;;  %v1710_v27 = vld [vmem:[#allocation3 + $0x4] sm:$0xf]  ;;  %v1554_v28 = vld [vmem:[#allocation3 + $0x8] sm:$0xf0]  ;;  %1747 = vset.pattern.permute.xlu1 %v1778_v19  ;;  %v1424_v32 = vld [vmem:[%s2186_s0] sm:$0xf]  ;;  %v1617_v34 = vor.u32 %v1727_v26, %v1616_v23 }
  0x1b   :  { %817 = vmatpush.bf16.msra.mxu3 %v1645_v62  ;;  %v1726_v29 = vld [vmem:[#allocation3 + $0x84] sm:$0xf]  ;;  %v1618_v30 = vld [vmem:[#allocation3 + $0x88] sm:$0xf0]  ;;  %1748 = vset.pattern.permute.xlu2 %v1778_v19  ;;  %v1679_v33 = vld [vmem:[%s2186_s0 + $0x4] sm:$0xf0]  ;;  %v1557_v35 = vor.u32 %v1710_v27, %v1554_v28 }
  0x1c   :  { %551 = vmatpush.bf16.msra.mxu0 %v1569_v4  ;;  %1141 = vperm.xlu1 %1747, %v1035_v24   ;;  %v1678_v36 = vld [vmem:[%s2186_s0 + $0x4] sm:$0xf]  ;;  %v1426_v37 = vld [vmem:[%s2186_s0 + $0x8] sm:$0xf0]  ;;  %v1621_v38 = vor.u32 %v1726_v29, %v1618_v30  ;;  %v1425_v39 = vor.u32 %v1679_v33, %v1424_v32  ;;  %v1036_v42 = vld [vmem:[%s2188_s2 + $0x18] sm:$0xff] }
  0x1d   :  { %640 = vmatpush.bf16.msra.mxu1 %v1633_v5  ;;  %v1034_v40 = vld [vmem:[%s2188_s2 + $0x8] sm:$0xff]  ;;  %v1429_v41 = vor.u32 %v1678_v36, %v1426_v37  ;;  %v1432_v43 = vld [vmem:[%s2186_s0 + $0x10] sm:$0xf]  ;;  %v1681_v44 = vld [vmem:[%s2186_s0 + $0x14] sm:$0xf0] }
  0x1e   :  { %729 = vmatpush.bf16.msra.mxu2 %v1573_v6  ;;  %v1680_v45 = vld [vmem:[%s2186_s0 + $0x14] sm:$0xf]  ;;  %v1434_v46 = vld [vmem:[%s2186_s0 + $0x18] sm:$0xf0]  ;;  %v1433_v47 = vor.u32 %v1681_v44, %v1432_v43  ;;  %v1440_v49 = vld [vmem:[%s2186_s0 + $0x20] sm:$0xf] }
  0x1f   :  { %818 = vmatpush.bf16.msra.mxu3 %v1637_v10  ;;  %v1437_v48 = vor.u32 %v1680_v45, %v1434_v46  ;;  %v1683_v50 = vld [vmem:[%s2186_s0 + $0x24] sm:$0xf0]  ;;  %v1682_v51 = vld [vmem:[%s2186_s0 + $0x24] sm:$0xf]  ;;  %v1442_v52 = vld [vmem:[%s2186_s0 + $0x28] sm:$0xf0] }
  0x20   :  { %552 = vmatpush.bf16.msra.mxu0 %v1561_v17  ;;  %v1441_v53 = vor.u32 %v1683_v50, %v1440_v49  ;;  %v1445_v54 = vor.u32 %v1682_v51, %v1442_v52  ;;  %v1039_v55 = vld [vmem:[%s2188_s2 + $0x30] sm:$0xff]  ;;  %v1037_v56 = vld [vmem:[%s2188_s2 + $0x20] sm:$0xff]  ;;  %v1040_v57 = vld [vmem:[%s2188_s2 + $0x38] sm:$0xff] }
  0x21   :  { %641 = vmatpush.bf16.msra.mxu1 %v1625_v20  ;;  %1136 = vperm.xlu0 %1746, %v1034_v40   ;;  %v1038_v58 = vld [vmem:[%s2188_s2 + $0x28] sm:$0xff]  ;;  %v1448_v59 = vld [vmem:[%s2186_s0 + $0x30] sm:$0xf]  ;;  %v1685_v60 = vld [vmem:[%s2186_s0 + $0x34] sm:$0xf0] }
  0x22   :  { %730 = vmatpush.bf16.msra.mxu2 %v1565_v21  ;;  %1151 = vperm.xlu2 %1748, %v1037_v56   ;;  %v1684_v61 = vld [vmem:[%s2186_s0 + $0x34] sm:$0xf]  ;;  %v1450_v62 = vld [vmem:[%s2186_s0 + $0x38] sm:$0xf0]  ;;  %v1449_v63 = vor.u32 %v1685_v60, %v1448_v59  ;;  %v1042_v1 = vld [vmem:[%s2188_s2 + $0x48] sm:$0xff] }
  0x23   :  { %819 = vmatpush.bf16.msra.mxu3 %v1629_v25  ;;  %v1453_v0 = vor.u32 %v1684_v61, %v1450_v62  ;;  %v1456_v2 = vld [vmem:[%s2186_s0 + $0x40] sm:$0xf]  ;;  %v1687_v3 = vld [vmem:[%s2186_s0 + $0x44] sm:$0xf0]  ;;  %v1686_v4 = vld [vmem:[%s2186_s0 + $0x44] sm:$0xf] }
  0x24   :  { %553 = vmatpush.bf16.msra.mxu0 %v1553_v31  ;;  %1146 = vperm.xlu1 %1747, %v1036_v42   ;;  %v1458_v5 = vld [vmem:[%s2186_s0 + $0x48] sm:$0xf0]  ;;  %v1457_v6 = vor.u32 %v1687_v3, %v1456_v2  ;;  %v1043_v8 = vld [vmem:[%s2188_s2 + $0x50] sm:$0xff]  ;;  %v1041_v9 = vld [vmem:[%s2188_s2 + $0x40] sm:$0xff] }
  0x25   :  { %642 = vmatpush.bf16.msra.mxu1 %v1617_v34  ;;  %v1461_v7 = vor.u32 %v1686_v4, %v1458_v5  ;;  %v1464_v10 = vld [vmem:[%s2186_s0 + $0x50] sm:$0xf]  ;;  %v1689_v11 = vld [vmem:[%s2186_s0 + $0x54] sm:$0xf0]  ;;  %v1688_v12 = vld [vmem:[%s2186_s0 + $0x54] sm:$0xf] }
  0x26   :  { %731 = vmatpush.bf16.msra.mxu2 %v1557_v35  ;;  %v1466_v13 = vld [vmem:[%s2186_s0 + $0x58] sm:$0xf0]  ;;  %v1465_v14 = vor.u32 %v1689_v11, %v1464_v10  ;;  %v1045_v16 = vld [vmem:[%s2188_s2 + $0x60] sm:$0xff]  ;;  %v1046_v17 = vld [vmem:[%s2188_s2 + $0x68] sm:$0xff] }
  0x27   :  { %820 = vmatpush.bf16.msra.mxu3 %v1621_v38  ;;  %554 = vmatmul.bf16.vlgmr.msra.gmra.mxu0 %v1425_v39  ;;  %v1469_v15 = vor.u32 %v1688_v12, %v1466_v13  ;;  %v1044_v18 = vld [vmem:[%s2188_s2 + $0x58] sm:$0xff]  ;;  %v1472_v19 = vld [vmem:[%s2186_s0 + $0x60] sm:$0xf]  ;;  %v1691_v20 = vld [vmem:[%s2186_s0 + $0x64] sm:$0xf0] }
  0x28   :  { %643 = vmatmul.bf16.vlgmr.msra.gmra.mxu1 %v1429_v41  ;;  %v1690_v21 = vld [vmem:[%s2186_s0 + $0x64] sm:$0xf]  ;;  %v1474_v22 = vld [vmem:[%s2186_s0 + $0x68] sm:$0xf0]  ;;  %v1473_v23 = vor.u32 %v1691_v20, %v1472_v19  ;;  %v1048_v25 = vld [vmem:[%s2188_s2 + $0x78] sm:$0xff] }
  0x29   :  { %732 = vmatmul.bf16.vlgmr.msra.gmra.mxu2 %v1425_v39  ;;  %1161 = vperm.xlu0 %1746, %v1039_v55   ;;  %v1477_v24 = vor.u32 %v1690_v21, %v1474_v22  ;;  %v1480_v26 = vld [vmem:[%s2186_s0 + $0x70] sm:$0xf]  ;;  %v1693_v27 = vld [vmem:[%s2186_s0 + $0x74] sm:$0xf0]  ;;  %v1692_v28 = vld [vmem:[%s2186_s0 + $0x74] sm:$0xf] }
  0x2a   :  { %821 = vmatmul.bf16.vlgmr.msra.gmra.mxu3 %v1429_v41  ;;  %1156 = vperm.xlu2 %1748, %v1038_v58   ;;  %v1482_v29 = vld [vmem:[%s2186_s0 + $0x78] sm:$0xf0]  ;;  %v1481_v30 = vor.u32 %v1693_v27, %v1480_v26  ;;  %v1049_v32 = vld [vmem:[%s2188_s2 + $0x80] sm:$0xff]  ;;  %v1695_v34 = vld [vmem:[%s2186_s0 + $0x84] sm:$0xf0] }
  0x2b   :  { %v1485_v31 = vor.u32 %v1692_v28, %v1482_v29  ;;  %v1488_v33 = vld [vmem:[%s2186_s0 + $0x80] sm:$0xf]  ;;  %v1694_v35 = vld [vmem:[%s2186_s0 + $0x84] sm:$0xf]  ;;  %v1490_v36 = vld [vmem:[%s2186_s0 + $0x88] sm:$0xf0] }
  0x2c   :  { %1166 = vperm.xlu1 %1747, %v1040_v57   ;;  %v1489_v37 = vor.u32 %v1695_v34, %v1488_v33  ;;  %v1047_v38 = vld [vmem:[%s2188_s2 + $0x70] sm:$0xff]  ;;  %v1052_v39 = vld [vmem:[%s2188_s2 + $0x98] sm:$0xff]  ;;  %v1493_v42 = vor.u32 %v1694_v35, %v1490_v36  ;;  %v1504_v22 = vld [vmem:[%s2186_s0 + $0xa0] sm:$0xf] }
  0x2d   :  { %v1051_v40 = vld [vmem:[%s2188_s2 + $0x90] sm:$0xff]  ;;  %v1697_v56 = vld [vmem:[%s2186_s0 + $0x94] sm:$0xf0]  ;;  %v1498_v59 = vld [vmem:[%s2186_s0 + $0x98] sm:$0xf0] }
  0x2e   :  { %v1496_v55 = vld [vmem:[%s2186_s0 + $0x90] sm:$0xf]  ;;  %v1696_v58 = vld [vmem:[%s2186_s0 + $0x94] sm:$0xf]  ;;  %v1506_v26 = vld [vmem:[%s2186_s0 + $0xa8] sm:$0xf0] }
  0x2f   :  { %v1501_v4 = vor.u32 %v1696_v58, %v1498_v59 }
  0x31   :  { %1176 = vperm.xlu0 %1746, %v1042_v1   ;;  %v1057_v1 = vld [vmem:[%s2188_s2 + $0xc0] sm:$0xff] }
  0x32   :  { %1171 = vperm.xlu2 %1748, %v1041_v9  }
  0x34   :  { %1181 = vperm.xlu1 %1747, %v1043_v8  }
  0x37   :  { %559 = vmatmul.bf16.gmra.mxu0 %v1433_v47 }
  0x38   :  { %648 = vmatmul.bf16.gmra.mxu1 %v1437_v48 }
  0x39   :  { %737 = vmatmul.bf16.gmra.mxu2 %v1433_v47  ;;  %1191 = vperm.xlu0 %1746, %v1045_v16   ;;  %v1055_v47 = vld [vmem:[%s2188_s2 + $0xb0] sm:$0xff] }
  0x3a   :  { %826 = vmatmul.bf16.gmra.mxu3 %v1437_v48  ;;  %1186 = vperm.xlu2 %1748, %v1044_v18   ;;  %v1054_v48 = vld [vmem:[%s2188_s2 + $0xa8] sm:$0xff] }
  0x3c   :  { %1196 = vperm.xlu1 %1747, %v1046_v17  }
  0x41   :  { %1206 = vperm.xlu0 %1746, %v1048_v25   ;;  %v1698_v25 = vld [vmem:[%s2186_s0 + $0xa4] sm:$0xf] }
  0x42   :  { %1201 = vperm.xlu2 %1748, %v1047_v38   ;;  %v1509_v35 = vor.u32 %v1698_v25, %v1506_v26 }
  0x44   :  { %1211 = vperm.xlu1 %1747, %v1049_v32   ;;  %v1063_v32 = vld [vmem:[%s2188_s2 + $0xf0] sm:$0xff] }
  0x47   :  { %564 = vmatmul.bf16.gmra.mxu0 %v1441_v53 }
  0x48   :  { %653 = vmatmul.bf16.gmra.mxu1 %v1445_v54 }
  0x49   :  { %742 = vmatmul.bf16.gmra.mxu2 %v1441_v53  ;;  %1221 = vperm.xlu0 %1746, %v1051_v40  }
  0x4a   :  { %831 = vmatmul.bf16.gmra.mxu3 %v1445_v54 }
  0x4c   :  { %1226 = vperm.xlu1 %1747, %v1052_v39  }
  0x51   :  { %1236 = vperm.xlu0 %1746, %v1054_v48  }
  0x54   :  { %1241 = vperm.xlu1 %1747, %v1055_v47  }
  0x57   :  { %569 = vmatmul.bf16.gmra.mxu0 %v1449_v63 }
  0x58   :  { %658 = vmatmul.bf16.gmra.mxu1 %v1453_v0 }
  0x59   :  { %747 = vmatmul.bf16.gmra.mxu2 %v1449_v63  ;;  %v1497_v63 = vor.u32 %v1697_v56, %v1496_v55  ;;  %1251 = vperm.xlu0 %1746, %v1057_v1   ;;  %v1514_v55 = vld [vmem:[%s2186_s0 + $0xb8] sm:$0xf0] }
  0x5a   :  { %836 = vmatmul.bf16.gmra.mxu3 %v1453_v0  ;;  %v1058_v0 = vld [vmem:[%s2188_s2 + $0xc8] sm:$0xff] }
  0x5c   :  { %1256 = vperm.xlu1 %1747, %v1058_v0  }
  0x67   :  { %574 = vmatmul.bf16.gmra.mxu0 %v1457_v6 }
  0x68   :  { %663 = vmatmul.bf16.gmra.mxu1 %v1461_v7 }
  0x69   :  { %752 = vmatmul.bf16.gmra.mxu2 %v1457_v6 }
  0x6a   :  { %841 = vmatmul.bf16.gmra.mxu3 %v1461_v7  ;;  %v1050_v7 = vld [vmem:[%s2188_s2 + $0x88] sm:$0xff] }
  0x6b   :  { %1216 = vperm.xlu2 %1748, %v1050_v7  }
  0x77   :  { %579 = vmatmul.bf16.gmra.mxu0 %v1465_v14 }
  0x78   :  { %668 = vmatmul.bf16.gmra.mxu1 %v1469_v15 }
  0x79   :  { %757 = vmatmul.bf16.gmra.mxu2 %v1465_v14  ;;  %v1061_v14 = vld [vmem:[%s2188_s2 + $0xe0] sm:$0xff] }
  0x7a   :  { %846 = vmatmul.bf16.gmra.mxu3 %v1469_v15  ;;  %v1060_v15 = vld [vmem:[%s2188_s2 + $0xd8] sm:$0xff]  ;;  %1271 = vperm.xlu1 %1747, %v1061_v14  }
  0x7b   :  { %1266 = vperm.xlu0 %1746, %v1060_v15   ;;  %v1520_v15 = vld [vmem:[%s2186_s0 + $0xc0] sm:$0xf] }
  0x83   :  { %1281 = vperm.xlu0 %1746, %v1063_v32  }
  0x87   :  { %584 = vmatmul.bf16.gmra.mxu0 %v1473_v23 }
  0x88   :  { %673 = vmatmul.bf16.gmra.mxu1 %v1477_v24 }
  0x89   :  { %762 = vmatmul.bf16.gmra.mxu2 %v1473_v23  ;;  %v1699_v23 = vld [vmem:[%s2186_s0 + $0xa4] sm:$0xf0] }
  0x8a   :  { %851 = vmatmul.bf16.gmra.mxu3 %v1477_v24 }
  0x8b   :  { %v1132_v45 = vpop.permute.xlu0 %1131 }
  0x8e   :  { %v1142_v12 = vpop.permute.xlu1 %1141 }
  0x93   :  { %v1137_v61 = vpop.permute.xlu0 %1136 }
  0x96   :  { %v1147_v28 = vpop.permute.xlu1 %1146 }
  0x97   :  { %589 = vmatmul.bf16.gmra.mxu0 %v1481_v30 }
  0x98   :  { %678 = vmatmul.bf16.gmra.mxu1 %v1485_v31 }
  0x99   :  { %767 = vmatmul.bf16.gmra.mxu2 %v1481_v30  ;;  %v1505_v30 = vor.u32 %v1699_v23, %v1504_v22 }
  0x9a   :  { %856 = vmatmul.bf16.gmra.mxu3 %v1485_v31  ;;  %v1064_v31 = vld [vmem:[%s2188_s2 + $0xf8] sm:$0xff] }
  0x9b   :  { %1286 = vperm.xlu1 %1747, %v1064_v31  }
  0xa4   :  { %v555_v41 = vpop.f32.mrf.mxu0 }
  0xa5   :  { %v644_v43 = vpop.f32.mrf.mxu1 }
  0xa6   :  { %v645_v44 = vadd.f32 %v644_v43, %v555_v41 }
  0xa7   :  { %594 = vmatmul.bf16.gmra.mxu0 %v1489_v37 }
  0xa8   :  { %683 = vmatmul.bf16.gmra.mxu1 %v1493_v42  ;;  %v1289_v51 = vmul.f32 %v1132_v45, %v645_v44  ;;  %v1053_v44 = vld [vmem:[%s2188_s2 + $0xa0] sm:$0xff] }
  0xa9   :  { %772 = vmatmul.bf16.gmra.mxu2 %v1489_v37  ;;  %1231 = vperm.xlu2 %1748, %v1053_v44  }
  0xaa   :  { %861 = vmatmul.bf16.gmra.mxu3 %v1493_v42  ;;  %v1152_v42 = vpop.permute.xlu2 %1151 }
  0xac   :  { %v733_v46 = vpop.f32.mrf.mxu2  ;;  %v557_v50 = vpop.f32.mrf.mxu0 }
  0xad   :  { %v822_v49 = vpop.f32.mrf.mxu3  ;;  %v646_v53 = vpop.f32.mrf.mxu1 }
  0xae   :  { %v823_v52 = vadd.f32 %v822_v49, %v733_v46  ;;  %v647_v60 = vadd.f32 %v646_v53, %v557_v50 }
  0xb0   :  { %v1290_v54 = vmul.f32 %v1132_v45, %v823_v52  ;;  %v1291_v8 = vmul.f32 %v1137_v61, %v647_v60  ;;  %v1701_v52 = vld [vmem:[%s2186_s0 + $0xb4] sm:$0xf0] }
  0xb1   :  { %v1056_v60 = vld [vmem:[%s2188_s2 + $0xb8] sm:$0xff] }
  0xb2   :  { %v1353_v57 = vpack.c.bf16 %v1290_v54, %v1289_v51  ;;  %v1512_v51 = vld [vmem:[%s2186_s0 + $0xb0] sm:$0xf]  ;;  %v1700_v54 = vld [vmem:[%s2186_s0 + $0xb4] sm:$0xf]  ;;  %1246 = vperm.xlu2 %1748, %v1056_v60  }
  0xb3   :  { %v1513_v59 = vor.u32 %v1701_v52, %v1512_v51 }
  0xb4   :  { %1385 = vst [vmem:[%s2189_s3] sm:$0xff] %v1353_v57  ;;  %v735_v62 = vpop.f32.mrf.mxu2  ;;  %v560_v3 = vpop.f32.mrf.mxu0 }
  0xb5   :  { %v824_v2 = vpop.f32.mrf.mxu3  ;;  %v649_v6 = vpop.f32.mrf.mxu1 }
  0xb6   :  { %v825_v5 = vadd.f32 %v824_v2, %v735_v62  ;;  %v650_v11 = vadd.f32 %v649_v6, %v560_v3  ;;  %v1157_v57 = vpop.permute.xlu2 %1156  ;;  %v1162_v6 = vpop.permute.xlu0 %1161 }
  0xb7   :  { %599 = vmatmul.bf16.gmra.mxu0 %v1497_v63 }
  0xb8   :  { %v1292_v9 = vmul.f32 %v1137_v61, %v825_v5  ;;  %688 = vmatmul.bf16.gmra.mxu1 %v1501_v4  ;;  %v1293_v18 = vmul.f32 %v1142_v12, %v650_v11 }
  0xb9   :  { %777 = vmatmul.bf16.gmra.mxu2 %v1497_v63  ;;  %v1517_v63 = vor.u32 %v1700_v54, %v1514_v55 }
  0xba   :  { %v1354_v10 = vpack.c.bf16 %v1292_v9, %v1291_v8  ;;  %866 = vmatmul.bf16.gmra.mxu3 %v1501_v4  ;;  %v1059_v8 = vld [vmem:[%s2188_s2 + $0xd0] sm:$0xff] }
  0xbb   :  { %1261 = vperm.xlu2 %1748, %v1059_v8   ;;  %v1538_v8 = vld [vmem:[%s2186_s0 + $0xe8] sm:$0xf0] }
  0xbc   :  { %1386 = vst [vmem:[%s2189_s3 + $0x8] sm:$0xff] %v1354_v10  ;;  %v738_v13 = vpop.f32.mrf.mxu2  ;;  %v562_v17 = vpop.f32.mrf.mxu0 }
  0xbd   :  { %v827_v16 = vpop.f32.mrf.mxu3  ;;  %v651_v20 = vpop.f32.mrf.mxu1 }
  0xbe   :  { %v828_v19 = vadd.f32 %v827_v16, %v738_v13  ;;  %v652_v27 = vadd.f32 %v651_v20, %v562_v17  ;;  %v1703_v16 = vld [vmem:[%s2186_s0 + $0xc4] sm:$0xf0] }
  0xbf   :  { %v1521_v23 = vor.u32 %v1703_v16, %v1520_v15 }
  0xc0   :  { %v1294_v21 = vmul.f32 %v1142_v12, %v828_v19  ;;  %v1295_v38 = vmul.f32 %v1147_v28, %v652_v27  ;;  %v1522_v19 = vld [vmem:[%s2186_s0 + $0xc8] sm:$0xf0] }
  0xc2   :  { %v1355_v24 = vpack.c.bf16 %v1294_v21, %v1293_v18  ;;  %v1702_v18 = vld [vmem:[%s2186_s0 + $0xc4] sm:$0xf]  ;;  %v1167_v21 = vpop.permute.xlu1 %1166 }
  0xc3   :  { %v1525_v27 = vor.u32 %v1702_v18, %v1522_v19 }
  0xc4   :  { %1387 = vst [vmem:[%s2189_s3 + $0x10] sm:$0xff] %v1355_v24  ;;  %v740_v29 = vpop.f32.mrf.mxu2  ;;  %v565_v34 = vpop.f32.mrf.mxu0  ;;  %v1062_v24 = vld [vmem:[%s2188_s2 + $0xe8] sm:$0xff] }
  0xc5   :  { %v829_v33 = vpop.f32.mrf.mxu3  ;;  %v654_v37 = vpop.f32.mrf.mxu1  ;;  %1276 = vperm.xlu2 %1748, %v1062_v24  }
  0xc6   :  { %v830_v36 = vadd.f32 %v829_v33, %v740_v29  ;;  %v655_v41 = vadd.f32 %v654_v37, %v565_v34  ;;  %v1172_v34 = vpop.permute.xlu2 %1171 }
  0xc7   :  { %604 = vmatmul.bf16.gmra.mxu0 %v1505_v30 }
  0xc8   :  { %v1296_v39 = vmul.f32 %v1147_v28, %v830_v36  ;;  %693 = vmatmul.bf16.gmra.mxu1 %v1509_v35  ;;  %v1297_v47 = vmul.f32 %v1152_v42, %v655_v41 }
  0xc9   :  { %782 = vmatmul.bf16.gmra.mxu2 %v1505_v30 }
  0xca   :  { %v1356_v40 = vpack.c.bf16 %v1296_v39, %v1295_v38  ;;  %871 = vmatmul.bf16.gmra.mxu3 %v1509_v35  ;;  %v1182_v60 = vpop.permute.xlu1 %1181 }
  0xcc   :  { %1388 = vst [vmem:[%s2189_s3 + $0x18] sm:$0xff] %v1356_v40  ;;  %v743_v43 = vpop.f32.mrf.mxu2  ;;  %v567_v46 = vpop.f32.mrf.mxu0 }
  0xcd   :  { %v832_v45 = vpop.f32.mrf.mxu3  ;;  %v656_v49 = vpop.f32.mrf.mxu1 }
  0xce   :  { %v833_v48 = vadd.f32 %v832_v45, %v743_v43  ;;  %v657_v56 = vadd.f32 %v656_v49, %v567_v46  ;;  %v1705_v43 = vld [vmem:[%s2186_s0 + $0xd4] sm:$0xf0]  ;;  %v1704_v45 = vld [vmem:[%s2186_s0 + $0xd4] sm:$0xf]  ;;  %v1530_v46 = vld [vmem:[%s2186_s0 + $0xd8] sm:$0xf0] }
  0xd0   :  { %v1298_v50 = vmul.f32 %v1152_v42, %v833_v48  ;;  %v1299_v2 = vmul.f32 %v1157_v57, %v657_v56  ;;  %v1528_v42 = vld [vmem:[%s2186_s0 + $0xd0] sm:$0xf]  ;;  %v1177_v48 = vpop.permute.xlu0 %1176 }
  0xd2   :  { %v1357_v53 = vpack.c.bf16 %v1298_v50, %v1297_v47  ;;  %v1529_v50 = vor.u32 %v1705_v43, %v1528_v42 }
  0xd4   :  { %1389 = vst [vmem:[%s2189_s3 + $0x20] sm:$0xff] %v1357_v53  ;;  %v745_v58 = vpop.f32.mrf.mxu2  ;;  %v570_v62 = vpop.f32.mrf.mxu0  ;;  %v1533_v53 = vor.u32 %v1704_v45, %v1530_v46 }
  0xd5   :  { %v834_v61 = vpop.f32.mrf.mxu3  ;;  %v659_v1 = vpop.f32.mrf.mxu1 }
  0xd6   :  { %v835_v0 = vadd.f32 %v834_v61, %v745_v58  ;;  %v660_v5 = vadd.f32 %v659_v1, %v570_v62 }
  0xd7   :  { %609 = vmatmul.bf16.gmra.mxu0 %v1513_v59 }
  0xd8   :  { %v1300_v3 = vmul.f32 %v1157_v57, %v835_v0  ;;  %698 = vmatmul.bf16.gmra.mxu1 %v1517_v63  ;;  %v1301_v12 = vmul.f32 %v1162_v6, %v660_v5  ;;  %v1707_v5 = vld [vmem:[%s2186_s0 + $0xe4] sm:$0xf0] }
  0xd9   :  { %787 = vmatmul.bf16.gmra.mxu2 %v1513_v59 }
  0xda   :  { %v1358_v4 = vpack.c.bf16 %v1300_v3, %v1299_v2  ;;  %876 = vmatmul.bf16.gmra.mxu3 %v1517_v63 }
  0xdc   :  { %1390 = vst [vmem:[%s2189_s3 + $0x28] sm:$0xff] %v1358_v4  ;;  %v748_v7 = vpop.f32.mrf.mxu2  ;;  %v572_v10 = vpop.f32.mrf.mxu0  ;;  %v1536_v4 = vld [vmem:[%s2186_s0 + $0xe0] sm:$0xf] }
  0xdd   :  { %v837_v9 = vpop.f32.mrf.mxu3  ;;  %v661_v13 = vpop.f32.mrf.mxu1 }
  0xde   :  { %v838_v11 = vadd.f32 %v837_v9, %v748_v7  ;;  %v662_v20 = vadd.f32 %v661_v13, %v572_v10  ;;  %v1706_v7 = vld [vmem:[%s2186_s0 + $0xe4] sm:$0xf]  ;;  %v1187_v10 = vpop.permute.xlu2 %1186 }
  0xdf   :  { %v1541_v15 = vor.u32 %v1706_v7, %v1538_v8 }
  0xe0   :  { %v1302_v14 = vmul.f32 %v1162_v6, %v838_v11  ;;  %v1303_v30 = vmul.f32 %v1167_v21, %v662_v20 }
  0xe2   :  { %v1359_v17 = vpack.c.bf16 %v1302_v14, %v1301_v12  ;;  %v1537_v12 = vor.u32 %v1707_v5, %v1536_v4 }
  0xe4   :  { %1391 = vst [vmem:[%s2189_s3 + $0x30] sm:$0xff] %v1359_v17  ;;  %v750_v22 = vpop.f32.mrf.mxu2  ;;  %v575_v26 = vpop.f32.mrf.mxu0 }
  0xe5   :  { %v839_v25 = vpop.f32.mrf.mxu3  ;;  %v664_v29 = vpop.f32.mrf.mxu1 }
  0xe6   :  { %v840_v28 = vadd.f32 %v839_v25, %v750_v22  ;;  %v665_v33 = vadd.f32 %v664_v29, %v575_v26  ;;  %v1192_v22 = vpop.permute.xlu0 %1191 }
  0xe7   :  { %614 = vmatmul.bf16.gmra.mxu0 %v1521_v23 }
  0xe8   :  { %v1304_v31 = vmul.f32 %v1167_v21, %v840_v28  ;;  %703 = vmatmul.bf16.gmra.mxu1 %v1525_v27  ;;  %v1305_v39 = vmul.f32 %v1172_v34, %v665_v33  ;;  %v1708_v33 = vld [vmem:[%s2186_s0 + $0xf4] sm:$0xf] }
  0xe9   :  { %792 = vmatmul.bf16.gmra.mxu2 %v1521_v23 }
  0xea   :  { %v1360_v32 = vpack.c.bf16 %v1304_v31, %v1303_v30  ;;  %881 = vmatmul.bf16.gmra.mxu3 %v1525_v27  ;;  %v1544_v30 = vld [vmem:[%s2186_s0 + $0xf0] sm:$0xf]  ;;  %v1709_v31 = vld [vmem:[%s2186_s0 + $0xf4] sm:$0xf0] }
  0xec   :  { %1392 = vst [vmem:[%s2189_s3 + $0x38] sm:$0xff] %v1360_v32  ;;  %v753_v35 = vpop.f32.mrf.mxu2  ;;  %v577_v37 = vpop.f32.mrf.mxu0 }
  0xed   :  { %v842_v36 = vpop.f32.mrf.mxu3  ;;  %v666_v40 = vpop.f32.mrf.mxu1 }
  0xee   :  { %v843_v38 = vadd.f32 %v842_v36, %v753_v35  ;;  %v667_v47 = vadd.f32 %v666_v40, %v577_v37  ;;  %v1197_v36 = vpop.permute.xlu1 %1196 }
  0xf0   :  { %v1306_v41 = vmul.f32 %v1172_v34, %v843_v38  ;;  %v1307_v56 = vmul.f32 %v1177_v48, %v667_v47  ;;  %v1546_v34 = vld [vmem:[%s2186_s0 + $0xf8] sm:$0xf0]  ;;  %v1545_v38 = vor.u32 %v1709_v31, %v1544_v30 }
  0xf2   :  { %v1361_v44 = vpack.c.bf16 %v1306_v41, %v1305_v39  ;;  %v1549_v41 = vor.u32 %v1708_v33, %v1546_v34 }
  0xf4   :  { %1393 = vst [vmem:[%s2189_s3 + $0x40] sm:$0xff] %v1361_v44  ;;  %v755_v49 = vpop.f32.mrf.mxu2  ;;  %v580_v52 = vpop.f32.mrf.mxu0 }
  0xf5   :  { %v844_v51 = vpop.f32.mrf.mxu3  ;;  %v669_v55 = vpop.f32.mrf.mxu1 }
  0xf6   :  { %v845_v54 = vadd.f32 %v844_v51, %v755_v49  ;;  %v670_v59 = vadd.f32 %v669_v55, %v580_v52  ;;  %v1212_v4 = vpop.permute.xlu1 %1211 }
  0xf7   :  { %619 = vmatmul.bf16.gmra.mxu0 %v1529_v50 }
  0xf8   :  { %v1308_v57 = vmul.f32 %v1177_v48, %v845_v54  ;;  %708 = vmatmul.bf16.gmra.mxu1 %v1533_v53  ;;  %v1309_v1 = vmul.f32 %v1182_v60, %v670_v59  ;;  %v1202_v48 = vpop.permute.xlu2 %1201 }
  0xf9   :  { %797 = vmatmul.bf16.gmra.mxu2 %v1529_v50 }
  0xfa   :  { %v1362_v58 = vpack.c.bf16 %v1308_v57, %v1307_v56  ;;  %886 = vmatmul.bf16.gmra.mxu3 %v1533_v53 }
  0xfc   :  { %1394 = vst [vmem:[%s2189_s3 + $0x48] sm:$0xff] %v1362_v58  ;;  %v758_v61 = vpop.f32.mrf.mxu2  ;;  %v582_v63 = vpop.f32.mrf.mxu0 }
  0xfd   :  { %v847_v62 = vpop.f32.mrf.mxu3  ;;  %v671_v2 = vpop.f32.mrf.mxu1 }
  0xfe   :  { %v848_v0 = vadd.f32 %v847_v62, %v758_v61  ;;  %v672_v9 = vadd.f32 %v671_v2, %v582_v63  ;;  %v1207_v58 = vpop.permute.xlu0 %1206 }
 0x100   :  { %v1310_v3 = vmul.f32 %v1182_v60, %v848_v0  ;;  %v1311_v18 = vmul.f32 %v1187_v10, %v672_v9 }
 0x102   :  { %v1363_v6 = vpack.c.bf16 %v1310_v3, %v1309_v1 }
 0x104   :  { %1395 = vst [vmem:[%s2189_s3 + $0x50] sm:$0xff] %v1363_v6  ;;  %v760_v11 = vpop.f32.mrf.mxu2  ;;  %v585_v14 = vpop.f32.mrf.mxu0 }
 0x105   :  { %v849_v13 = vpop.f32.mrf.mxu3  ;;  %v674_v17 = vpop.f32.mrf.mxu1 }
 0x106   :  { %v850_v16 = vadd.f32 %v849_v13, %v760_v11  ;;  %v675_v21 = vadd.f32 %v674_v17, %v585_v14  ;;  %v1217_v14 = vpop.permute.xlu2 %1216 }
 0x107   :  { %624 = vmatmul.bf16.gmra.mxu0 %v1537_v12 }
 0x108   :  { %v1312_v19 = vmul.f32 %v1187_v10, %v850_v16  ;;  %713 = vmatmul.bf16.gmra.mxu1 %v1541_v15  ;;  %v1313_v27 = vmul.f32 %v1192_v22, %v675_v21 }
 0x109   :  { %802 = vmatmul.bf16.gmra.mxu2 %v1537_v12 }
 0x10a   :  { %v1364_v20 = vpack.c.bf16 %v1312_v19, %v1311_v18  ;;  %891 = vmatmul.bf16.gmra.mxu3 %v1541_v15 }
 0x10c   :  { %1396 = vst [vmem:[%s2189_s3 + $0x58] sm:$0xff] %v1364_v20  ;;  %v763_v23 = vpop.f32.mrf.mxu2  ;;  %v587_v25 = vpop.f32.mrf.mxu0 }
 0x10d   :  { %v852_v24 = vpop.f32.mrf.mxu3  ;;  %v676_v28 = vpop.f32.mrf.mxu1 }
 0x10e   :  { %v853_v26 = vadd.f32 %v852_v24, %v763_v23  ;;  %v677_v35 = vadd.f32 %v676_v28, %v587_v25  ;;  %v1222_v24 = vpop.permute.xlu0 %1221 }
 0x110   :  { %v1314_v29 = vmul.f32 %v1192_v22, %v853_v26  ;;  %v1315_v44 = vmul.f32 %v1197_v36, %v677_v35 }
 0x112   :  { %v1365_v32 = vpack.c.bf16 %v1314_v29, %v1313_v27 }
 0x114   :  { %1397 = vst [vmem:[%s2189_s3 + $0x60] sm:$0xff] %v1365_v32  ;;  %v765_v37 = vpop.f32.mrf.mxu2  ;;  %v590_v40 = vpop.f32.mrf.mxu0 }
 0x115   :  { %v854_v39 = vpop.f32.mrf.mxu3  ;;  %v679_v43 = vpop.f32.mrf.mxu1 }
 0x116   :  { %v855_v42 = vadd.f32 %v854_v39, %v765_v37  ;;  %v680_v47 = vadd.f32 %v679_v43, %v590_v40  ;;  %v1227_v39 = vpop.permute.xlu1 %1226 }
 0x117   :  { %629 = vmatmul.bf16.gmra.mxu0 %v1545_v38 }
 0x118   :  { %v1316_v45 = vmul.f32 %v1197_v36, %v855_v42  ;;  %718 = vmatmul.bf16.gmra.mxu1 %v1549_v41  ;;  %v1317_v53 = vmul.f32 %v1202_v48, %v680_v47 }
 0x119   :  { %807 = vmatmul.bf16.gmra.mxu2 %v1545_v38 }
 0x11a   :  { %v1366_v46 = vpack.c.bf16 %v1316_v45, %v1315_v44  ;;  %896 = vmatmul.bf16.gmra.mxu3 %v1549_v41  ;;  %v1232_v44 = vpop.permute.xlu2 %1231 }
 0x11c   :  { %1398 = vst [vmem:[%s2189_s3 + $0x68] sm:$0xff] %v1366_v46  ;;  %v768_v49 = vpop.f32.mrf.mxu2  ;;  %v592_v51 = vpop.f32.mrf.mxu0 }
 0x11d   :  { %v857_v50 = vpop.f32.mrf.mxu3  ;;  %v681_v54 = vpop.f32.mrf.mxu1 }
 0x11e   :  { %v858_v52 = vadd.f32 %v857_v50, %v768_v49  ;;  %v682_v57 = vadd.f32 %v681_v54, %v592_v51 }
 0x120   :  { %v1318_v55 = vmul.f32 %v1202_v48, %v858_v52  ;;  %v1319_v0 = vmul.f32 %v1207_v58, %v682_v57 }
 0x122   :  { %v1367_v56 = vpack.c.bf16 %v1318_v55, %v1317_v53 }
 0x124   :  { %1399 = vst [vmem:[%s2189_s3 + $0x70] sm:$0xff] %v1367_v56  ;;  %v770_v59 = vpop.f32.mrf.mxu2  ;;  %v595_v61 = vpop.f32.mrf.mxu0 }
 0x125   :  { %v859_v60 = vpop.f32.mrf.mxu3  ;;  %v684_v63 = vpop.f32.mrf.mxu1 }
 0x126   :  { %v860_v62 = vadd.f32 %v859_v60, %v770_v59  ;;  %v685_v3 = vadd.f32 %v684_v63, %v595_v61  ;;  %v1237_v59 = vpop.permute.xlu0 %1236 }
 0x128   :  { %v1320_v1 = vmul.f32 %v1207_v58, %v860_v62  ;;  %v1321_v9 = vmul.f32 %v1212_v4, %v685_v3 }
 0x12a   :  { %v1368_v2 = vpack.c.bf16 %v1320_v1, %v1319_v0 }
 0x12c   :  { %1400 = vst [vmem:[%s2189_s3 + $0x78] sm:$0xff] %v1368_v2  ;;  %v773_v5 = vpop.f32.mrf.mxu2  ;;  %v597_v7 = vpop.f32.mrf.mxu0 }
 0x12d   :  { %v862_v6 = vpop.f32.mrf.mxu3  ;;  %v686_v10 = vpop.f32.mrf.mxu1 }
 0x12e   :  { %v863_v8 = vadd.f32 %v862_v6, %v773_v5  ;;  %v687_v13 = vadd.f32 %v686_v10, %v597_v7  ;;  %v1242_v5 = vpop.permute.xlu1 %1241 }
 0x130   :  { %v1322_v11 = vmul.f32 %v1212_v4, %v863_v8  ;;  %v1323_v20 = vmul.f32 %v1217_v14, %v687_v13 }
 0x132   :  { %v1369_v12 = vpack.c.bf16 %v1322_v11, %v1321_v9 }
 0x134   :  { %1401 = vst [vmem:[%s2189_s3 + $0x80] sm:$0xff] %v1369_v12  ;;  %v775_v15 = vpop.f32.mrf.mxu2  ;;  %v600_v17 = vpop.f32.mrf.mxu0 }
 0x135   :  { %v864_v16 = vpop.f32.mrf.mxu3  ;;  %v689_v19 = vpop.f32.mrf.mxu1 }
 0x136   :  { %v865_v18 = vadd.f32 %v864_v16, %v775_v15  ;;  %v690_v23 = vadd.f32 %v689_v19, %v600_v17  ;;  %v1247_v15 = vpop.permute.xlu2 %1246 }
 0x138   :  { %v1324_v21 = vmul.f32 %v1217_v14, %v865_v18  ;;  %v1325_v28 = vmul.f32 %v1222_v24, %v690_v23 }
 0x13a   :  { %v1370_v22 = vpack.c.bf16 %v1324_v21, %v1323_v20 }
 0x13c   :  { %1402 = vst [vmem:[%s2189_s3 + $0x88] sm:$0xff] %v1370_v22  ;;  %v778_v25 = vpop.f32.mrf.mxu2  ;;  %v602_v27 = vpop.f32.mrf.mxu0 }
 0x13d   :  { %v867_v26 = vpop.f32.mrf.mxu3  ;;  %v691_v30 = vpop.f32.mrf.mxu1 }
 0x13e   :  { %v868_v29 = vadd.f32 %v867_v26, %v778_v25  ;;  %v692_v33 = vadd.f32 %v691_v30, %v602_v27  ;;  %v1252_v25 = vpop.permute.xlu0 %1251 }
 0x140   :  { %v1326_v31 = vmul.f32 %v1222_v24, %v868_v29  ;;  %v1327_v40 = vmul.f32 %v1227_v39, %v692_v33 }
 0x142   :  { %v1371_v32 = vpack.c.bf16 %v1326_v31, %v1325_v28 }
 0x144   :  { %1403 = vst [vmem:[%s2189_s3 + $0x90] sm:$0xff] %v1371_v32  ;;  %v780_v34 = vpop.f32.mrf.mxu2  ;;  %v605_v36 = vpop.f32.mrf.mxu0 }
 0x145   :  { %v869_v35 = vpop.f32.mrf.mxu3  ;;  %v694_v38 = vpop.f32.mrf.mxu1 }
 0x146   :  { %v870_v37 = vadd.f32 %v869_v35, %v780_v34  ;;  %v695_v43 = vadd.f32 %v694_v38, %v605_v36  ;;  %v1257_v35 = vpop.permute.xlu1 %1256 }
 0x148   :  { %v1328_v41 = vmul.f32 %v1227_v39, %v870_v37  ;;  %v1329_v48 = vmul.f32 %v1232_v44, %v695_v43 }
 0x14a   :  { %v1372_v42 = vpack.c.bf16 %v1328_v41, %v1327_v40 }
 0x14c   :  { %1404 = vst [vmem:[%s2189_s3 + $0x98] sm:$0xff] %v1372_v42  ;;  %v783_v45 = vpop.f32.mrf.mxu2  ;;  %v607_v47 = vpop.f32.mrf.mxu0 }
 0x14d   :  { %v872_v46 = vpop.f32.mrf.mxu3  ;;  %v696_v50 = vpop.f32.mrf.mxu1 }
 0x14e   :  { %v873_v49 = vadd.f32 %v872_v46, %v783_v45  ;;  %v697_v53 = vadd.f32 %v696_v50, %v607_v47  ;;  %v1262_v45 = vpop.permute.xlu2 %1261 }
 0x150   :  { %v1330_v51 = vmul.f32 %v1232_v44, %v873_v49  ;;  %v1331_v60 = vmul.f32 %v1237_v59, %v697_v53 }
 0x152   :  { %v1373_v52 = vpack.c.bf16 %v1330_v51, %v1329_v48 }
 0x154   :  { %1405 = vst [vmem:[%s2189_s3 + $0xa0] sm:$0xff] %v1373_v52  ;;  %v785_v54 = vpop.f32.mrf.mxu2  ;;  %v610_v56 = vpop.f32.mrf.mxu0 }
 0x155   :  { %v874_v55 = vpop.f32.mrf.mxu3  ;;  %v699_v58 = vpop.f32.mrf.mxu1 }
 0x156   :  { %v875_v57 = vadd.f32 %v874_v55, %v785_v54  ;;  %v700_v63 = vadd.f32 %v699_v58, %v610_v56  ;;  %v1267_v55 = vpop.permute.xlu0 %1266 }
 0x158   :  { %v1332_v61 = vmul.f32 %v1237_v59, %v875_v57  ;;  %v1333_v6 = vmul.f32 %v1242_v5, %v700_v63 }
 0x15a   :  { %v1374_v62 = vpack.c.bf16 %v1332_v61, %v1331_v60 }
 0x15c   :  { %1406 = vst [vmem:[%s2189_s3 + $0xa8] sm:$0xff] %v1374_v62  ;;  %v788_v0 = vpop.f32.mrf.mxu2  ;;  %v612_v2 = vpop.f32.mrf.mxu0 }
 0x15d   :  { %v877_v1 = vpop.f32.mrf.mxu3  ;;  %v701_v4 = vpop.f32.mrf.mxu1 }
 0x15e   :  { %v878_v3 = vadd.f32 %v877_v1, %v788_v0  ;;  %v702_v9 = vadd.f32 %v701_v4, %v612_v2  ;;  %v1272_v1 = vpop.permute.xlu1 %1271 }
 0x160   :  { %v1334_v7 = vmul.f32 %v1242_v5, %v878_v3  ;;  %v1335_v16 = vmul.f32 %v1247_v15, %v702_v9 }
 0x162   :  { %v1375_v8 = vpack.c.bf16 %v1334_v7, %v1333_v6 }
 0x164   :  { %1407 = vst [vmem:[%s2189_s3 + $0xb0] sm:$0xff] %v1375_v8  ;;  %v790_v10 = vpop.f32.mrf.mxu2  ;;  %v615_v12 = vpop.f32.mrf.mxu0 }
 0x165   :  { %v879_v11 = vpop.f32.mrf.mxu3  ;;  %v704_v14 = vpop.f32.mrf.mxu1 }
 0x166   :  { %v880_v13 = vadd.f32 %v879_v11, %v790_v10  ;;  %v705_v19 = vadd.f32 %v704_v14, %v615_v12  ;;  %v1277_v8 = vpop.permute.xlu2 %1276 }
 0x168   :  { %v1336_v17 = vmul.f32 %v1247_v15, %v880_v13  ;;  %v1337_v26 = vmul.f32 %v1252_v25, %v705_v19  ;;  %v1282_v19 = vpop.permute.xlu0 %1281 }
 0x16a   :  { %v1376_v18 = vpack.c.bf16 %v1336_v17, %v1335_v16 }
 0x16c   :  { %1408 = vst [vmem:[%s2189_s3 + $0xb8] sm:$0xff] %v1376_v18  ;;  %v793_v20 = vpop.f32.mrf.mxu2  ;;  %v617_v22 = vpop.f32.mrf.mxu0 }
 0x16d   :  { %v882_v21 = vpop.f32.mrf.mxu3  ;;  %v706_v24 = vpop.f32.mrf.mxu1 }
 0x16e   :  { %v883_v23 = vadd.f32 %v882_v21, %v793_v20  ;;  %v707_v29 = vadd.f32 %v706_v24, %v617_v22 }
 0x170   :  { %v1338_v27 = vmul.f32 %v1252_v25, %v883_v23  ;;  %v1339_v36 = vmul.f32 %v1257_v35, %v707_v29  ;;  %v1287_v29 = vpop.permute.xlu1 %1286 }
 0x172   :  { %v1377_v28 = vpack.c.bf16 %v1338_v27, %v1337_v26 }
 0x174   :  { %1409 = vst [vmem:[%s2189_s3 + $0xc0] sm:$0xff] %v1377_v28  ;;  %v795_v30 = vpop.f32.mrf.mxu2  ;;  %v620_v32 = vpop.f32.mrf.mxu0 }
 0x175   :  { %v884_v31 = vpop.f32.mrf.mxu3  ;;  %v709_v34 = vpop.f32.mrf.mxu1 }
 0x176   :  { %v885_v33 = vadd.f32 %v884_v31, %v795_v30  ;;  %v710_v39 = vadd.f32 %v709_v34, %v620_v32 }
 0x178   :  { %v1340_v37 = vmul.f32 %v1257_v35, %v885_v33  ;;  %v1341_v46 = vmul.f32 %v1262_v45, %v710_v39 }
 0x17a   :  { %v1378_v38 = vpack.c.bf16 %v1340_v37, %v1339_v36 }
 0x17c   :  { %1410 = vst [vmem:[%s2189_s3 + $0xc8] sm:$0xff] %v1378_v38  ;;  %v798_v40 = vpop.f32.mrf.mxu2  ;;  %v622_v42 = vpop.f32.mrf.mxu0 }
 0x17d   :  { %v887_v41 = vpop.f32.mrf.mxu3  ;;  %v711_v44 = vpop.f32.mrf.mxu1 }
 0x17e   :  { %v888_v43 = vadd.f32 %v887_v41, %v798_v40  ;;  %v712_v49 = vadd.f32 %v711_v44, %v622_v42 }
 0x180   :  { %v1342_v47 = vmul.f32 %v1262_v45, %v888_v43  ;;  %v1343_v56 = vmul.f32 %v1267_v55, %v712_v49 }
 0x182   :  { %v1379_v48 = vpack.c.bf16 %v1342_v47, %v1341_v46 }
 0x184   :  { %1411 = vst [vmem:[%s2189_s3 + $0xd0] sm:$0xff] %v1379_v48  ;;  %v800_v50 = vpop.f32.mrf.mxu2  ;;  %v625_v52 = vpop.f32.mrf.mxu0 }
 0x185   :  { %v889_v51 = vpop.f32.mrf.mxu3  ;;  %v714_v54 = vpop.f32.mrf.mxu1 }
 0x186   :  { %v890_v53 = vadd.f32 %v889_v51, %v800_v50  ;;  %v715_v59 = vadd.f32 %v714_v54, %v625_v52 }
 0x188   :  { %v1344_v57 = vmul.f32 %v1267_v55, %v890_v53  ;;  %v1345_v2 = vmul.f32 %v1272_v1, %v715_v59 }
 0x18a   :  { %v1380_v58 = vpack.c.bf16 %v1344_v57, %v1343_v56 }
 0x18c   :  { %1412 = vst [vmem:[%s2189_s3 + $0xd8] sm:$0xff] %v1380_v58  ;;  %v803_v60 = vpop.f32.mrf.mxu2  ;;  %v627_v62 = vpop.f32.mrf.mxu0 }
 0x18d   :  { %v892_v61 = vpop.f32.mrf.mxu3  ;;  %v716_v0 = vpop.f32.mrf.mxu1 }
 0x18e   :  { %v893_v63 = vadd.f32 %v892_v61, %v803_v60  ;;  %v717_v5 = vadd.f32 %v716_v0, %v627_v62 }
 0x190   :  { %v1346_v3 = vmul.f32 %v1272_v1, %v893_v63  ;;  %v1347_v12 = vmul.f32 %v1277_v8, %v717_v5 }
 0x192   :  { %v1381_v4 = vpack.c.bf16 %v1346_v3, %v1345_v2 }
 0x194   :  { %1413 = vst [vmem:[%s2189_s3 + $0xe0] sm:$0xff] %v1381_v4  ;;  %v805_v6 = vpop.f32.mrf.mxu2  ;;  %v630_v10 = vpop.f32.mrf.mxu0 }
 0x195   :  { %v894_v7 = vpop.f32.mrf.mxu3  ;;  %v719_v11 = vpop.f32.mrf.mxu1 }
 0x196   :  { %v895_v9 = vadd.f32 %v894_v7, %v805_v6  ;;  %v720_v15 = vadd.f32 %v719_v11, %v630_v10 }
 0x198   :  { %v1348_v13 = vmul.f32 %v1277_v8, %v895_v9  ;;  %v1349_v20 = vmul.f32 %v1282_v19, %v720_v15 }
 0x19a   :  { %v1382_v14 = vpack.c.bf16 %v1348_v13, %v1347_v12 }
 0x19c   :  { %1414 = vst [vmem:[%s2189_s3 + $0xe8] sm:$0xff] %v1382_v14  ;;  %v808_v16 = vpop.f32.mrf.mxu2  ;;  %v632_v22 = vpop.f32.mrf.mxu0 }
 0x19d   :  { %v897_v17 = vpop.f32.mrf.mxu3  ;;  %v721_v23 = vpop.f32.mrf.mxu1 }
 0x19e   :  { %v898_v18 = vadd.f32 %v897_v17, %v808_v16  ;;  %v722_v25 = vadd.f32 %v721_v23, %v632_v22 }
 0x1a0   :  { %v1350_v21 = vmul.f32 %v1282_v19, %v898_v18  ;;  %v1351_v30 = vmul.f32 %v1287_v29, %v722_v25 }
 0x1a2   :  { %v1383_v24 = vpack.c.bf16 %v1350_v21, %v1349_v20 }
 0x1a4   :  { %1415 = vst [vmem:[%s2189_s3 + $0xf0] sm:$0xff] %v1383_v24  ;;  %v810_v26 = vpop.f32.mrf.mxu2 }
 0x1a5   :  { %v899_v27 = vpop.f32.mrf.mxu3 }
 0x1a6   :  { %v900_v28 = vadd.f32 %v899_v27, %v810_v26 }
 0x1a8   :  { %v1352_v31 = vmul.f32 %v1287_v29, %v900_v28 }
 0x1aa   :  { %v1384_v32 = vpack.c.bf16 %v1352_v31, %v1351_v30 }
 0x1ac   :  { %1416 = vst [vmem:[%s2189_s3 + $0xf8] sm:$0xff] %v1384_v32 }
 0x1ad   :  { %1421 = vsyncpa [#allocation4], 1 }

// kernel: gcn_forward_padded.5
= control target key start
LH: loop header
LB: loop body
LE: loop exit
PB: predicated region body
PF: predicated region fallthrough
CT: control target
= control target key end

     0   :  { %s2547_s1 = inlined_call_operand.vmem [shape: bf16[256,256], index: 1, kind: input, shape index: {}]   ;;  %s2548_s2 = inlined_call_operand.vmem [shape: f32[256,1], index: 2, kind: input, shape index: {}]   ;;  %s2549_s0 = inlined_call_operand.vmem [shape: bf16[256,256], index: 0, kind: input, shape index: {}]   ;;  %s2550_s3 = inlined_call_operand.vmem [shape: f32[1,256], index: 3, kind: input, shape index: {}]   ;;  %s2551_s4 = inlined_call_operand.vmem [shape: bf16[256,256], index: 4, kind: output, shape index: {}]  }
   0x1   :  { %v1736_v0 = vld [vmem:[%s2547_s1 + $0x70] sm:$0xf]  ;;  %v1821_v1 = vld [vmem:[%s2547_s1 + $0x74] sm:$0xf0]  ;;  %v1820_v5 = vld [vmem:[%s2547_s1 + $0x74] sm:$0xf] }
   0x2   :  { %v1800_v2 = vld [vmem:[%s2547_s1 + $0xf0] sm:$0xf]  ;;  %v1737_v3 = vor.u32 %v1821_v1, %v1736_v0  ;;  %v1837_v4 = vld [vmem:[%s2547_s1 + $0xf4] sm:$0xf0]  ;;  %v1738_v6 = vld [vmem:[%s2547_s1 + $0x78] sm:$0xf0] }
   0x3   :  { %v1801_v7 = vor.u32 %v1837_v4, %v1800_v2  ;;  %v1741_v8 = vor.u32 %v1820_v5, %v1738_v6  ;;  %v1836_v9 = vld [vmem:[%s2547_s1 + $0xf4] sm:$0xf]  ;;  %v1802_v10 = vld [vmem:[%s2547_s1 + $0xf8] sm:$0xf0]  ;;  %v1728_v11 = vld [vmem:[%s2547_s1 + $0x60] sm:$0xf] }
   0x4   :  { %539 = vmatpush.bf16.msra.mxu0 %v1737_v3  ;;  %v1805_v12 = vor.u32 %v1836_v9, %v1802_v10  ;;  %v1819_v13 = vld [vmem:[%s2547_s1 + $0x64] sm:$0xf0]  ;;  %v1792_v14 = vld [vmem:[%s2547_s1 + $0xe0] sm:$0xf]  ;;  %v1818_v18 = vld [vmem:[%s2547_s1 + $0x64] sm:$0xf] }
   0x5   :  { %v1835_v15 = vld [vmem:[%s2547_s1 + $0xe4] sm:$0xf0]  ;;  %628 = vmatpush.bf16.msra.mxu1 %v1801_v7  ;;  %717 = vmatpush.bf16.msra.mxu2 %v1741_v8  ;;  %v1729_v16 = vor.u32 %v1819_v13, %v1728_v11  ;;  %v1730_v19 = vld [vmem:[%s2547_s1 + $0x68] sm:$0xf0]  ;;  %v1834_v20 = vld [vmem:[%s2547_s1 + $0xe4] sm:$0xf] }
   0x6   :  { %v1793_v17 = vor.u32 %v1835_v15, %v1792_v14  ;;  %806 = vmatpush.bf16.msra.mxu3 %v1805_v12  ;;  %v1733_v21 = vor.u32 %v1818_v18, %v1730_v19  ;;  %v1794_v22 = vld [vmem:[%s2547_s1 + $0xe8] sm:$0xf0]  ;;  %v1720_v23 = vld [vmem:[%s2547_s1 + $0x50] sm:$0xf]  ;;  %v1817_v24 = vld [vmem:[%s2547_s1 + $0x54] sm:$0xf0] }
   0x7   :  { %v1797_v25 = vor.u32 %v1834_v20, %v1794_v22  ;;  %v1784_v26 = vld [vmem:[%s2547_s1 + $0xd0] sm:$0xf]  ;;  %v1833_v27 = vld [vmem:[%s2547_s1 + $0xd4] sm:$0xf0]  ;;  %v1816_v28 = vld [vmem:[%s2547_s1 + $0x54] sm:$0xf]  ;;  %v1721_v29 = vor.u32 %v1817_v24, %v1720_v23 }
   0x8   :  { %540 = vmatpush.bf16.msra.mxu0 %v1729_v16  ;;  %v1722_v30 = vld [vmem:[%s2547_s1 + $0x58] sm:$0xf0]  ;;  %v1832_v31 = vld [vmem:[%s2547_s1 + $0xd4] sm:$0xf]  ;;  %v1785_v33 = vor.u32 %v1833_v27, %v1784_v26  ;;  %v1712_v35 = vld [vmem:[%s2547_s1 + $0x40] sm:$0xf] }
   0x9   :  { %v1786_v32 = vld [vmem:[%s2547_s1 + $0xd8] sm:$0xf0]  ;;  %629 = vmatpush.bf16.msra.mxu1 %v1793_v17  ;;  %718 = vmatpush.bf16.msra.mxu2 %v1733_v21  ;;  %v1725_v34 = vor.u32 %v1816_v28, %v1722_v30  ;;  %v1815_v36 = vld [vmem:[%s2547_s1 + $0x44] sm:$0xf0]  ;;  %v1776_v37 = vld [vmem:[%s2547_s1 + $0xc0] sm:$0xf] }
   0xa   :  { %807 = vmatpush.bf16.msra.mxu3 %v1797_v25  ;;  %v1789_v38 = vor.u32 %v1832_v31, %v1786_v32  ;;  %v1831_v39 = vld [vmem:[%s2547_s1 + $0xc4] sm:$0xf0]  ;;  %v1814_v40 = vld [vmem:[%s2547_s1 + $0x44] sm:$0xf]  ;;  %v1714_v41 = vld [vmem:[%s2547_s1 + $0x48] sm:$0xf0]  ;;  %v1713_v44 = vor.u32 %v1815_v36, %v1712_v35 }
   0xb   :  { %v1830_v42 = vld [vmem:[%s2547_s1 + $0xc4] sm:$0xf]  ;;  %v1778_v43 = vld [vmem:[%s2547_s1 + $0xc8] sm:$0xf0]  ;;  %v1777_v45 = vor.u32 %v1831_v39, %v1776_v37  ;;  %v1717_v46 = vor.u32 %v1814_v40, %v1714_v41  ;;  %v1704_v47 = vld [vmem:[%s2547_s1 + $0x30] sm:$0xf] }
   0xc   :  { %541 = vmatpush.bf16.msra.mxu0 %v1721_v29  ;;  %v1813_v48 = vld [vmem:[%s2547_s1 + $0x34] sm:$0xf0]  ;;  %v1768_v49 = vld [vmem:[%s2547_s1 + $0xb0] sm:$0xf]  ;;  %v1781_v50 = vor.u32 %v1830_v42, %v1778_v43  ;;  %v1812_v52 = vld [vmem:[%s2547_s1 + $0x34] sm:$0xf] }
   0xd   :  { %630 = vmatpush.bf16.msra.mxu1 %v1785_v33  ;;  %719 = vmatpush.bf16.msra.mxu2 %v1725_v34  ;;  %v1829_v51 = vld [vmem:[%s2547_s1 + $0xb4] sm:$0xf0]  ;;  %v1706_v53 = vld [vmem:[%s2547_s1 + $0x38] sm:$0xf0]  ;;  %v1828_v54 = vld [vmem:[%s2547_s1 + $0xb4] sm:$0xf]  ;;  %v1705_v56 = vor.u32 %v1813_v48, %v1704_v47 }
   0xe   :  { %808 = vmatpush.bf16.msra.mxu3 %v1789_v38  ;;  %v1770_v55 = vld [vmem:[%s2547_s1 + $0xb8] sm:$0xf0]  ;;  %v1769_v57 = vor.u32 %v1829_v51, %v1768_v49  ;;  %v1709_v58 = vor.u32 %v1812_v52, %v1706_v53  ;;  %v1696_v59 = vld [vmem:[%s2547_s1 + $0x20] sm:$0xf]  ;;  %v1811_v60 = vld [vmem:[%s2547_s1 + $0x24] sm:$0xf0] }
   0xf   :  { %v1760_v61 = vld [vmem:[%s2547_s1 + $0xa0] sm:$0xf]  ;;  %v1773_v62 = vor.u32 %v1828_v54, %v1770_v55  ;;  %v1827_v63 = vld [vmem:[%s2547_s1 + $0xa4] sm:$0xf0]  ;;  %v1810_v0 = vld [vmem:[%s2547_s1 + $0x24] sm:$0xf]  ;;  %v1697_v4 = vor.u32 %v1811_v60, %v1696_v59 }
  0x10   :  { %542 = vmatpush.bf16.msra.mxu0 %v1713_v44  ;;  %v1698_v1 = vld [vmem:[%s2547_s1 + $0x28] sm:$0xf0]  ;;  %v1826_v2 = vld [vmem:[%s2547_s1 + $0xa4] sm:$0xf]  ;;  %v1761_v5 = vor.u32 %v1827_v63, %v1760_v61  ;;  %v1688_v7 = vld [vmem:[%s2547_s1 + $0x10] sm:$0xf] }
  0x11   :  { %631 = vmatpush.bf16.msra.mxu1 %v1777_v45  ;;  %720 = vmatpush.bf16.msra.mxu2 %v1717_v46  ;;  %v1762_v3 = vld [vmem:[%s2547_s1 + $0xa8] sm:$0xf0]  ;;  %v1701_v6 = vor.u32 %v1810_v0, %v1698_v1  ;;  %v1809_v8 = vld [vmem:[%s2547_s1 + $0x14] sm:$0xf0]  ;;  %v1752_v9 = vld [vmem:[%s2547_s1 + $0x90] sm:$0xf] }
  0x12   :  { %809 = vmatpush.bf16.msra.mxu3 %v1781_v50  ;;  %v1765_v10 = vor.u32 %v1826_v2, %v1762_v3  ;;  %v1825_v11 = vld [vmem:[%s2547_s1 + $0x94] sm:$0xf0]  ;;  %v1808_v12 = vld [vmem:[%s2547_s1 + $0x14] sm:$0xf]  ;;  %v1690_v13 = vld [vmem:[%s2547_s1 + $0x18] sm:$0xf0]  ;;  %v1689_v17 = vor.u32 %v1809_v8, %v1688_v7 }
  0x13   :  { %v1824_v14 = vld [vmem:[%s2547_s1 + $0x94] sm:$0xf]  ;;  %v1754_v15 = vld [vmem:[%s2547_s1 + $0x98] sm:$0xf0]  ;;  %v1026_v16 = vld [vmem:[%s2548_s2] sm:$0xff]  ;;  %v1874_v19 = vmov 0   ;;  %v1753_v20 = vor.u32 %v1825_v11, %v1752_v9  ;;  %v1693_v21 = vor.u32 %v1808_v12, %v1690_v13 }
  0x14   :  { %543 = vmatpush.bf16.msra.mxu0 %v1705_v56  ;;  %v1680_v18 = vld [vmem:[%s2547_s1] sm:$0xf]  ;;  %1871 = vset.pattern.permute.xlu0 %v1874_v19  ;;  %v1807_v22 = vld [vmem:[%s2547_s1 + $0x4] sm:$0xf0]  ;;  %v1028_v24 = vld [vmem:[%s2548_s2 + $0x10] sm:$0xff]  ;;  %v1757_v25 = vor.u32 %v1824_v14, %v1754_v15 }
  0x15   :  { %632 = vmatpush.bf16.msra.mxu1 %v1769_v57  ;;  %721 = vmatpush.bf16.msra.mxu2 %v1709_v58  ;;  %v1744_v23 = vld [vmem:[%s2547_s1 + $0x80] sm:$0xf]  ;;  %v1823_v26 = vld [vmem:[%s2547_s1 + $0x84] sm:$0xf0]  ;;  %v1806_v27 = vld [vmem:[%s2547_s1 + $0x4] sm:$0xf]  ;;  %v1681_v31 = vor.u32 %v1807_v22, %v1680_v18 }
  0x16   :  { %810 = vmatpush.bf16.msra.mxu3 %v1773_v62  ;;  %v1682_v28 = vld [vmem:[%s2547_s1 + $0x8] sm:$0xf0]  ;;  %1124 = vperm.xlu0 %1871, %v1026_v16   ;;  %v1822_v29 = vld [vmem:[%s2547_s1 + $0x84] sm:$0xf]  ;;  %v1552_v32 = vld [vmem:[%s2549_s0] sm:$0xf]  ;;  %v1745_v34 = vor.u32 %v1823_v26, %v1744_v23 }
  0x17   :  { %v1746_v30 = vld [vmem:[%s2547_s1 + $0x88] sm:$0xf0]  ;;  %1872 = vset.pattern.permute.xlu1 %v1874_v19  ;;  %1873 = vset.pattern.permute.xlu2 %v1874_v19  ;;  %v1839_v33 = vld [vmem:[%s2549_s0 + $0x4] sm:$0xf0]  ;;  %v1685_v35 = vor.u32 %v1806_v27, %v1682_v28  ;;  %v1838_v36 = vld [vmem:[%s2549_s0 + $0x4] sm:$0xf] }
  0x18   :  { %544 = vmatpush.bf16.msra.mxu0 %v1697_v4  ;;  %1134 = vperm.xlu1 %1872, %v1028_v24   ;;  %v1554_v37 = vld [vmem:[%s2549_s0 + $0x8] sm:$0xf0]  ;;  %v1749_v38 = vor.u32 %v1822_v29, %v1746_v30  ;;  %v1553_v39 = vor.u32 %v1839_v33, %v1552_v32  ;;  %v1029_v42 = vld [vmem:[%s2548_s2 + $0x18] sm:$0xff]  ;;  %v1560_v43 = vld [vmem:[%s2549_s0 + $0x10] sm:$0xf] }
  0x19   :  { %633 = vmatpush.bf16.msra.mxu1 %v1761_v5  ;;  %722 = vmatpush.bf16.msra.mxu2 %v1701_v6  ;;  %v1027_v40 = vld [vmem:[%s2548_s2 + $0x8] sm:$0xff]  ;;  %v1557_v41 = vor.u32 %v1838_v36, %v1554_v37  ;;  %v1841_v44 = vld [vmem:[%s2549_s0 + $0x14] sm:$0xf0]  ;;  %v1840_v45 = vld [vmem:[%s2549_s0 + $0x14] sm:$0xf] }
  0x1a   :  { %811 = vmatpush.bf16.msra.mxu3 %v1765_v10  ;;  %v1562_v46 = vld [vmem:[%s2549_s0 + $0x18] sm:$0xf0]  ;;  %v1561_v47 = vor.u32 %v1841_v44, %v1560_v43  ;;  %v1568_v49 = vld [vmem:[%s2549_s0 + $0x20] sm:$0xf]  ;;  %v1843_v50 = vld [vmem:[%s2549_s0 + $0x24] sm:$0xf0] }
  0x1b   :  { %v1565_v48 = vor.u32 %v1840_v45, %v1562_v46  ;;  %v1842_v51 = vld [vmem:[%s2549_s0 + $0x24] sm:$0xf]  ;;  %v1570_v52 = vld [vmem:[%s2549_s0 + $0x28] sm:$0xf0]  ;;  %v1569_v53 = vor.u32 %v1843_v50, %v1568_v49  ;;  %v1032_v55 = vld [vmem:[%s2548_s2 + $0x30] sm:$0xff] }
  0x1c   :  { %545 = vmatpush.bf16.msra.mxu0 %v1689_v17  ;;  %v1573_v54 = vor.u32 %v1842_v51, %v1570_v52  ;;  %v1030_v56 = vld [vmem:[%s2548_s2 + $0x20] sm:$0xff]  ;;  %v1033_v57 = vld [vmem:[%s2548_s2 + $0x38] sm:$0xff]  ;;  %v1031_v58 = vld [vmem:[%s2548_s2 + $0x28] sm:$0xff] }
  0x1d   :  { %634 = vmatpush.bf16.msra.mxu1 %v1753_v20  ;;  %723 = vmatpush.bf16.msra.mxu2 %v1693_v21  ;;  %v1576_v59 = vld [vmem:[%s2549_s0 + $0x30] sm:$0xf]  ;;  %v1845_v60 = vld [vmem:[%s2549_s0 + $0x34] sm:$0xf0]  ;;  %v1844_v61 = vld [vmem:[%s2549_s0 + $0x34] sm:$0xf] }
  0x1e   :  { %812 = vmatpush.bf16.msra.mxu3 %v1757_v25  ;;  %1129 = vperm.xlu0 %1871, %v1027_v40   ;;  %v1578_v62 = vld [vmem:[%s2549_s0 + $0x38] sm:$0xf0]  ;;  %v1577_v63 = vor.u32 %v1845_v60, %v1576_v59  ;;  %v1035_v1 = vld [vmem:[%s2548_s2 + $0x48] sm:$0xff]  ;;  %v1584_v2 = vld [vmem:[%s2549_s0 + $0x40] sm:$0xf] }
  0x1f   :  { %1144 = vperm.xlu2 %1873, %v1030_v56   ;;  %v1581_v0 = vor.u32 %v1844_v61, %v1578_v62  ;;  %v1847_v3 = vld [vmem:[%s2549_s0 + $0x44] sm:$0xf0]  ;;  %v1846_v4 = vld [vmem:[%s2549_s0 + $0x44] sm:$0xf]  ;;  %v1586_v5 = vld [vmem:[%s2549_s0 + $0x48] sm:$0xf0] }
  0x20   :  { %546 = vmatpush.bf16.msra.mxu0 %v1681_v31  ;;  %1139 = vperm.xlu1 %1872, %v1029_v42   ;;  %v1585_v6 = vor.u32 %v1847_v3, %v1584_v2  ;;  %v1589_v7 = vor.u32 %v1846_v4, %v1586_v5  ;;  %v1036_v8 = vld [vmem:[%s2548_s2 + $0x50] sm:$0xff]  ;;  %v1034_v9 = vld [vmem:[%s2548_s2 + $0x40] sm:$0xff]  ;;  %v1849_v11 = vld [vmem:[%s2549_s0 + $0x54] sm:$0xf0] }
  0x21   :  { %635 = vmatpush.bf16.msra.mxu1 %v1745_v34  ;;  %724 = vmatpush.bf16.msra.mxu2 %v1685_v35  ;;  %v1592_v10 = vld [vmem:[%s2549_s0 + $0x50] sm:$0xf]  ;;  %v1848_v12 = vld [vmem:[%s2549_s0 + $0x54] sm:$0xf]  ;;  %v1594_v13 = vld [vmem:[%s2549_s0 + $0x58] sm:$0xf0] }
  0x22   :  { %813 = vmatpush.bf16.msra.mxu3 %v1749_v38  ;;  %v1593_v14 = vor.u32 %v1849_v11, %v1592_v10  ;;  %v1597_v15 = vor.u32 %v1848_v12, %v1594_v13  ;;  %v1038_v16 = vld [vmem:[%s2548_s2 + $0x60] sm:$0xff]  ;;  %v1039_v17 = vld [vmem:[%s2548_s2 + $0x68] sm:$0xff]  ;;  %v1037_v18 = vld [vmem:[%s2548_s2 + $0x58] sm:$0xff] }
  0x23   :  { %547 = vmatmul.bf16.vlgmr.msra.gmra.mxu0 %v1553_v39  ;;  %v1600_v19 = vld [vmem:[%s2549_s0 + $0x60] sm:$0xf]  ;;  %v1851_v20 = vld [vmem:[%s2549_s0 + $0x64] sm:$0xf0]  ;;  %v1850_v21 = vld [vmem:[%s2549_s0 + $0x64] sm:$0xf] }
  0x24   :  { %636 = vmatmul.bf16.vlgmr.msra.gmra.mxu1 %v1557_v41  ;;  %725 = vmatmul.bf16.vlgmr.msra.gmra.mxu2 %v1553_v39  ;;  %v1602_v22 = vld [vmem:[%s2549_s0 + $0x68] sm:$0xf0]  ;;  %v1601_v23 = vor.u32 %v1851_v20, %v1600_v19  ;;  %v1041_v25 = vld [vmem:[%s2548_s2 + $0x78] sm:$0xff]  ;;  %v1608_v26 = vld [vmem:[%s2549_s0 + $0x70] sm:$0xf] }
  0x25   :  { %814 = vmatmul.bf16.vlgmr.msra.gmra.mxu3 %v1557_v41  ;;  %v1605_v24 = vor.u32 %v1850_v21, %v1602_v22  ;;  %v1853_v27 = vld [vmem:[%s2549_s0 + $0x74] sm:$0xf0]  ;;  %v1852_v28 = vld [vmem:[%s2549_s0 + $0x74] sm:$0xf]  ;;  %v1610_v29 = vld [vmem:[%s2549_s0 + $0x78] sm:$0xf0] }
  0x26   :  { %1154 = vperm.xlu0 %1871, %v1032_v55   ;;  %v1609_v30 = vor.u32 %v1853_v27, %v1608_v26  ;;  %v1613_v31 = vor.u32 %v1852_v28, %v1610_v29  ;;  %v1042_v32 = vld [vmem:[%s2548_s2 + $0x80] sm:$0xff]  ;;  %v1855_v34 = vld [vmem:[%s2549_s0 + $0x84] sm:$0xf0]  ;;  %v1618_v36 = vld [vmem:[%s2549_s0 + $0x88] sm:$0xf0] }
  0x27   :  { %1149 = vperm.xlu2 %1873, %v1031_v58   ;;  %v1616_v33 = vld [vmem:[%s2549_s0 + $0x80] sm:$0xf]  ;;  %v1854_v35 = vld [vmem:[%s2549_s0 + $0x84] sm:$0xf]  ;;  %v1040_v38 = vld [vmem:[%s2548_s2 + $0x70] sm:$0xff] }
  0x28   :  { %1159 = vperm.xlu1 %1872, %v1033_v57   ;;  %v1617_v37 = vor.u32 %v1855_v34, %v1616_v33  ;;  %v1045_v39 = vld [vmem:[%s2548_s2 + $0x98] sm:$0xff]  ;;  %v1044_v40 = vld [vmem:[%s2548_s2 + $0x90] sm:$0xff]  ;;  %v1621_v42 = vor.u32 %v1854_v35, %v1618_v36  ;;  %v1346_v45 = vld [vmem:[%s2550_s3] sm:$0x3] }
  0x29   :  { %v1048_v50 = vld [vmem:[%s2548_s2 + $0xb0] sm:$0xff]  ;;  %v1047_v51 = vld [vmem:[%s2548_s2 + $0xa8] sm:$0xff]  ;;  %v2269_v56 = vperm.slane %v1346_v45, 1  ;;  %v1857_v62 = vld [vmem:[%s2549_s0 + $0x94] sm:$0xf0] }
  0x2a   :  { %v1624_v61 = vld [vmem:[%s2549_s0 + $0x90] sm:$0xf]  ;;  %v1626_v2 = vld [vmem:[%s2549_s0 + $0x98] sm:$0xf0]  ;;  %v1632_v36 = vld [vmem:[%s2549_s0 + $0xa0] sm:$0xf] }
  0x2b   :  { %v1053_v26 = vld [vmem:[%s2548_s2 + $0xd8] sm:$0xff] }
  0x2e   :  { %1169 = vperm.xlu0 %1871, %v1035_v1   ;;  %v1856_v1 = vld [vmem:[%s2549_s0 + $0x94] sm:$0xf] }
  0x2f   :  { %1164 = vperm.xlu2 %1873, %v1034_v9   ;;  %v1629_v11 = vor.u32 %v1856_v1, %v1626_v2  ;;  %v1046_v1 = vld [vmem:[%s2548_s2 + $0xa0] sm:$0xff] }
  0x30   :  { %1174 = vperm.xlu1 %1872, %v1036_v8   ;;  %v1050_v8 = vld [vmem:[%s2548_s2 + $0xc0] sm:$0xff] }
  0x33   :  { %552 = vmatmul.bf16.gmra.mxu0 %v1561_v47 }
  0x34   :  { %641 = vmatmul.bf16.gmra.mxu1 %v1565_v48  ;;  %730 = vmatmul.bf16.gmra.mxu2 %v1561_v47  ;;  %v2260_v47 = vperm.slane %v1346_v45, 0 }
  0x35   :  { %819 = vmatmul.bf16.gmra.mxu3 %v1565_v48 }
  0x36   :  { %1184 = vperm.xlu0 %1871, %v1038_v16  }
  0x37   :  { %1179 = vperm.xlu2 %1873, %v1037_v18  }
  0x38   :  { %1189 = vperm.xlu1 %1872, %v1039_v17  }
  0x3e   :  { %1199 = vperm.xlu0 %1871, %v1041_v25   ;;  %v1054_v25 = vld [vmem:[%s2548_s2 + $0xe0] sm:$0xff] }
  0x3f   :  { %1194 = vperm.xlu2 %1873, %v1040_v38  }
  0x40   :  { %1204 = vperm.xlu1 %1872, %v1042_v32  }
  0x43   :  { %557 = vmatmul.bf16.gmra.mxu0 %v1569_v53 }
  0x44   :  { %646 = vmatmul.bf16.gmra.mxu1 %v1573_v54  ;;  %735 = vmatmul.bf16.gmra.mxu2 %v1569_v53 }
  0x45   :  { %824 = vmatmul.bf16.gmra.mxu3 %v1573_v54 }
  0x46   :  { %1214 = vperm.xlu0 %1871, %v1044_v40   ;;  %v1858_v40 = vld [vmem:[%s2549_s0 + $0xa4] sm:$0xf] }
  0x48   :  { %1219 = vperm.xlu1 %1872, %v1045_v39  }
  0x4e   :  { %1229 = vperm.xlu0 %1871, %v1047_v51  }
  0x50   :  { %1234 = vperm.xlu1 %1872, %v1048_v50  }
  0x53   :  { %562 = vmatmul.bf16.gmra.mxu0 %v1577_v63 }
  0x54   :  { %651 = vmatmul.bf16.gmra.mxu1 %v1581_v0  ;;  %740 = vmatmul.bf16.gmra.mxu2 %v1577_v63 }
  0x55   :  { %829 = vmatmul.bf16.gmra.mxu3 %v1581_v0 }
  0x56   :  { %1244 = vperm.xlu0 %1871, %v1050_v8  }
  0x5e   :  { %1259 = vperm.xlu0 %1871, %v1053_v26  }
  0x63   :  { %567 = vmatmul.bf16.gmra.mxu0 %v1585_v6 }
  0x64   :  { %656 = vmatmul.bf16.gmra.mxu1 %v1589_v7  ;;  %745 = vmatmul.bf16.gmra.mxu2 %v1585_v6  ;;  %v1625_v6 = vor.u32 %v1857_v62, %v1624_v61 }
  0x65   :  { %834 = vmatmul.bf16.gmra.mxu3 %v1589_v7  ;;  %v1051_v7 = vld [vmem:[%s2548_s2 + $0xc8] sm:$0xff] }
  0x66   :  { %1249 = vperm.xlu1 %1872, %v1051_v7  }
  0x6e   :  { %1264 = vperm.xlu1 %1872, %v1054_v25  }
  0x73   :  { %572 = vmatmul.bf16.gmra.mxu0 %v1593_v14 }
  0x74   :  { %661 = vmatmul.bf16.gmra.mxu1 %v1597_v15  ;;  %750 = vmatmul.bf16.gmra.mxu2 %v1593_v14 }
  0x75   :  { %839 = vmatmul.bf16.gmra.mxu3 %v1597_v15  ;;  %v1043_v15 = vld [vmem:[%s2548_s2 + $0x88] sm:$0xff] }
  0x76   :  { %1209 = vperm.xlu2 %1873, %v1043_v15   ;;  %v1860_v15 = vld [vmem:[%s2549_s0 + $0xb4] sm:$0xf] }
  0x7e   :  { %1224 = vperm.xlu2 %1873, %v1046_v1  }
  0x83   :  { %577 = vmatmul.bf16.gmra.mxu0 %v1601_v23 }
  0x84   :  { %666 = vmatmul.bf16.gmra.mxu1 %v1605_v24  ;;  %755 = vmatmul.bf16.gmra.mxu2 %v1601_v23 }
  0x85   :  { %844 = vmatmul.bf16.gmra.mxu3 %v1605_v24 }
  0x88   :  { %v1125_v46 = vpop.permute.xlu0 %1124 }
  0x8a   :  { %v1135_v17 = vpop.permute.xlu1 %1134 }
  0x90   :  { %v1130_v60 = vpop.permute.xlu0 %1129 }
  0x92   :  { %v1140_v35 = vpop.permute.xlu1 %1139 }
  0x93   :  { %582 = vmatmul.bf16.gmra.mxu0 %v1609_v30 }
  0x94   :  { %671 = vmatmul.bf16.gmra.mxu1 %v1613_v31  ;;  %760 = vmatmul.bf16.gmra.mxu2 %v1609_v30 }
  0x95   :  { %849 = vmatmul.bf16.gmra.mxu3 %v1613_v31 }
  0xa0   :  { %v548_v41 = vpop.f32.mrf.mxu0 }
  0xa1   :  { %v637_v43 = vpop.f32.mrf.mxu1 }
  0xa2   :  { %v638_v44 = vadd.f32 %v637_v43, %v548_v41  ;;  %v1634_v41 = vld [vmem:[%s2549_s0 + $0xa8] sm:$0xf0] }
  0xa3   :  { %587 = vmatmul.bf16.gmra.mxu0 %v1617_v37  ;;  %v1637_v51 = vor.u32 %v1858_v40, %v1634_v41 }
  0xa4   :  { %676 = vmatmul.bf16.gmra.mxu1 %v1621_v42  ;;  %765 = vmatmul.bf16.gmra.mxu2 %v1617_v37  ;;  %v1282_v48 = vmul.f32 %v1125_v46, %v638_v44  ;;  %v1859_v37 = vld [vmem:[%s2549_s0 + $0xa4] sm:$0xf0] }
  0xa5   :  { %854 = vmatmul.bf16.gmra.mxu3 %v1621_v42  ;;  %v1633_v45 = vor.u32 %v1859_v37, %v1632_v36  ;;  %v1052_v37 = vld [vmem:[%s2548_s2 + $0xd0] sm:$0xff] }
  0xa6   :  { %v1352_v54 = vadd.f32 %v2260_v47, %v1282_v48  ;;  %v1056_v48 = vld [vmem:[%s2548_s2 + $0xf0] sm:$0xff] }
  0xa7   :  { %v726_v49 = vpop.f32.mrf.mxu2  ;;  %1274 = vperm.xlu0 %1871, %v1056_v48   ;;  %v1648_v48 = vld [vmem:[%s2549_s0 + $0xc0] sm:$0xf] }
  0xa8   :  { %v815_v52 = vpop.f32.mrf.mxu3  ;;  %v550_v53 = vpop.f32.mrf.mxu0  ;;  %v1416_v63 = vmax.f32 %v1352_v54, 0.0 }
  0xa9   :  { %v816_v55 = vadd.f32 %v815_v52, %v726_v49  ;;  %v639_v57 = vpop.f32.mrf.mxu1 }
  0xaa   :  { %v640_v59 = vadd.f32 %v639_v57, %v550_v53  ;;  %v1145_v57 = vpop.permute.xlu2 %1144 }
  0xab   :  { %v1283_v58 = vmul.f32 %v1125_v46, %v816_v55  ;;  %v1057_v46 = vld [vmem:[%s2548_s2 + $0xf8] sm:$0xff] }
  0xac   :  { %v1284_v4 = vmul.f32 %v1130_v60, %v640_v59  ;;  %1279 = vperm.xlu1 %1872, %v1057_v46   ;;  %v1160_v46 = vpop.permute.xlu1 %1159 }
  0xad   :  { %v1353_v0 = vadd.f32 %v2269_v56, %v1283_v58 }
  0xae   :  { %v1354_v18 = vadd.f32 %v2260_v47, %v1284_v4 }
  0xaf   :  { %v1417_v3 = vmax.f32 %v1353_v0, 0.0  ;;  %v728_v5 = vpop.f32.mrf.mxu2 }
  0xb0   :  { %v817_v9 = vpop.f32.mrf.mxu3  ;;  %v553_v10 = vpop.f32.mrf.mxu0  ;;  %v1418_v22 = vmax.f32 %v1354_v18, 0.0 }
  0xb1   :  { %v1480_v12 = vpack.c.bf16 %v1417_v3, %v1416_v63  ;;  %v818_v13 = vadd.f32 %v817_v9, %v728_v5  ;;  %v642_v14 = vpop.f32.mrf.mxu1 }
  0xb2   :  { %v643_v16 = vadd.f32 %v642_v14, %v553_v10  ;;  %v1150_v10 = vpop.permute.xlu2 %1149 }
  0xb3   :  { %1512 = vst [vmem:[%s2551_s4] sm:$0xff] %v1480_v12  ;;  %v1285_v19 = vmul.f32 %v1130_v60, %v818_v13  ;;  %592 = vmatmul.bf16.gmra.mxu0 %v1625_v6  ;;  %v1861_v12 = vld [vmem:[%s2549_s0 + $0xb4] sm:$0xf0] }
  0xb4   :  { %681 = vmatmul.bf16.gmra.mxu1 %v1629_v11  ;;  %770 = vmatmul.bf16.gmra.mxu2 %v1625_v6  ;;  %v1286_v21 = vmul.f32 %v1135_v17, %v643_v16  ;;  %v1642_v16 = vld [vmem:[%s2549_s0 + $0xb8] sm:$0xf0] }
  0xb5   :  { %v1355_v20 = vadd.f32 %v2269_v56, %v1285_v19  ;;  %859 = vmatmul.bf16.gmra.mxu3 %v1629_v11  ;;  %v1640_v11 = vld [vmem:[%s2549_s0 + $0xb0] sm:$0xf] }
  0xb6   :  { %v1356_v30 = vadd.f32 %v2260_v47, %v1286_v21  ;;  %v1049_v21 = vld [vmem:[%s2548_s2 + $0xb8] sm:$0xff] }
  0xb7   :  { %v1419_v23 = vmax.f32 %v1355_v20, 0.0  ;;  %v731_v24 = vpop.f32.mrf.mxu2  ;;  %v1641_v20 = vor.u32 %v1861_v12, %v1640_v11  ;;  %1239 = vperm.xlu2 %1873, %v1049_v21   ;;  %v1865_v21 = vld [vmem:[%s2549_s0 + $0xd4] sm:$0xf0] }
  0xb8   :  { %v820_v27 = vpop.f32.mrf.mxu3  ;;  %v555_v28 = vpop.f32.mrf.mxu0  ;;  %v1420_v38 = vmax.f32 %v1356_v30, 0.0 }
  0xb9   :  { %v1481_v29 = vpack.c.bf16 %v1419_v23, %v1418_v22  ;;  %v821_v31 = vadd.f32 %v820_v27, %v731_v24  ;;  %v644_v32 = vpop.f32.mrf.mxu1  ;;  %v1645_v24 = vor.u32 %v1860_v15, %v1642_v16 }
  0xba   :  { %v645_v34 = vadd.f32 %v644_v32, %v555_v28 }
  0xbb   :  { %1513 = vst [vmem:[%s2551_s4 + $0x8] sm:$0xff] %v1481_v29  ;;  %v1287_v33 = vmul.f32 %v1135_v17, %v821_v31  ;;  %v1155_v29 = vpop.permute.xlu0 %1154 }
  0xbc   :  { %v1288_v43 = vmul.f32 %v1140_v35, %v645_v34 }
  0xbd   :  { %v1357_v39 = vadd.f32 %v2269_v56, %v1287_v33 }
  0xbe   :  { %v1358_v58 = vadd.f32 %v2260_v47, %v1288_v43 }
  0xbf   :  { %v1421_v42 = vmax.f32 %v1357_v39, 0.0  ;;  %v733_v44 = vpop.f32.mrf.mxu2  ;;  %1254 = vperm.xlu2 %1873, %v1052_v37   ;;  %v1175_v37 = vpop.permute.xlu1 %1174 }
  0xc0   :  { %v822_v49 = vpop.f32.mrf.mxu3  ;;  %v558_v50 = vpop.f32.mrf.mxu0  ;;  %v1422_v62 = vmax.f32 %v1358_v58, 0.0 }
  0xc1   :  { %v1482_v52 = vpack.c.bf16 %v1421_v42, %v1420_v38  ;;  %v823_v53 = vadd.f32 %v822_v49, %v733_v44  ;;  %v647_v54 = vpop.f32.mrf.mxu1  ;;  %v1863_v49 = vld [vmem:[%s2549_s0 + $0xc4] sm:$0xf0] }
  0xc2   :  { %v648_v55 = vadd.f32 %v647_v54, %v558_v50  ;;  %v1649_v58 = vor.u32 %v1863_v49, %v1648_v48 }
  0xc3   :  { %1514 = vst [vmem:[%s2551_s4 + $0x10] sm:$0xff] %v1482_v52  ;;  %v1289_v59 = vmul.f32 %v1140_v35, %v823_v53  ;;  %597 = vmatmul.bf16.gmra.mxu0 %v1633_v45  ;;  %v1862_v52 = vld [vmem:[%s2549_s0 + $0xc4] sm:$0xf]  ;;  %v1650_v53 = vld [vmem:[%s2549_s0 + $0xc8] sm:$0xf0] }
  0xc4   :  { %686 = vmatmul.bf16.gmra.mxu1 %v1637_v51  ;;  %775 = vmatmul.bf16.gmra.mxu2 %v1633_v45  ;;  %v1290_v61 = vmul.f32 %v1145_v57, %v648_v55 }
  0xc5   :  { %v1359_v60 = vadd.f32 %v2269_v56, %v1289_v59  ;;  %864 = vmatmul.bf16.gmra.mxu3 %v1637_v51  ;;  %v1055_v59 = vld [vmem:[%s2548_s2 + $0xe8] sm:$0xff] }
  0xc6   :  { %v1360_v5 = vadd.f32 %v2260_v47, %v1290_v61 }
  0xc7   :  { %v1423_v63 = vmax.f32 %v1359_v60, 0.0  ;;  %v736_v0 = vpop.f32.mrf.mxu2  ;;  %1269 = vperm.xlu2 %1873, %v1055_v59  }
  0xc8   :  { %v825_v2 = vpop.f32.mrf.mxu3  ;;  %v560_v3 = vpop.f32.mrf.mxu0  ;;  %v1424_v13 = vmax.f32 %v1360_v5, 0.0 }
  0xc9   :  { %v1483_v4 = vpack.c.bf16 %v1423_v63, %v1422_v62  ;;  %v826_v6 = vadd.f32 %v825_v2, %v736_v0  ;;  %v649_v7 = vpop.f32.mrf.mxu1  ;;  %v1653_v62 = vor.u32 %v1862_v52, %v1650_v53 }
  0xca   :  { %v650_v9 = vadd.f32 %v649_v7, %v560_v3  ;;  %v1165_v3 = vpop.permute.xlu2 %1164 }
  0xcb   :  { %1515 = vst [vmem:[%s2551_s4 + $0x18] sm:$0xff] %v1483_v4  ;;  %v1291_v8 = vmul.f32 %v1145_v57, %v826_v6 }
  0xcc   :  { %v1292_v18 = vmul.f32 %v1150_v10, %v650_v9 }
  0xcd   :  { %v1361_v14 = vadd.f32 %v2269_v56, %v1291_v8 }
  0xce   :  { %v1362_v30 = vadd.f32 %v2260_v47, %v1292_v18 }
  0xcf   :  { %v1425_v17 = vmax.f32 %v1361_v14, 0.0  ;;  %v738_v19 = vpop.f32.mrf.mxu2 }
  0xd0   :  { %v827_v22 = vpop.f32.mrf.mxu3  ;;  %v563_v23 = vpop.f32.mrf.mxu0  ;;  %v1426_v34 = vmax.f32 %v1362_v30, 0.0 }
  0xd1   :  { %v1484_v25 = vpack.c.bf16 %v1425_v17, %v1424_v13  ;;  %v828_v26 = vadd.f32 %v827_v22, %v738_v19  ;;  %v652_v27 = vpop.f32.mrf.mxu1  ;;  %v1170_v19 = vpop.permute.xlu0 %1169 }
  0xd2   :  { %v653_v28 = vadd.f32 %v652_v27, %v563_v23 }
  0xd3   :  { %1516 = vst [vmem:[%s2551_s4 + $0x20] sm:$0xff] %v1484_v25  ;;  %v1293_v31 = vmul.f32 %v1150_v10, %v828_v26  ;;  %602 = vmatmul.bf16.gmra.mxu0 %v1641_v20  ;;  %v1658_v25 = vld [vmem:[%s2549_s0 + $0xd8] sm:$0xf0] }
  0xd4   :  { %691 = vmatmul.bf16.gmra.mxu1 %v1645_v24  ;;  %780 = vmatmul.bf16.gmra.mxu2 %v1641_v20  ;;  %v1294_v33 = vmul.f32 %v1155_v29, %v653_v28  ;;  %v1656_v20 = vld [vmem:[%s2549_s0 + $0xd0] sm:$0xf] }
  0xd5   :  { %v1363_v32 = vadd.f32 %v2269_v56, %v1293_v31  ;;  %869 = vmatmul.bf16.gmra.mxu3 %v1645_v24  ;;  %v1864_v24 = vld [vmem:[%s2549_s0 + $0xd4] sm:$0xf] }
  0xd6   :  { %v1364_v42 = vadd.f32 %v2260_v47, %v1294_v33 }
  0xd7   :  { %v1427_v35 = vmax.f32 %v1363_v32, 0.0  ;;  %v741_v36 = vpop.f32.mrf.mxu2  ;;  %v1661_v32 = vor.u32 %v1864_v24, %v1658_v25  ;;  %v1190_v25 = vpop.permute.xlu1 %1189 }
  0xd8   :  { %v830_v38 = vpop.f32.mrf.mxu3  ;;  %v565_v39 = vpop.f32.mrf.mxu0  ;;  %v1428_v51 = vmax.f32 %v1364_v42, 0.0 }
  0xd9   :  { %v1485_v40 = vpack.c.bf16 %v1427_v35, %v1426_v34  ;;  %v831_v41 = vadd.f32 %v830_v38, %v741_v36  ;;  %v654_v43 = vpop.f32.mrf.mxu1 }
  0xda   :  { %v655_v45 = vadd.f32 %v654_v43, %v565_v39 }
  0xdb   :  { %1517 = vst [vmem:[%s2551_s4 + $0x28] sm:$0xff] %v1485_v40  ;;  %v1295_v44 = vmul.f32 %v1155_v29, %v831_v41  ;;  %v1657_v29 = vor.u32 %v1865_v21, %v1656_v20 }
  0xdc   :  { %v1296_v55 = vmul.f32 %v1160_v46, %v655_v45 }
  0xdd   :  { %v1365_v50 = vadd.f32 %v2269_v56, %v1295_v44 }
  0xde   :  { %v1366_v4 = vadd.f32 %v2260_v47, %v1296_v55  ;;  %v1664_v55 = vld [vmem:[%s2549_s0 + $0xe0] sm:$0xf] }
  0xdf   :  { %v1429_v54 = vmax.f32 %v1365_v50, 0.0  ;;  %v743_v57 = vpop.f32.mrf.mxu2 }
  0xe0   :  { %v832_v60 = vpop.f32.mrf.mxu3  ;;  %v568_v61 = vpop.f32.mrf.mxu0  ;;  %v1430_v8 = vmax.f32 %v1366_v4, 0.0 }
  0xe1   :  { %v1486_v63 = vpack.c.bf16 %v1429_v54, %v1428_v51  ;;  %v833_v0 = vadd.f32 %v832_v60, %v743_v57  ;;  %v657_v1 = vpop.f32.mrf.mxu1  ;;  %v1180_v54 = vpop.permute.xlu2 %1179  ;;  %v1867_v57 = vld [vmem:[%s2549_s0 + $0xe4] sm:$0xf0]  ;;  %v1866_v60 = vld [vmem:[%s2549_s0 + $0xe4] sm:$0xf] }
  0xe2   :  { %v658_v2 = vadd.f32 %v657_v1, %v568_v61  ;;  %v1666_v61 = vld [vmem:[%s2549_s0 + $0xe8] sm:$0xf0]  ;;  %v1665_v1 = vor.u32 %v1867_v57, %v1664_v55 }
  0xe3   :  { %1518 = vst [vmem:[%s2551_s4 + $0x30] sm:$0xff] %v1486_v63  ;;  %v1297_v5 = vmul.f32 %v1160_v46, %v833_v0  ;;  %607 = vmatmul.bf16.gmra.mxu0 %v1649_v58  ;;  %v1669_v4 = vor.u32 %v1866_v60, %v1666_v61 }
  0xe4   :  { %696 = vmatmul.bf16.gmra.mxu1 %v1653_v62  ;;  %785 = vmatmul.bf16.gmra.mxu2 %v1649_v58  ;;  %v1298_v7 = vmul.f32 %v1165_v3, %v658_v2 }
  0xe5   :  { %v1367_v6 = vadd.f32 %v2269_v56, %v1297_v5  ;;  %874 = vmatmul.bf16.gmra.mxu3 %v1653_v62 }
  0xe6   :  { %v1368_v15 = vadd.f32 %v2260_v47, %v1298_v7 }
  0xe7   :  { %v1431_v9 = vmax.f32 %v1367_v6, 0.0  ;;  %v746_v10 = vpop.f32.mrf.mxu2 }
  0xe8   :  { %v835_v11 = vpop.f32.mrf.mxu3  ;;  %v570_v12 = vpop.f32.mrf.mxu0  ;;  %v1432_v23 = vmax.f32 %v1368_v15, 0.0 }
  0xe9   :  { %v1487_v13 = vpack.c.bf16 %v1431_v9, %v1430_v8  ;;  %v836_v14 = vadd.f32 %v835_v11, %v746_v10  ;;  %v659_v16 = vpop.f32.mrf.mxu1  ;;  %v1185_v9 = vpop.permute.xlu0 %1184 }
  0xea   :  { %v660_v18 = vadd.f32 %v659_v16, %v570_v12 }
  0xeb   :  { %1519 = vst [vmem:[%s2551_s4 + $0x38] sm:$0xff] %v1487_v13  ;;  %v1299_v17 = vmul.f32 %v1165_v3, %v836_v14 }
  0xec   :  { %v1300_v27 = vmul.f32 %v1170_v19, %v660_v18 }
  0xed   :  { %v1369_v22 = vadd.f32 %v2269_v56, %v1299_v17 }
  0xee   :  { %v1370_v38 = vadd.f32 %v2260_v47, %v1300_v27  ;;  %v1869_v27 = vld [vmem:[%s2549_s0 + $0xf4] sm:$0xf0] }
  0xef   :  { %v1433_v26 = vmax.f32 %v1369_v22, 0.0  ;;  %v748_v28 = vpop.f32.mrf.mxu2 }
  0xf0   :  { %v837_v30 = vpop.f32.mrf.mxu3  ;;  %v573_v31 = vpop.f32.mrf.mxu0  ;;  %v1434_v42 = vmax.f32 %v1370_v38, 0.0 }
  0xf1   :  { %v1488_v33 = vpack.c.bf16 %v1433_v26, %v1432_v23  ;;  %v838_v34 = vadd.f32 %v837_v30, %v748_v28  ;;  %v662_v35 = vpop.f32.mrf.mxu1  ;;  %v1672_v26 = vld [vmem:[%s2549_s0 + $0xf0] sm:$0xf]  ;;  %v1868_v30 = vld [vmem:[%s2549_s0 + $0xf4] sm:$0xf]  ;;  %v1200_v61 = vpop.permute.xlu0 %1199 }
  0xf2   :  { %v663_v36 = vadd.f32 %v662_v35, %v573_v31  ;;  %v1674_v31 = vld [vmem:[%s2549_s0 + $0xf8] sm:$0xf0]  ;;  %v1673_v35 = vor.u32 %v1869_v27, %v1672_v26 }
  0xf3   :  { %1520 = vst [vmem:[%s2551_s4 + $0x40] sm:$0xff] %v1488_v33  ;;  %v1301_v39 = vmul.f32 %v1170_v19, %v838_v34  ;;  %612 = vmatmul.bf16.gmra.mxu0 %v1657_v29  ;;  %v1677_v38 = vor.u32 %v1868_v30, %v1674_v31 }
  0xf4   :  { %701 = vmatmul.bf16.gmra.mxu1 %v1661_v32  ;;  %790 = vmatmul.bf16.gmra.mxu2 %v1657_v29  ;;  %v1302_v41 = vmul.f32 %v1175_v37, %v663_v36 }
  0xf5   :  { %v1371_v40 = vadd.f32 %v2269_v56, %v1301_v39  ;;  %879 = vmatmul.bf16.gmra.mxu3 %v1661_v32 }
  0xf6   :  { %v1372_v50 = vadd.f32 %v2260_v47, %v1302_v41 }
  0xf7   :  { %v1435_v43 = vmax.f32 %v1371_v40, 0.0  ;;  %v751_v44 = vpop.f32.mrf.mxu2 }
  0xf8   :  { %v840_v45 = vpop.f32.mrf.mxu3  ;;  %v575_v46 = vpop.f32.mrf.mxu0  ;;  %v1436_v59 = vmax.f32 %v1372_v50, 0.0 }
  0xf9   :  { %v1489_v48 = vpack.c.bf16 %v1435_v43, %v1434_v42  ;;  %v841_v49 = vadd.f32 %v840_v45, %v751_v44  ;;  %v664_v51 = vpop.f32.mrf.mxu1  ;;  %v1195_v43 = vpop.permute.xlu2 %1194 }
  0xfa   :  { %v665_v53 = vadd.f32 %v664_v51, %v575_v46 }
  0xfb   :  { %1521 = vst [vmem:[%s2551_s4 + $0x48] sm:$0xff] %v1489_v48  ;;  %v1303_v52 = vmul.f32 %v1175_v37, %v841_v49 }
  0xfc   :  { %v1304_v63 = vmul.f32 %v1180_v54, %v665_v53 }
  0xfd   :  { %v1373_v58 = vadd.f32 %v2269_v56, %v1303_v52 }
  0xfe   :  { %v1374_v10 = vadd.f32 %v2260_v47, %v1304_v63 }
  0xff   :  { %v1437_v62 = vmax.f32 %v1373_v58, 0.0  ;;  %v753_v0 = vpop.f32.mrf.mxu2 }
 0x100   :  { %v842_v2 = vpop.f32.mrf.mxu3  ;;  %v578_v3 = vpop.f32.mrf.mxu0  ;;  %v1438_v14 = vmax.f32 %v1374_v10, 0.0 }
 0x101   :  { %v1490_v5 = vpack.c.bf16 %v1437_v62, %v1436_v59  ;;  %v843_v6 = vadd.f32 %v842_v2, %v753_v0  ;;  %v667_v7 = vpop.f32.mrf.mxu1 }
 0x102   :  { %v668_v8 = vadd.f32 %v667_v7, %v578_v3 }
 0x103   :  { %1522 = vst [vmem:[%s2551_s4 + $0x50] sm:$0xff] %v1490_v5  ;;  %v1305_v11 = vmul.f32 %v1180_v54, %v843_v6  ;;  %617 = vmatmul.bf16.gmra.mxu0 %v1665_v1 }
 0x104   :  { %706 = vmatmul.bf16.gmra.mxu1 %v1669_v4  ;;  %795 = vmatmul.bf16.gmra.mxu2 %v1665_v1  ;;  %v1306_v13 = vmul.f32 %v1185_v9, %v668_v8 }
 0x105   :  { %v1375_v12 = vadd.f32 %v2269_v56, %v1305_v11  ;;  %884 = vmatmul.bf16.gmra.mxu3 %v1669_v4 }
 0x106   :  { %v1376_v21 = vadd.f32 %v2260_v47, %v1306_v13 }
 0x107   :  { %v1439_v15 = vmax.f32 %v1375_v12, 0.0  ;;  %v756_v16 = vpop.f32.mrf.mxu2 }
 0x108   :  { %v845_v17 = vpop.f32.mrf.mxu3  ;;  %v580_v18 = vpop.f32.mrf.mxu0  ;;  %v1440_v29 = vmax.f32 %v1376_v21, 0.0 }
 0x109   :  { %v1491_v19 = vpack.c.bf16 %v1439_v15, %v1438_v14  ;;  %v846_v20 = vadd.f32 %v845_v17, %v756_v16  ;;  %v669_v22 = vpop.f32.mrf.mxu1 }
 0x10a   :  { %v670_v24 = vadd.f32 %v669_v22, %v580_v18 }
 0x10b   :  { %1523 = vst [vmem:[%s2551_s4 + $0x58] sm:$0xff] %v1491_v19  ;;  %v1307_v23 = vmul.f32 %v1185_v9, %v846_v20  ;;  %v1205_v9 = vpop.permute.xlu1 %1204 }
 0x10c   :  { %v1308_v33 = vmul.f32 %v1190_v25, %v670_v24 }
 0x10d   :  { %v1377_v28 = vadd.f32 %v2269_v56, %v1307_v23 }
 0x10e   :  { %v1378_v44 = vadd.f32 %v2260_v47, %v1308_v33 }
 0x10f   :  { %v1441_v32 = vmax.f32 %v1377_v28, 0.0  ;;  %v758_v34 = vpop.f32.mrf.mxu2 }
 0x110   :  { %v847_v36 = vpop.f32.mrf.mxu3  ;;  %v583_v37 = vpop.f32.mrf.mxu0  ;;  %v1442_v49 = vmax.f32 %v1378_v44, 0.0 }
 0x111   :  { %v1492_v39 = vpack.c.bf16 %v1441_v32, %v1440_v29  ;;  %v848_v40 = vadd.f32 %v847_v36, %v758_v34  ;;  %v672_v41 = vpop.f32.mrf.mxu1 }
 0x112   :  { %v673_v42 = vadd.f32 %v672_v41, %v583_v37 }
 0x113   :  { %1524 = vst [vmem:[%s2551_s4 + $0x60] sm:$0xff] %v1492_v39  ;;  %v1309_v45 = vmul.f32 %v1190_v25, %v848_v40  ;;  %622 = vmatmul.bf16.gmra.mxu0 %v1673_v35  ;;  %v1210_v25 = vpop.permute.xlu2 %1209  ;;  %v1215_v39 = vpop.permute.xlu0 %1214 }
 0x114   :  { %711 = vmatmul.bf16.gmra.mxu1 %v1677_v38  ;;  %800 = vmatmul.bf16.gmra.mxu2 %v1673_v35  ;;  %v1310_v48 = vmul.f32 %v1195_v43, %v673_v42 }
 0x115   :  { %v1379_v46 = vadd.f32 %v2269_v56, %v1309_v45  ;;  %889 = vmatmul.bf16.gmra.mxu3 %v1677_v38 }
 0x116   :  { %v1380_v57 = vadd.f32 %v2260_v47, %v1310_v48 }
 0x117   :  { %v1443_v50 = vmax.f32 %v1379_v46, 0.0  ;;  %v761_v51 = vpop.f32.mrf.mxu2 }
 0x118   :  { %v850_v52 = vpop.f32.mrf.mxu3  ;;  %v585_v53 = vpop.f32.mrf.mxu0  ;;  %v1444_v63 = vmax.f32 %v1380_v57, 0.0 }
 0x119   :  { %v1493_v54 = vpack.c.bf16 %v1443_v50, %v1442_v49  ;;  %v851_v55 = vadd.f32 %v850_v52, %v761_v51  ;;  %v674_v58 = vpop.f32.mrf.mxu1  ;;  %v1220_v57 = vpop.permute.xlu1 %1219 }
 0x11a   :  { %v675_v60 = vadd.f32 %v674_v58, %v585_v53 }
 0x11b   :  { %1525 = vst [vmem:[%s2551_s4 + $0x68] sm:$0xff] %v1493_v54  ;;  %v1311_v59 = vmul.f32 %v1195_v43, %v851_v55 }
 0x11c   :  { %v1312_v1 = vmul.f32 %v1200_v61, %v675_v60 }
 0x11d   :  { %v1381_v62 = vadd.f32 %v2269_v56, %v1311_v59 }
 0x11e   :  { %v1382_v10 = vadd.f32 %v2260_v47, %v1312_v1 }
 0x11f   :  { %v1445_v0 = vmax.f32 %v1381_v62, 0.0  ;;  %v763_v2 = vpop.f32.mrf.mxu2 }
 0x120   :  { %v852_v3 = vpop.f32.mrf.mxu3  ;;  %v588_v4 = vpop.f32.mrf.mxu0  ;;  %v1446_v14 = vmax.f32 %v1382_v10, 0.0 }
 0x121   :  { %v1494_v5 = vpack.c.bf16 %v1445_v0, %v1444_v63  ;;  %v853_v6 = vadd.f32 %v852_v3, %v763_v2  ;;  %v677_v7 = vpop.f32.mrf.mxu1 }
 0x122   :  { %v678_v8 = vadd.f32 %v677_v7, %v588_v4 }
 0x123   :  { %1526 = vst [vmem:[%s2551_s4 + $0x70] sm:$0xff] %v1494_v5  ;;  %v1313_v11 = vmul.f32 %v1200_v61, %v853_v6  ;;  %v1225_v5 = vpop.permute.xlu2 %1224 }
 0x124   :  { %v1314_v13 = vmul.f32 %v1205_v9, %v678_v8 }
 0x125   :  { %v1383_v12 = vadd.f32 %v2269_v56, %v1313_v11 }
 0x126   :  { %v1384_v21 = vadd.f32 %v2260_v47, %v1314_v13 }
 0x127   :  { %v1447_v15 = vmax.f32 %v1383_v12, 0.0  ;;  %v766_v16 = vpop.f32.mrf.mxu2 }
 0x128   :  { %v855_v17 = vpop.f32.mrf.mxu3  ;;  %v590_v18 = vpop.f32.mrf.mxu0  ;;  %v1448_v27 = vmax.f32 %v1384_v21, 0.0 }
 0x129   :  { %v1495_v19 = vpack.c.bf16 %v1447_v15, %v1446_v14  ;;  %v856_v20 = vadd.f32 %v855_v17, %v766_v16  ;;  %v679_v22 = vpop.f32.mrf.mxu1  ;;  %v1230_v21 = vpop.permute.xlu0 %1229 }
 0x12a   :  { %v680_v24 = vadd.f32 %v679_v22, %v590_v18 }
 0x12b   :  { %1527 = vst [vmem:[%s2551_s4 + $0x78] sm:$0xff] %v1495_v19  ;;  %v1315_v23 = vmul.f32 %v1205_v9, %v856_v20 }
 0x12c   :  { %v1316_v29 = vmul.f32 %v1210_v25, %v680_v24 }
 0x12d   :  { %v1385_v26 = vadd.f32 %v2269_v56, %v1315_v23 }
 0x12e   :  { %v1386_v37 = vadd.f32 %v2260_v47, %v1316_v29 }
 0x12f   :  { %v1449_v28 = vmax.f32 %v1385_v26, 0.0  ;;  %v768_v30 = vpop.f32.mrf.mxu2 }
 0x130   :  { %v857_v31 = vpop.f32.mrf.mxu3  ;;  %v593_v32 = vpop.f32.mrf.mxu0  ;;  %v1450_v42 = vmax.f32 %v1386_v37, 0.0 }
 0x131   :  { %v1496_v33 = vpack.c.bf16 %v1449_v28, %v1448_v27  ;;  %v858_v34 = vadd.f32 %v857_v31, %v768_v30  ;;  %v682_v35 = vpop.f32.mrf.mxu1 }
 0x132   :  { %v683_v36 = vadd.f32 %v682_v35, %v593_v32 }
 0x133   :  { %1528 = vst [vmem:[%s2551_s4 + $0x80] sm:$0xff] %v1496_v33  ;;  %v1317_v38 = vmul.f32 %v1210_v25, %v858_v34  ;;  %v1235_v34 = vpop.permute.xlu1 %1234 }
 0x134   :  { %v1318_v41 = vmul.f32 %v1215_v39, %v683_v36 }
 0x135   :  { %v1387_v40 = vadd.f32 %v2269_v56, %v1317_v38 }
 0x136   :  { %v1388_v49 = vadd.f32 %v2260_v47, %v1318_v41 }
 0x137   :  { %v1451_v43 = vmax.f32 %v1387_v40, 0.0  ;;  %v771_v44 = vpop.f32.mrf.mxu2 }
 0x138   :  { %v860_v45 = vpop.f32.mrf.mxu3  ;;  %v595_v46 = vpop.f32.mrf.mxu0  ;;  %v1452_v54 = vmax.f32 %v1388_v49, 0.0 }
 0x139   :  { %v1497_v48 = vpack.c.bf16 %v1451_v43, %v1450_v42  ;;  %v861_v50 = vadd.f32 %v860_v45, %v771_v44  ;;  %v684_v51 = vpop.f32.mrf.mxu1  ;;  %v1240_v49 = vpop.permute.xlu2 %1239 }
 0x13a   :  { %v685_v53 = vadd.f32 %v684_v51, %v595_v46 }
 0x13b   :  { %1529 = vst [vmem:[%s2551_s4 + $0x88] sm:$0xff] %v1497_v48  ;;  %v1319_v52 = vmul.f32 %v1215_v39, %v861_v50 }
 0x13c   :  { %v1320_v59 = vmul.f32 %v1220_v57, %v685_v53 }
 0x13d   :  { %v1389_v55 = vadd.f32 %v2269_v56, %v1319_v52 }
 0x13e   :  { %v1390_v3 = vadd.f32 %v2260_v47, %v1320_v59 }
 0x13f   :  { %v1453_v58 = vmax.f32 %v1389_v55, 0.0  ;;  %v773_v60 = vpop.f32.mrf.mxu2 }
 0x140   :  { %v862_v61 = vpop.f32.mrf.mxu3  ;;  %v598_v62 = vpop.f32.mrf.mxu0  ;;  %v1454_v8 = vmax.f32 %v1390_v3, 0.0 }
 0x141   :  { %v1498_v63 = vpack.c.bf16 %v1453_v58, %v1452_v54  ;;  %v863_v0 = vadd.f32 %v862_v61, %v773_v60  ;;  %v687_v1 = vpop.f32.mrf.mxu1 }
 0x142   :  { %v688_v2 = vadd.f32 %v687_v1, %v598_v62 }
 0x143   :  { %1530 = vst [vmem:[%s2551_s4 + $0x90] sm:$0xff] %v1498_v63  ;;  %v1321_v4 = vmul.f32 %v1220_v57, %v863_v0  ;;  %v1245_v0 = vpop.permute.xlu0 %1244 }
 0x144   :  { %v1322_v7 = vmul.f32 %v1225_v5, %v688_v2 }
 0x145   :  { %v1391_v6 = vadd.f32 %v2269_v56, %v1321_v4 }
 0x146   :  { %v1392_v14 = vadd.f32 %v2260_v47, %v1322_v7 }
 0x147   :  { %v1455_v9 = vmax.f32 %v1391_v6, 0.0  ;;  %v776_v10 = vpop.f32.mrf.mxu2 }
 0x148   :  { %v865_v11 = vpop.f32.mrf.mxu3  ;;  %v600_v12 = vpop.f32.mrf.mxu0  ;;  %v1456_v19 = vmax.f32 %v1392_v14, 0.0 }
 0x149   :  { %v1499_v13 = vpack.c.bf16 %v1455_v9, %v1454_v8  ;;  %v866_v15 = vadd.f32 %v865_v11, %v776_v10  ;;  %v689_v16 = vpop.f32.mrf.mxu1  ;;  %v1250_v14 = vpop.permute.xlu1 %1249 }
 0x14a   :  { %v690_v18 = vadd.f32 %v689_v16, %v600_v12 }
 0x14b   :  { %1531 = vst [vmem:[%s2551_s4 + $0x98] sm:$0xff] %v1499_v13  ;;  %v1323_v17 = vmul.f32 %v1225_v5, %v866_v15 }
 0x14c   :  { %v1324_v23 = vmul.f32 %v1230_v21, %v690_v18 }
 0x14d   :  { %v1393_v20 = vadd.f32 %v2269_v56, %v1323_v17 }
 0x14e   :  { %v1394_v30 = vadd.f32 %v2260_v47, %v1324_v23 }
 0x14f   :  { %v1457_v22 = vmax.f32 %v1393_v20, 0.0  ;;  %v778_v24 = vpop.f32.mrf.mxu2 }
 0x150   :  { %v867_v25 = vpop.f32.mrf.mxu3  ;;  %v603_v26 = vpop.f32.mrf.mxu0  ;;  %v1458_v35 = vmax.f32 %v1394_v30, 0.0 }
 0x151   :  { %v1500_v27 = vpack.c.bf16 %v1457_v22, %v1456_v19  ;;  %v868_v28 = vadd.f32 %v867_v25, %v778_v24  ;;  %v692_v29 = vpop.f32.mrf.mxu1 }
 0x152   :  { %v693_v32 = vadd.f32 %v692_v29, %v603_v26 }
 0x153   :  { %1532 = vst [vmem:[%s2551_s4 + $0xa0] sm:$0xff] %v1500_v27  ;;  %v1325_v31 = vmul.f32 %v1230_v21, %v868_v28  ;;  %v1255_v28 = vpop.permute.xlu2 %1254 }
 0x154   :  { %v1326_v37 = vmul.f32 %v1235_v34, %v693_v32 }
 0x155   :  { %v1395_v33 = vadd.f32 %v2269_v56, %v1325_v31 }
 0x156   :  { %v1396_v44 = vadd.f32 %v2260_v47, %v1326_v37 }
 0x157   :  { %v1459_v36 = vmax.f32 %v1395_v33, 0.0  ;;  %v781_v38 = vpop.f32.mrf.mxu2 }
 0x158   :  { %v870_v39 = vpop.f32.mrf.mxu3  ;;  %v605_v40 = vpop.f32.mrf.mxu0  ;;  %v1460_v50 = vmax.f32 %v1396_v44, 0.0 }
 0x159   :  { %v1501_v41 = vpack.c.bf16 %v1459_v36, %v1458_v35  ;;  %v871_v42 = vadd.f32 %v870_v39, %v781_v38  ;;  %v694_v43 = vpop.f32.mrf.mxu1 }
 0x15a   :  { %v695_v46 = vadd.f32 %v694_v43, %v605_v40 }
 0x15b   :  { %1533 = vst [vmem:[%s2551_s4 + $0xa8] sm:$0xff] %v1501_v41  ;;  %v1327_v45 = vmul.f32 %v1235_v34, %v871_v42  ;;  %v1260_v42 = vpop.permute.xlu0 %1259 }
 0x15c   :  { %v1328_v52 = vmul.f32 %v1240_v49, %v695_v46 }
 0x15d   :  { %v1397_v48 = vadd.f32 %v2269_v56, %v1327_v45 }
 0x15e   :  { %v1398_v60 = vadd.f32 %v2260_v47, %v1328_v52 }
 0x15f   :  { %v1461_v51 = vmax.f32 %v1397_v48, 0.0  ;;  %v783_v53 = vpop.f32.mrf.mxu2 }
 0x160   :  { %v872_v54 = vpop.f32.mrf.mxu3  ;;  %v608_v55 = vpop.f32.mrf.mxu0  ;;  %v1462_v1 = vmax.f32 %v1398_v60, 0.0 }
 0x161   :  { %v1502_v57 = vpack.c.bf16 %v1461_v51, %v1460_v50  ;;  %v873_v58 = vadd.f32 %v872_v54, %v783_v53  ;;  %v697_v59 = vpop.f32.mrf.mxu1 }
 0x162   :  { %v698_v62 = vadd.f32 %v697_v59, %v608_v55 }
 0x163   :  { %1534 = vst [vmem:[%s2551_s4 + $0xb0] sm:$0xff] %v1502_v57  ;;  %v1329_v61 = vmul.f32 %v1240_v49, %v873_v58  ;;  %v1265_v58 = vpop.permute.xlu1 %1264 }
 0x164   :  { %v1330_v3 = vmul.f32 %v1245_v0, %v698_v62 }
 0x165   :  { %v1399_v63 = vadd.f32 %v2269_v56, %v1329_v61 }
 0x166   :  { %v1400_v10 = vadd.f32 %v2260_v47, %v1330_v3 }
 0x167   :  { %v1463_v2 = vmax.f32 %v1399_v63, 0.0  ;;  %v786_v4 = vpop.f32.mrf.mxu2 }
 0x168   :  { %v875_v5 = vpop.f32.mrf.mxu3  ;;  %v610_v6 = vpop.f32.mrf.mxu0  ;;  %v1464_v15 = vmax.f32 %v1400_v10, 0.0 }
 0x169   :  { %v1503_v7 = vpack.c.bf16 %v1463_v2, %v1462_v1  ;;  %v876_v8 = vadd.f32 %v875_v5, %v786_v4  ;;  %v699_v9 = vpop.f32.mrf.mxu1 }
 0x16a   :  { %v700_v12 = vadd.f32 %v699_v9, %v610_v6 }
 0x16b   :  { %1535 = vst [vmem:[%s2551_s4 + $0xb8] sm:$0xff] %v1503_v7  ;;  %v1331_v11 = vmul.f32 %v1245_v0, %v876_v8  ;;  %v1270_v8 = vpop.permute.xlu2 %1269 }
 0x16c   :  { %v1332_v17 = vmul.f32 %v1250_v14, %v700_v12 }
 0x16d   :  { %v1401_v13 = vadd.f32 %v2269_v56, %v1331_v11 }
 0x16e   :  { %v1402_v24 = vadd.f32 %v2260_v47, %v1332_v17 }
 0x16f   :  { %v1465_v16 = vmax.f32 %v1401_v13, 0.0  ;;  %v788_v18 = vpop.f32.mrf.mxu2 }
 0x170   :  { %v877_v19 = vpop.f32.mrf.mxu3  ;;  %v613_v20 = vpop.f32.mrf.mxu0  ;;  %v1466_v29 = vmax.f32 %v1402_v24, 0.0 }
 0x171   :  { %v1504_v21 = vpack.c.bf16 %v1465_v16, %v1464_v15  ;;  %v878_v22 = vadd.f32 %v877_v19, %v788_v18  ;;  %v702_v23 = vpop.f32.mrf.mxu1 }
 0x172   :  { %v703_v26 = vadd.f32 %v702_v23, %v613_v20 }
 0x173   :  { %1536 = vst [vmem:[%s2551_s4 + $0xc0] sm:$0xff] %v1504_v21  ;;  %v1333_v25 = vmul.f32 %v1250_v14, %v878_v22  ;;  %v1275_v22 = vpop.permute.xlu0 %1274 }
 0x174   :  { %v1334_v31 = vmul.f32 %v1255_v28, %v703_v26 }
 0x175   :  { %v1403_v27 = vadd.f32 %v2269_v56, %v1333_v25 }
 0x176   :  { %v1404_v38 = vadd.f32 %v2260_v47, %v1334_v31 }
 0x177   :  { %v1467_v30 = vmax.f32 %v1403_v27, 0.0  ;;  %v791_v32 = vpop.f32.mrf.mxu2 }
 0x178   :  { %v880_v33 = vpop.f32.mrf.mxu3  ;;  %v615_v34 = vpop.f32.mrf.mxu0  ;;  %v1468_v43 = vmax.f32 %v1404_v38, 0.0 }
 0x179   :  { %v1505_v35 = vpack.c.bf16 %v1467_v30, %v1466_v29  ;;  %v881_v36 = vadd.f32 %v880_v33, %v791_v32  ;;  %v704_v37 = vpop.f32.mrf.mxu1 }
 0x17a   :  { %v705_v40 = vadd.f32 %v704_v37, %v615_v34 }
 0x17b   :  { %1537 = vst [vmem:[%s2551_s4 + $0xc8] sm:$0xff] %v1505_v35  ;;  %v1335_v39 = vmul.f32 %v1255_v28, %v881_v36  ;;  %v1280_v36 = vpop.permute.xlu1 %1279 }
 0x17c   :  { %v1336_v45 = vmul.f32 %v1260_v42, %v705_v40 }
 0x17d   :  { %v1405_v41 = vadd.f32 %v2269_v56, %v1335_v39 }
 0x17e   :  { %v1406_v53 = vadd.f32 %v2260_v47, %v1336_v45 }
 0x17f   :  { %v1469_v44 = vmax.f32 %v1405_v41, 0.0  ;;  %v793_v46 = vpop.f32.mrf.mxu2 }
 0x180   :  { %v882_v48 = vpop.f32.mrf.mxu3  ;;  %v618_v49 = vpop.f32.mrf.mxu0  ;;  %v1470_v59 = vmax.f32 %v1406_v53, 0.0 }
 0x181   :  { %v1506_v50 = vpack.c.bf16 %v1469_v44, %v1468_v43  ;;  %v883_v51 = vadd.f32 %v882_v48, %v793_v46  ;;  %v707_v52 = vpop.f32.mrf.mxu1 }
 0x182   :  { %v708_v55 = vadd.f32 %v707_v52, %v618_v49 }
 0x183   :  { %1538 = vst [vmem:[%s2551_s4 + $0xd0] sm:$0xff] %v1506_v50  ;;  %v1337_v54 = vmul.f32 %v1260_v42, %v883_v51 }
 0x184   :  { %v1338_v61 = vmul.f32 %v1265_v58, %v708_v55 }
 0x185   :  { %v1407_v57 = vadd.f32 %v2269_v56, %v1337_v54 }
 0x186   :  { %v1408_v4 = vadd.f32 %v2260_v47, %v1338_v61 }
 0x187   :  { %v1471_v60 = vmax.f32 %v1407_v57, 0.0  ;;  %v796_v62 = vpop.f32.mrf.mxu2 }
 0x188   :  { %v885_v63 = vpop.f32.mrf.mxu3  ;;  %v620_v0 = vpop.f32.mrf.mxu0  ;;  %v1472_v9 = vmax.f32 %v1408_v4, 0.0 }
 0x189   :  { %v1507_v1 = vpack.c.bf16 %v1471_v60, %v1470_v59  ;;  %v886_v2 = vadd.f32 %v885_v63, %v796_v62  ;;  %v709_v3 = vpop.f32.mrf.mxu1 }
 0x18a   :  { %v710_v6 = vadd.f32 %v709_v3, %v620_v0 }
 0x18b   :  { %1539 = vst [vmem:[%s2551_s4 + $0xd8] sm:$0xff] %v1507_v1  ;;  %v1339_v5 = vmul.f32 %v1265_v58, %v886_v2 }
 0x18c   :  { %v1340_v11 = vmul.f32 %v1270_v8, %v710_v6 }
 0x18d   :  { %v1409_v7 = vadd.f32 %v2269_v56, %v1339_v5 }
 0x18e   :  { %v1410_v18 = vadd.f32 %v2260_v47, %v1340_v11 }
 0x18f   :  { %v1473_v10 = vmax.f32 %v1409_v7, 0.0  ;;  %v798_v12 = vpop.f32.mrf.mxu2 }
 0x190   :  { %v887_v13 = vpop.f32.mrf.mxu3  ;;  %v623_v14 = vpop.f32.mrf.mxu0  ;;  %v1474_v23 = vmax.f32 %v1410_v18, 0.0 }
 0x191   :  { %v1508_v15 = vpack.c.bf16 %v1473_v10, %v1472_v9  ;;  %v888_v16 = vadd.f32 %v887_v13, %v798_v12  ;;  %v712_v17 = vpop.f32.mrf.mxu1 }
 0x192   :  { %v713_v20 = vadd.f32 %v712_v17, %v623_v14 }
 0x193   :  { %1540 = vst [vmem:[%s2551_s4 + $0xe0] sm:$0xff] %v1508_v15  ;;  %v1341_v19 = vmul.f32 %v1270_v8, %v888_v16 }
 0x194   :  { %v1342_v25 = vmul.f32 %v1275_v22, %v713_v20 }
 0x195   :  { %v1411_v21 = vadd.f32 %v2269_v56, %v1341_v19 }
 0x196   :  { %v1412_v32 = vadd.f32 %v2260_v47, %v1342_v25 }
 0x197   :  { %v1475_v24 = vmax.f32 %v1411_v21, 0.0  ;;  %v801_v26 = vpop.f32.mrf.mxu2 }
 0x198   :  { %v890_v27 = vpop.f32.mrf.mxu3  ;;  %v625_v28 = vpop.f32.mrf.mxu0  ;;  %v1476_v37 = vmax.f32 %v1412_v32, 0.0 }
 0x199   :  { %v1509_v29 = vpack.c.bf16 %v1475_v24, %v1474_v23  ;;  %v891_v30 = vadd.f32 %v890_v27, %v801_v26  ;;  %v714_v31 = vpop.f32.mrf.mxu1 }
 0x19a   :  { %v715_v34 = vadd.f32 %v714_v31, %v625_v28 }
 0x19b   :  { %1541 = vst [vmem:[%s2551_s4 + $0xe8] sm:$0xff] %v1509_v29  ;;  %v1343_v33 = vmul.f32 %v1275_v22, %v891_v30 }
 0x19c   :  { %v1344_v39 = vmul.f32 %v1280_v36, %v715_v34 }
 0x19d   :  { %v1413_v35 = vadd.f32 %v2269_v56, %v1343_v33 }
 0x19e   :  { %v1414_v44 = vadd.f32 %v2260_v47, %v1344_v39 }
 0x19f   :  { %v1477_v38 = vmax.f32 %v1413_v35, 0.0  ;;  %v803_v40 = vpop.f32.mrf.mxu2 }
 0x1a0   :  { %v892_v41 = vpop.f32.mrf.mxu3  ;;  %v1478_v48 = vmax.f32 %v1414_v44, 0.0 }
 0x1a1   :  { %v1510_v42 = vpack.c.bf16 %v1477_v38, %v1476_v37  ;;  %v893_v43 = vadd.f32 %v892_v41, %v803_v40 }
 0x1a3   :  { %1542 = vst [vmem:[%s2551_s4 + $0xf0] sm:$0xff] %v1510_v42  ;;  %v1345_v45 = vmul.f32 %v1280_v36, %v893_v43 }
 0x1a5   :  { %v1415_v46 = vadd.f32 %v2269_v56, %v1345_v45 }
 0x1a7   :  { %v1479_v49 = vmax.f32 %v1415_v46, 0.0 }
 0x1a9   :  { %v1511_v50 = vpack.c.bf16 %v1479_v49, %v1478_v48 }
 0x1ab   :  { %1543 = vst [vmem:[%s2551_s4 + $0xf8] sm:$0xff] %v1511_v50 }

// kernel: gcn_forward_padded.6
= control target key start
LH: loop header
LB: loop body
LE: loop exit
PB: predicated region body
PF: predicated region fallthrough
CT: control target
= control target key end

     0   :  { %s2326_s1 = inlined_call_operand.vmem [shape: bf16[256,256], index: 1, kind: input, shape index: {}]   ;;  %s2327_s2 = inlined_call_operand.vmem [shape: f32[256,1], index: 2, kind: input, shape index: {}]   ;;  %s2328_s0 = inlined_call_operand.vmem [shape: bf16[256,256], index: 0, kind: input, shape index: {}]   ;;  %s2329_s3 = inlined_call_operand.vmem [shape: bf16[256,256], index: 3, kind: output, shape index: {}]  }
   0x1   :  { %v1591_v0 = vld [vmem:[%s2326_s1 + $0x70] sm:$0xf]  ;;  %v1708_v1 = vld [vmem:[%s2326_s1 + $0x74] sm:$0xf0]  ;;  %v1707_v5 = vld [vmem:[%s2326_s1 + $0x74] sm:$0xf] }
   0x2   :  { %v1655_v2 = vld [vmem:[%s2326_s1 + $0xf0] sm:$0xf]  ;;  %v1592_v3 = vor.u32 %v1708_v1, %v1591_v0  ;;  %v1724_v4 = vld [vmem:[%s2326_s1 + $0xf4] sm:$0xf0]  ;;  %v1593_v6 = vld [vmem:[%s2326_s1 + $0x78] sm:$0xf0] }
   0x3   :  { %v1656_v7 = vor.u32 %v1724_v4, %v1655_v2  ;;  %v1596_v8 = vor.u32 %v1707_v5, %v1593_v6  ;;  %v1723_v9 = vld [vmem:[%s2326_s1 + $0xf4] sm:$0xf]  ;;  %v1657_v10 = vld [vmem:[%s2326_s1 + $0xf8] sm:$0xf0]  ;;  %v1583_v11 = vld [vmem:[%s2326_s1 + $0x60] sm:$0xf] }
   0x4   :  { %530 = vmatpush.bf16.msra.mxu0 %v1592_v3  ;;  %v1660_v12 = vor.u32 %v1723_v9, %v1657_v10  ;;  %v1706_v13 = vld [vmem:[%s2326_s1 + $0x64] sm:$0xf0]  ;;  %v1647_v14 = vld [vmem:[%s2326_s1 + $0xe0] sm:$0xf]  ;;  %v1705_v18 = vld [vmem:[%s2326_s1 + $0x64] sm:$0xf] }
   0x5   :  { %v1722_v15 = vld [vmem:[%s2326_s1 + $0xe4] sm:$0xf0]  ;;  %619 = vmatpush.bf16.msra.mxu1 %v1656_v7  ;;  %708 = vmatpush.bf16.msra.mxu2 %v1596_v8  ;;  %v1584_v16 = vor.u32 %v1706_v13, %v1583_v11  ;;  %v1585_v19 = vld [vmem:[%s2326_s1 + $0x68] sm:$0xf0]  ;;  %v1721_v20 = vld [vmem:[%s2326_s1 + $0xe4] sm:$0xf] }
   0x6   :  { %v1648_v17 = vor.u32 %v1722_v15, %v1647_v14  ;;  %797 = vmatpush.bf16.msra.mxu3 %v1660_v12  ;;  %v1588_v21 = vor.u32 %v1705_v18, %v1585_v19  ;;  %v1649_v22 = vld [vmem:[%s2326_s1 + $0xe8] sm:$0xf0]  ;;  %v1575_v23 = vld [vmem:[%s2326_s1 + $0x50] sm:$0xf]  ;;  %v1704_v24 = vld [vmem:[%s2326_s1 + $0x54] sm:$0xf0] }
   0x7   :  { %v1652_v25 = vor.u32 %v1721_v20, %v1649_v22  ;;  %v1639_v26 = vld [vmem:[%s2326_s1 + $0xd0] sm:$0xf]  ;;  %v1720_v27 = vld [vmem:[%s2326_s1 + $0xd4] sm:$0xf0]  ;;  %v1703_v28 = vld [vmem:[%s2326_s1 + $0x54] sm:$0xf]  ;;  %v1576_v29 = vor.u32 %v1704_v24, %v1575_v23 }
   0x8   :  { %531 = vmatpush.bf16.msra.mxu0 %v1584_v16  ;;  %v1577_v30 = vld [vmem:[%s2326_s1 + $0x58] sm:$0xf0]  ;;  %v1719_v31 = vld [vmem:[%s2326_s1 + $0xd4] sm:$0xf]  ;;  %v1640_v33 = vor.u32 %v1720_v27, %v1639_v26  ;;  %v1567_v35 = vld [vmem:[%s2326_s1 + $0x40] sm:$0xf] }
   0x9   :  { %v1641_v32 = vld [vmem:[%s2326_s1 + $0xd8] sm:$0xf0]  ;;  %620 = vmatpush.bf16.msra.mxu1 %v1648_v17  ;;  %709 = vmatpush.bf16.msra.mxu2 %v1588_v21  ;;  %v1580_v34 = vor.u32 %v1703_v28, %v1577_v30  ;;  %v1702_v36 = vld [vmem:[%s2326_s1 + $0x44] sm:$0xf0]  ;;  %v1631_v37 = vld [vmem:[%s2326_s1 + $0xc0] sm:$0xf] }
   0xa   :  { %798 = vmatpush.bf16.msra.mxu3 %v1652_v25  ;;  %v1644_v38 = vor.u32 %v1719_v31, %v1641_v32  ;;  %v1718_v39 = vld [vmem:[%s2326_s1 + $0xc4] sm:$0xf0]  ;;  %v1701_v40 = vld [vmem:[%s2326_s1 + $0x44] sm:$0xf]  ;;  %v1569_v41 = vld [vmem:[%s2326_s1 + $0x48] sm:$0xf0]  ;;  %v1568_v44 = vor.u32 %v1702_v36, %v1567_v35 }
   0xb   :  { %v1717_v42 = vld [vmem:[%s2326_s1 + $0xc4] sm:$0xf]  ;;  %v1633_v43 = vld [vmem:[%s2326_s1 + $0xc8] sm:$0xf0]  ;;  %v1632_v45 = vor.u32 %v1718_v39, %v1631_v37  ;;  %v1572_v46 = vor.u32 %v1701_v40, %v1569_v41  ;;  %v1559_v47 = vld [vmem:[%s2326_s1 + $0x30] sm:$0xf] }
   0xc   :  { %532 = vmatpush.bf16.msra.mxu0 %v1576_v29  ;;  %v1700_v48 = vld [vmem:[%s2326_s1 + $0x34] sm:$0xf0]  ;;  %v1623_v49 = vld [vmem:[%s2326_s1 + $0xb0] sm:$0xf]  ;;  %v1636_v50 = vor.u32 %v1717_v42, %v1633_v43  ;;  %v1699_v52 = vld [vmem:[%s2326_s1 + $0x34] sm:$0xf] }
   0xd   :  { %621 = vmatpush.bf16.msra.mxu1 %v1640_v33  ;;  %710 = vmatpush.bf16.msra.mxu2 %v1580_v34  ;;  %v1716_v51 = vld [vmem:[%s2326_s1 + $0xb4] sm:$0xf0]  ;;  %v1561_v53 = vld [vmem:[%s2326_s1 + $0x38] sm:$0xf0]  ;;  %v1715_v54 = vld [vmem:[%s2326_s1 + $0xb4] sm:$0xf]  ;;  %v1560_v56 = vor.u32 %v1700_v48, %v1559_v47 }
   0xe   :  { %799 = vmatpush.bf16.msra.mxu3 %v1644_v38  ;;  %v1625_v55 = vld [vmem:[%s2326_s1 + $0xb8] sm:$0xf0]  ;;  %v1624_v57 = vor.u32 %v1716_v51, %v1623_v49  ;;  %v1564_v58 = vor.u32 %v1699_v52, %v1561_v53  ;;  %v1551_v59 = vld [vmem:[%s2326_s1 + $0x20] sm:$0xf]  ;;  %v1698_v60 = vld [vmem:[%s2326_s1 + $0x24] sm:$0xf0] }
   0xf   :  { %v1615_v61 = vld [vmem:[%s2326_s1 + $0xa0] sm:$0xf]  ;;  %v1628_v62 = vor.u32 %v1715_v54, %v1625_v55  ;;  %v1714_v63 = vld [vmem:[%s2326_s1 + $0xa4] sm:$0xf0]  ;;  %v1697_v0 = vld [vmem:[%s2326_s1 + $0x24] sm:$0xf]  ;;  %v1552_v4 = vor.u32 %v1698_v60, %v1551_v59 }
  0x10   :  { %533 = vmatpush.bf16.msra.mxu0 %v1568_v44  ;;  %v1553_v1 = vld [vmem:[%s2326_s1 + $0x28] sm:$0xf0]  ;;  %v1713_v2 = vld [vmem:[%s2326_s1 + $0xa4] sm:$0xf]  ;;  %v1616_v5 = vor.u32 %v1714_v63, %v1615_v61  ;;  %v1543_v7 = vld [vmem:[%s2326_s1 + $0x10] sm:$0xf] }
  0x11   :  { %622 = vmatpush.bf16.msra.mxu1 %v1632_v45  ;;  %711 = vmatpush.bf16.msra.mxu2 %v1572_v46  ;;  %v1617_v3 = vld [vmem:[%s2326_s1 + $0xa8] sm:$0xf0]  ;;  %v1556_v6 = vor.u32 %v1697_v0, %v1553_v1  ;;  %v1696_v8 = vld [vmem:[%s2326_s1 + $0x14] sm:$0xf0]  ;;  %v1607_v9 = vld [vmem:[%s2326_s1 + $0x90] sm:$0xf] }
  0x12   :  { %800 = vmatpush.bf16.msra.mxu3 %v1636_v50  ;;  %v1620_v10 = vor.u32 %v1713_v2, %v1617_v3  ;;  %v1712_v11 = vld [vmem:[%s2326_s1 + $0x94] sm:$0xf0]  ;;  %v1695_v12 = vld [vmem:[%s2326_s1 + $0x14] sm:$0xf]  ;;  %v1545_v13 = vld [vmem:[%s2326_s1 + $0x18] sm:$0xf0]  ;;  %v1544_v17 = vor.u32 %v1696_v8, %v1543_v7 }
  0x13   :  { %v1711_v14 = vld [vmem:[%s2326_s1 + $0x94] sm:$0xf]  ;;  %v1609_v15 = vld [vmem:[%s2326_s1 + $0x98] sm:$0xf0]  ;;  %v1017_v16 = vld [vmem:[%s2327_s2] sm:$0xff]  ;;  %v1729_v19 = vmov 0   ;;  %v1608_v20 = vor.u32 %v1712_v11, %v1607_v9  ;;  %v1548_v21 = vor.u32 %v1695_v12, %v1545_v13 }
  0x14   :  { %534 = vmatpush.bf16.msra.mxu0 %v1560_v56  ;;  %v1535_v18 = vld [vmem:[%s2326_s1] sm:$0xf]  ;;  %1726 = vset.pattern.permute.xlu0 %v1729_v19  ;;  %v1694_v22 = vld [vmem:[%s2326_s1 + $0x4] sm:$0xf0]  ;;  %v1019_v24 = vld [vmem:[%s2327_s2 + $0x10] sm:$0xff]  ;;  %v1612_v25 = vor.u32 %v1711_v14, %v1609_v15 }
  0x15   :  { %623 = vmatpush.bf16.msra.mxu1 %v1624_v57  ;;  %712 = vmatpush.bf16.msra.mxu2 %v1564_v58  ;;  %v1599_v23 = vld [vmem:[%s2326_s1 + $0x80] sm:$0xf]  ;;  %v1710_v26 = vld [vmem:[%s2326_s1 + $0x84] sm:$0xf0]  ;;  %v1693_v27 = vld [vmem:[%s2326_s1 + $0x4] sm:$0xf]  ;;  %v1536_v31 = vor.u32 %v1694_v22, %v1535_v18 }
  0x16   :  { %801 = vmatpush.bf16.msra.mxu3 %v1628_v62  ;;  %v1537_v28 = vld [vmem:[%s2326_s1 + $0x8] sm:$0xf0]  ;;  %1115 = vperm.xlu0 %1726, %v1017_v16   ;;  %v1709_v29 = vld [vmem:[%s2326_s1 + $0x84] sm:$0xf]  ;;  %v1407_v32 = vld [vmem:[%s2328_s0] sm:$0xf]  ;;  %v1600_v34 = vor.u32 %v1710_v26, %v1599_v23 }
  0x17   :  { %v1601_v30 = vld [vmem:[%s2326_s1 + $0x88] sm:$0xf0]  ;;  %1727 = vset.pattern.permute.xlu1 %v1729_v19  ;;  %1728 = vset.pattern.permute.xlu2 %v1729_v19  ;;  %v1662_v33 = vld [vmem:[%s2328_s0 + $0x4] sm:$0xf0]  ;;  %v1540_v35 = vor.u32 %v1693_v27, %v1537_v28  ;;  %v1661_v36 = vld [vmem:[%s2328_s0 + $0x4] sm:$0xf] }
  0x18   :  { %535 = vmatpush.bf16.msra.mxu0 %v1552_v4  ;;  %1125 = vperm.xlu1 %1727, %v1019_v24   ;;  %v1409_v37 = vld [vmem:[%s2328_s0 + $0x8] sm:$0xf0]  ;;  %v1604_v38 = vor.u32 %v1709_v29, %v1601_v30  ;;  %v1408_v39 = vor.u32 %v1662_v33, %v1407_v32  ;;  %v1020_v42 = vld [vmem:[%s2327_s2 + $0x18] sm:$0xff]  ;;  %v1415_v43 = vld [vmem:[%s2328_s0 + $0x10] sm:$0xf] }
  0x19   :  { %624 = vmatpush.bf16.msra.mxu1 %v1616_v5  ;;  %713 = vmatpush.bf16.msra.mxu2 %v1556_v6  ;;  %v1018_v40 = vld [vmem:[%s2327_s2 + $0x8] sm:$0xff]  ;;  %v1412_v41 = vor.u32 %v1661_v36, %v1409_v37  ;;  %v1664_v44 = vld [vmem:[%s2328_s0 + $0x14] sm:$0xf0]  ;;  %v1663_v45 = vld [vmem:[%s2328_s0 + $0x14] sm:$0xf] }
  0x1a   :  { %802 = vmatpush.bf16.msra.mxu3 %v1620_v10  ;;  %v1417_v46 = vld [vmem:[%s2328_s0 + $0x18] sm:$0xf0]  ;;  %v1416_v47 = vor.u32 %v1664_v44, %v1415_v43  ;;  %v1423_v49 = vld [vmem:[%s2328_s0 + $0x20] sm:$0xf]  ;;  %v1666_v50 = vld [vmem:[%s2328_s0 + $0x24] sm:$0xf0] }
  0x1b   :  { %v1420_v48 = vor.u32 %v1663_v45, %v1417_v46  ;;  %v1665_v51 = vld [vmem:[%s2328_s0 + $0x24] sm:$0xf]  ;;  %v1425_v52 = vld [vmem:[%s2328_s0 + $0x28] sm:$0xf0]  ;;  %v1424_v53 = vor.u32 %v1666_v50, %v1423_v49  ;;  %v1023_v55 = vld [vmem:[%s2327_s2 + $0x30] sm:$0xff] }
  0x1c   :  { %536 = vmatpush.bf16.msra.mxu0 %v1544_v17  ;;  %v1428_v54 = vor.u32 %v1665_v51, %v1425_v52  ;;  %v1021_v56 = vld [vmem:[%s2327_s2 + $0x20] sm:$0xff]  ;;  %v1024_v57 = vld [vmem:[%s2327_s2 + $0x38] sm:$0xff]  ;;  %v1022_v58 = vld [vmem:[%s2327_s2 + $0x28] sm:$0xff] }
  0x1d   :  { %625 = vmatpush.bf16.msra.mxu1 %v1608_v20  ;;  %714 = vmatpush.bf16.msra.mxu2 %v1548_v21  ;;  %v1431_v59 = vld [vmem:[%s2328_s0 + $0x30] sm:$0xf]  ;;  %v1668_v60 = vld [vmem:[%s2328_s0 + $0x34] sm:$0xf0]  ;;  %v1667_v61 = vld [vmem:[%s2328_s0 + $0x34] sm:$0xf] }
  0x1e   :  { %803 = vmatpush.bf16.msra.mxu3 %v1612_v25  ;;  %1120 = vperm.xlu0 %1726, %v1018_v40   ;;  %v1433_v62 = vld [vmem:[%s2328_s0 + $0x38] sm:$0xf0]  ;;  %v1432_v63 = vor.u32 %v1668_v60, %v1431_v59  ;;  %v1026_v1 = vld [vmem:[%s2327_s2 + $0x48] sm:$0xff]  ;;  %v1439_v2 = vld [vmem:[%s2328_s0 + $0x40] sm:$0xf] }
  0x1f   :  { %1135 = vperm.xlu2 %1728, %v1021_v56   ;;  %v1436_v0 = vor.u32 %v1667_v61, %v1433_v62  ;;  %v1670_v3 = vld [vmem:[%s2328_s0 + $0x44] sm:$0xf0]  ;;  %v1669_v4 = vld [vmem:[%s2328_s0 + $0x44] sm:$0xf]  ;;  %v1441_v5 = vld [vmem:[%s2328_s0 + $0x48] sm:$0xf0] }
  0x20   :  { %537 = vmatpush.bf16.msra.mxu0 %v1536_v31  ;;  %1130 = vperm.xlu1 %1727, %v1020_v42   ;;  %v1440_v6 = vor.u32 %v1670_v3, %v1439_v2  ;;  %v1444_v7 = vor.u32 %v1669_v4, %v1441_v5  ;;  %v1027_v8 = vld [vmem:[%s2327_s2 + $0x50] sm:$0xff]  ;;  %v1025_v9 = vld [vmem:[%s2327_s2 + $0x40] sm:$0xff]  ;;  %v1672_v11 = vld [vmem:[%s2328_s0 + $0x54] sm:$0xf0] }
  0x21   :  { %626 = vmatpush.bf16.msra.mxu1 %v1600_v34  ;;  %715 = vmatpush.bf16.msra.mxu2 %v1540_v35  ;;  %v1447_v10 = vld [vmem:[%s2328_s0 + $0x50] sm:$0xf]  ;;  %v1671_v12 = vld [vmem:[%s2328_s0 + $0x54] sm:$0xf]  ;;  %v1449_v13 = vld [vmem:[%s2328_s0 + $0x58] sm:$0xf0] }
  0x22   :  { %804 = vmatpush.bf16.msra.mxu3 %v1604_v38  ;;  %v1448_v14 = vor.u32 %v1672_v11, %v1447_v10  ;;  %v1452_v15 = vor.u32 %v1671_v12, %v1449_v13  ;;  %v1029_v16 = vld [vmem:[%s2327_s2 + $0x60] sm:$0xff]  ;;  %v1030_v17 = vld [vmem:[%s2327_s2 + $0x68] sm:$0xff]  ;;  %v1028_v18 = vld [vmem:[%s2327_s2 + $0x58] sm:$0xff] }
  0x23   :  { %538 = vmatmul.bf16.vlgmr.msra.gmra.mxu0 %v1408_v39  ;;  %v1455_v19 = vld [vmem:[%s2328_s0 + $0x60] sm:$0xf]  ;;  %v1674_v20 = vld [vmem:[%s2328_s0 + $0x64] sm:$0xf0]  ;;  %v1673_v21 = vld [vmem:[%s2328_s0 + $0x64] sm:$0xf] }
  0x24   :  { %627 = vmatmul.bf16.vlgmr.msra.gmra.mxu1 %v1412_v41  ;;  %716 = vmatmul.bf16.vlgmr.msra.gmra.mxu2 %v1408_v39  ;;  %v1457_v22 = vld [vmem:[%s2328_s0 + $0x68] sm:$0xf0]  ;;  %v1456_v23 = vor.u32 %v1674_v20, %v1455_v19  ;;  %v1032_v25 = vld [vmem:[%s2327_s2 + $0x78] sm:$0xff]  ;;  %v1463_v26 = vld [vmem:[%s2328_s0 + $0x70] sm:$0xf] }
  0x25   :  { %805 = vmatmul.bf16.vlgmr.msra.gmra.mxu3 %v1412_v41  ;;  %v1460_v24 = vor.u32 %v1673_v21, %v1457_v22  ;;  %v1676_v27 = vld [vmem:[%s2328_s0 + $0x74] sm:$0xf0]  ;;  %v1675_v28 = vld [vmem:[%s2328_s0 + $0x74] sm:$0xf]  ;;  %v1465_v29 = vld [vmem:[%s2328_s0 + $0x78] sm:$0xf0] }
  0x26   :  { %1145 = vperm.xlu0 %1726, %v1023_v55   ;;  %v1464_v30 = vor.u32 %v1676_v27, %v1463_v26  ;;  %v1468_v31 = vor.u32 %v1675_v28, %v1465_v29  ;;  %v1033_v32 = vld [vmem:[%s2327_s2 + $0x80] sm:$0xff]  ;;  %v1678_v34 = vld [vmem:[%s2328_s0 + $0x84] sm:$0xf0]  ;;  %v1473_v36 = vld [vmem:[%s2328_s0 + $0x88] sm:$0xf0] }
  0x27   :  { %1140 = vperm.xlu2 %1728, %v1022_v58   ;;  %v1471_v33 = vld [vmem:[%s2328_s0 + $0x80] sm:$0xf]  ;;  %v1677_v35 = vld [vmem:[%s2328_s0 + $0x84] sm:$0xf]  ;;  %v1031_v38 = vld [vmem:[%s2327_s2 + $0x70] sm:$0xff] }
  0x28   :  { %1150 = vperm.xlu1 %1727, %v1024_v57   ;;  %v1472_v37 = vor.u32 %v1678_v34, %v1471_v33  ;;  %v1036_v39 = vld [vmem:[%s2327_s2 + $0x98] sm:$0xff]  ;;  %v1035_v40 = vld [vmem:[%s2327_s2 + $0x90] sm:$0xff]  ;;  %v1476_v42 = vor.u32 %v1677_v35, %v1473_v36  ;;  %v1487_v22 = vld [vmem:[%s2328_s0 + $0xa0] sm:$0xf] }
  0x29   :  { %v1479_v55 = vld [vmem:[%s2328_s0 + $0x90] sm:$0xf]  ;;  %v1680_v56 = vld [vmem:[%s2328_s0 + $0x94] sm:$0xf0]  ;;  %v1679_v58 = vld [vmem:[%s2328_s0 + $0x94] sm:$0xf] }
  0x2a   :  { %v1481_v59 = vld [vmem:[%s2328_s0 + $0x98] sm:$0xf0]  ;;  %v1489_v26 = vld [vmem:[%s2328_s0 + $0xa8] sm:$0xf0] }
  0x2b   :  { %v1484_v4 = vor.u32 %v1679_v58, %v1481_v59 }
  0x2e   :  { %1160 = vperm.xlu0 %1726, %v1026_v1   ;;  %v1041_v1 = vld [vmem:[%s2327_s2 + $0xc0] sm:$0xff] }
  0x2f   :  { %1155 = vperm.xlu2 %1728, %v1025_v9  }
  0x30   :  { %1165 = vperm.xlu1 %1727, %v1027_v8  }
  0x33   :  { %543 = vmatmul.bf16.gmra.mxu0 %v1416_v47 }
  0x34   :  { %632 = vmatmul.bf16.gmra.mxu1 %v1420_v48  ;;  %721 = vmatmul.bf16.gmra.mxu2 %v1416_v47  ;;  %v1039_v47 = vld [vmem:[%s2327_s2 + $0xb0] sm:$0xff] }
  0x35   :  { %810 = vmatmul.bf16.gmra.mxu3 %v1420_v48  ;;  %v1038_v48 = vld [vmem:[%s2327_s2 + $0xa8] sm:$0xff] }
  0x36   :  { %1175 = vperm.xlu0 %1726, %v1029_v16  }
  0x37   :  { %1170 = vperm.xlu2 %1728, %v1028_v18  }
  0x38   :  { %1180 = vperm.xlu1 %1727, %v1030_v17  }
  0x3e   :  { %1190 = vperm.xlu0 %1726, %v1032_v25   ;;  %v1681_v25 = vld [vmem:[%s2328_s0 + $0xa4] sm:$0xf] }
  0x3f   :  { %1185 = vperm.xlu2 %1728, %v1031_v38   ;;  %v1492_v35 = vor.u32 %v1681_v25, %v1489_v26 }
  0x40   :  { %1195 = vperm.xlu1 %1727, %v1033_v32   ;;  %v1047_v32 = vld [vmem:[%s2327_s2 + $0xf0] sm:$0xff] }
  0x43   :  { %548 = vmatmul.bf16.gmra.mxu0 %v1424_v53 }
  0x44   :  { %637 = vmatmul.bf16.gmra.mxu1 %v1428_v54  ;;  %726 = vmatmul.bf16.gmra.mxu2 %v1424_v53 }
  0x45   :  { %815 = vmatmul.bf16.gmra.mxu3 %v1428_v54 }
  0x46   :  { %1205 = vperm.xlu0 %1726, %v1035_v40  }
  0x48   :  { %1210 = vperm.xlu1 %1727, %v1036_v39  }
  0x4e   :  { %1220 = vperm.xlu0 %1726, %v1038_v48  }
  0x50   :  { %1225 = vperm.xlu1 %1727, %v1039_v47  }
  0x53   :  { %553 = vmatmul.bf16.gmra.mxu0 %v1432_v63 }
  0x54   :  { %642 = vmatmul.bf16.gmra.mxu1 %v1436_v0  ;;  %731 = vmatmul.bf16.gmra.mxu2 %v1432_v63  ;;  %v1480_v63 = vor.u32 %v1680_v56, %v1479_v55  ;;  %v1497_v55 = vld [vmem:[%s2328_s0 + $0xb8] sm:$0xf0] }
  0x55   :  { %820 = vmatmul.bf16.gmra.mxu3 %v1436_v0  ;;  %v1042_v0 = vld [vmem:[%s2327_s2 + $0xc8] sm:$0xff] }
  0x56   :  { %1235 = vperm.xlu0 %1726, %v1041_v1  }
  0x58   :  { %1240 = vperm.xlu1 %1727, %v1042_v0  }
  0x63   :  { %558 = vmatmul.bf16.gmra.mxu0 %v1440_v6 }
  0x64   :  { %647 = vmatmul.bf16.gmra.mxu1 %v1444_v7  ;;  %736 = vmatmul.bf16.gmra.mxu2 %v1440_v6 }
  0x65   :  { %825 = vmatmul.bf16.gmra.mxu3 %v1444_v7  ;;  %v1034_v7 = vld [vmem:[%s2327_s2 + $0x88] sm:$0xff] }
  0x66   :  { %1200 = vperm.xlu2 %1728, %v1034_v7  }
  0x73   :  { %563 = vmatmul.bf16.gmra.mxu0 %v1448_v14 }
  0x74   :  { %652 = vmatmul.bf16.gmra.mxu1 %v1452_v15  ;;  %741 = vmatmul.bf16.gmra.mxu2 %v1448_v14  ;;  %v1045_v14 = vld [vmem:[%s2327_s2 + $0xe0] sm:$0xff] }
  0x75   :  { %830 = vmatmul.bf16.gmra.mxu3 %v1452_v15  ;;  %v1044_v15 = vld [vmem:[%s2327_s2 + $0xd8] sm:$0xff]  ;;  %1255 = vperm.xlu1 %1727, %v1045_v14  }
  0x76   :  { %1250 = vperm.xlu0 %1726, %v1044_v15   ;;  %v1503_v15 = vld [vmem:[%s2328_s0 + $0xc0] sm:$0xf] }
  0x7e   :  { %1265 = vperm.xlu0 %1726, %v1047_v32  }
  0x83   :  { %568 = vmatmul.bf16.gmra.mxu0 %v1456_v23 }
  0x84   :  { %657 = vmatmul.bf16.gmra.mxu1 %v1460_v24  ;;  %746 = vmatmul.bf16.gmra.mxu2 %v1456_v23  ;;  %v1682_v23 = vld [vmem:[%s2328_s0 + $0xa4] sm:$0xf0] }
  0x85   :  { %835 = vmatmul.bf16.gmra.mxu3 %v1460_v24 }
  0x88   :  { %v1116_v45 = vpop.permute.xlu0 %1115 }
  0x8a   :  { %v1126_v12 = vpop.permute.xlu1 %1125 }
  0x90   :  { %v1121_v61 = vpop.permute.xlu0 %1120 }
  0x92   :  { %v1131_v28 = vpop.permute.xlu1 %1130 }
  0x93   :  { %573 = vmatmul.bf16.gmra.mxu0 %v1464_v30 }
  0x94   :  { %662 = vmatmul.bf16.gmra.mxu1 %v1468_v31  ;;  %751 = vmatmul.bf16.gmra.mxu2 %v1464_v30  ;;  %v1488_v30 = vor.u32 %v1682_v23, %v1487_v22 }
  0x95   :  { %840 = vmatmul.bf16.gmra.mxu3 %v1468_v31  ;;  %v1048_v31 = vld [vmem:[%s2327_s2 + $0xf8] sm:$0xff] }
  0x96   :  { %1270 = vperm.xlu1 %1727, %v1048_v31  }
  0xa0   :  { %v539_v41 = vpop.f32.mrf.mxu0 }
  0xa1   :  { %v628_v43 = vpop.f32.mrf.mxu1 }
  0xa2   :  { %v629_v44 = vadd.f32 %v628_v43, %v539_v41 }
  0xa3   :  { %578 = vmatmul.bf16.gmra.mxu0 %v1472_v37 }
  0xa4   :  { %667 = vmatmul.bf16.gmra.mxu1 %v1476_v42  ;;  %756 = vmatmul.bf16.gmra.mxu2 %v1472_v37  ;;  %v1273_v51 = vmul.f32 %v1116_v45, %v629_v44  ;;  %v1037_v44 = vld [vmem:[%s2327_s2 + $0xa0] sm:$0xff] }
  0xa5   :  { %845 = vmatmul.bf16.gmra.mxu3 %v1476_v42  ;;  %v1136_v42 = vpop.permute.xlu2 %1135  ;;  %1215 = vperm.xlu2 %1728, %v1037_v44  }
  0xa7   :  { %v717_v46 = vpop.f32.mrf.mxu2 }
  0xa8   :  { %v806_v49 = vpop.f32.mrf.mxu3  ;;  %v541_v50 = vpop.f32.mrf.mxu0 }
  0xa9   :  { %v807_v52 = vadd.f32 %v806_v49, %v717_v46  ;;  %v630_v53 = vpop.f32.mrf.mxu1 }
  0xaa   :  { %v631_v60 = vadd.f32 %v630_v53, %v541_v50 }
  0xab   :  { %v1274_v54 = vmul.f32 %v1116_v45, %v807_v52  ;;  %v1684_v52 = vld [vmem:[%s2328_s0 + $0xb4] sm:$0xf0] }
  0xac   :  { %v1275_v8 = vmul.f32 %v1121_v61, %v631_v60  ;;  %v1040_v60 = vld [vmem:[%s2327_s2 + $0xb8] sm:$0xff] }
  0xad   :  { %v1337_v57 = vpack.c.bf16 %v1274_v54, %v1273_v51  ;;  %v1495_v51 = vld [vmem:[%s2328_s0 + $0xb0] sm:$0xf]  ;;  %v1683_v54 = vld [vmem:[%s2328_s0 + $0xb4] sm:$0xf]  ;;  %1230 = vperm.xlu2 %1728, %v1040_v60  }
  0xae   :  { %v1496_v59 = vor.u32 %v1684_v52, %v1495_v51 }
  0xaf   :  { %1369 = vst [vmem:[%s2329_s3] sm:$0xff] %v1337_v57  ;;  %v719_v62 = vpop.f32.mrf.mxu2  ;;  %v1141_v57 = vpop.permute.xlu2 %1140 }
  0xb0   :  { %v808_v2 = vpop.f32.mrf.mxu3  ;;  %v544_v3 = vpop.f32.mrf.mxu0 }
  0xb1   :  { %v809_v5 = vadd.f32 %v808_v2, %v719_v62  ;;  %v633_v6 = vpop.f32.mrf.mxu1 }
  0xb2   :  { %v634_v11 = vadd.f32 %v633_v6, %v544_v3  ;;  %v1146_v6 = vpop.permute.xlu0 %1145 }
  0xb3   :  { %v1276_v9 = vmul.f32 %v1121_v61, %v809_v5  ;;  %583 = vmatmul.bf16.gmra.mxu0 %v1480_v63 }
  0xb4   :  { %672 = vmatmul.bf16.gmra.mxu1 %v1484_v4  ;;  %761 = vmatmul.bf16.gmra.mxu2 %v1480_v63  ;;  %v1277_v18 = vmul.f32 %v1126_v12, %v634_v11  ;;  %v1500_v63 = vor.u32 %v1683_v54, %v1497_v55 }
  0xb5   :  { %v1338_v10 = vpack.c.bf16 %v1276_v9, %v1275_v8  ;;  %850 = vmatmul.bf16.gmra.mxu3 %v1484_v4  ;;  %v1043_v8 = vld [vmem:[%s2327_s2 + $0xd0] sm:$0xff] }
  0xb6   :  { %1245 = vperm.xlu2 %1728, %v1043_v8   ;;  %v1521_v8 = vld [vmem:[%s2328_s0 + $0xe8] sm:$0xf0] }
  0xb7   :  { %1370 = vst [vmem:[%s2329_s3 + $0x8] sm:$0xff] %v1338_v10  ;;  %v722_v13 = vpop.f32.mrf.mxu2 }
  0xb8   :  { %v811_v16 = vpop.f32.mrf.mxu3  ;;  %v546_v17 = vpop.f32.mrf.mxu0 }
  0xb9   :  { %v812_v19 = vadd.f32 %v811_v16, %v722_v13  ;;  %v635_v20 = vpop.f32.mrf.mxu1  ;;  %v1686_v16 = vld [vmem:[%s2328_s0 + $0xc4] sm:$0xf0] }
  0xba   :  { %v636_v27 = vadd.f32 %v635_v20, %v546_v17  ;;  %v1504_v23 = vor.u32 %v1686_v16, %v1503_v15 }
  0xbb   :  { %v1278_v21 = vmul.f32 %v1126_v12, %v812_v19  ;;  %v1505_v19 = vld [vmem:[%s2328_s0 + $0xc8] sm:$0xf0] }
  0xbc   :  { %v1279_v38 = vmul.f32 %v1131_v28, %v636_v27 }
  0xbd   :  { %v1339_v24 = vpack.c.bf16 %v1278_v21, %v1277_v18  ;;  %v1685_v18 = vld [vmem:[%s2328_s0 + $0xc4] sm:$0xf]  ;;  %v1151_v21 = vpop.permute.xlu1 %1150 }
  0xbe   :  { %v1508_v27 = vor.u32 %v1685_v18, %v1505_v19 }
  0xbf   :  { %1371 = vst [vmem:[%s2329_s3 + $0x10] sm:$0xff] %v1339_v24  ;;  %v724_v29 = vpop.f32.mrf.mxu2  ;;  %v1046_v24 = vld [vmem:[%s2327_s2 + $0xe8] sm:$0xff] }
  0xc0   :  { %v813_v33 = vpop.f32.mrf.mxu3  ;;  %v549_v34 = vpop.f32.mrf.mxu0  ;;  %1260 = vperm.xlu2 %1728, %v1046_v24  }
  0xc1   :  { %v814_v36 = vadd.f32 %v813_v33, %v724_v29  ;;  %v638_v37 = vpop.f32.mrf.mxu1 }
  0xc2   :  { %v639_v41 = vadd.f32 %v638_v37, %v549_v34  ;;  %v1156_v34 = vpop.permute.xlu2 %1155 }
  0xc3   :  { %v1280_v39 = vmul.f32 %v1131_v28, %v814_v36  ;;  %588 = vmatmul.bf16.gmra.mxu0 %v1488_v30 }
  0xc4   :  { %677 = vmatmul.bf16.gmra.mxu1 %v1492_v35  ;;  %766 = vmatmul.bf16.gmra.mxu2 %v1488_v30  ;;  %v1281_v47 = vmul.f32 %v1136_v42, %v639_v41 }
  0xc5   :  { %v1340_v40 = vpack.c.bf16 %v1280_v39, %v1279_v38  ;;  %855 = vmatmul.bf16.gmra.mxu3 %v1492_v35  ;;  %v1166_v60 = vpop.permute.xlu1 %1165 }
  0xc7   :  { %1372 = vst [vmem:[%s2329_s3 + $0x18] sm:$0xff] %v1340_v40  ;;  %v727_v43 = vpop.f32.mrf.mxu2 }
  0xc8   :  { %v816_v45 = vpop.f32.mrf.mxu3  ;;  %v551_v46 = vpop.f32.mrf.mxu0 }
  0xc9   :  { %v817_v48 = vadd.f32 %v816_v45, %v727_v43  ;;  %v640_v49 = vpop.f32.mrf.mxu1  ;;  %v1688_v43 = vld [vmem:[%s2328_s0 + $0xd4] sm:$0xf0]  ;;  %v1687_v45 = vld [vmem:[%s2328_s0 + $0xd4] sm:$0xf] }
  0xca   :  { %v641_v56 = vadd.f32 %v640_v49, %v551_v46  ;;  %v1513_v46 = vld [vmem:[%s2328_s0 + $0xd8] sm:$0xf0] }
  0xcb   :  { %v1282_v50 = vmul.f32 %v1136_v42, %v817_v48  ;;  %v1511_v42 = vld [vmem:[%s2328_s0 + $0xd0] sm:$0xf]  ;;  %v1161_v48 = vpop.permute.xlu0 %1160 }
  0xcc   :  { %v1283_v2 = vmul.f32 %v1141_v57, %v641_v56 }
  0xcd   :  { %v1341_v53 = vpack.c.bf16 %v1282_v50, %v1281_v47  ;;  %v1512_v50 = vor.u32 %v1688_v43, %v1511_v42 }
  0xcf   :  { %1373 = vst [vmem:[%s2329_s3 + $0x20] sm:$0xff] %v1341_v53  ;;  %v729_v58 = vpop.f32.mrf.mxu2  ;;  %v1516_v53 = vor.u32 %v1687_v45, %v1513_v46 }
  0xd0   :  { %v818_v61 = vpop.f32.mrf.mxu3  ;;  %v554_v62 = vpop.f32.mrf.mxu0 }
  0xd1   :  { %v819_v0 = vadd.f32 %v818_v61, %v729_v58  ;;  %v643_v1 = vpop.f32.mrf.mxu1 }
  0xd2   :  { %v644_v5 = vadd.f32 %v643_v1, %v554_v62 }
  0xd3   :  { %v1284_v3 = vmul.f32 %v1141_v57, %v819_v0  ;;  %593 = vmatmul.bf16.gmra.mxu0 %v1496_v59 }
  0xd4   :  { %682 = vmatmul.bf16.gmra.mxu1 %v1500_v63  ;;  %771 = vmatmul.bf16.gmra.mxu2 %v1496_v59  ;;  %v1285_v12 = vmul.f32 %v1146_v6, %v644_v5  ;;  %v1690_v5 = vld [vmem:[%s2328_s0 + $0xe4] sm:$0xf0] }
  0xd5   :  { %v1342_v4 = vpack.c.bf16 %v1284_v3, %v1283_v2  ;;  %860 = vmatmul.bf16.gmra.mxu3 %v1500_v63 }
  0xd7   :  { %1374 = vst [vmem:[%s2329_s3 + $0x28] sm:$0xff] %v1342_v4  ;;  %v732_v7 = vpop.f32.mrf.mxu2  ;;  %v1519_v4 = vld [vmem:[%s2328_s0 + $0xe0] sm:$0xf] }
  0xd8   :  { %v821_v9 = vpop.f32.mrf.mxu3  ;;  %v556_v10 = vpop.f32.mrf.mxu0 }
  0xd9   :  { %v822_v11 = vadd.f32 %v821_v9, %v732_v7  ;;  %v645_v13 = vpop.f32.mrf.mxu1  ;;  %v1689_v7 = vld [vmem:[%s2328_s0 + $0xe4] sm:$0xf] }
  0xda   :  { %v646_v20 = vadd.f32 %v645_v13, %v556_v10  ;;  %v1171_v10 = vpop.permute.xlu2 %1170  ;;  %v1524_v15 = vor.u32 %v1689_v7, %v1521_v8 }
  0xdb   :  { %v1286_v14 = vmul.f32 %v1146_v6, %v822_v11 }
  0xdc   :  { %v1287_v30 = vmul.f32 %v1151_v21, %v646_v20 }
  0xdd   :  { %v1343_v17 = vpack.c.bf16 %v1286_v14, %v1285_v12  ;;  %v1520_v12 = vor.u32 %v1690_v5, %v1519_v4 }
  0xdf   :  { %1375 = vst [vmem:[%s2329_s3 + $0x30] sm:$0xff] %v1343_v17  ;;  %v734_v22 = vpop.f32.mrf.mxu2 }
  0xe0   :  { %v823_v25 = vpop.f32.mrf.mxu3  ;;  %v559_v26 = vpop.f32.mrf.mxu0 }
  0xe1   :  { %v824_v28 = vadd.f32 %v823_v25, %v734_v22  ;;  %v648_v29 = vpop.f32.mrf.mxu1  ;;  %v1176_v22 = vpop.permute.xlu0 %1175 }
  0xe2   :  { %v649_v33 = vadd.f32 %v648_v29, %v559_v26 }
  0xe3   :  { %v1288_v31 = vmul.f32 %v1151_v21, %v824_v28  ;;  %598 = vmatmul.bf16.gmra.mxu0 %v1504_v23 }
  0xe4   :  { %687 = vmatmul.bf16.gmra.mxu1 %v1508_v27  ;;  %776 = vmatmul.bf16.gmra.mxu2 %v1504_v23  ;;  %v1289_v39 = vmul.f32 %v1156_v34, %v649_v33  ;;  %v1691_v33 = vld [vmem:[%s2328_s0 + $0xf4] sm:$0xf] }
  0xe5   :  { %v1344_v32 = vpack.c.bf16 %v1288_v31, %v1287_v30  ;;  %865 = vmatmul.bf16.gmra.mxu3 %v1508_v27  ;;  %v1527_v30 = vld [vmem:[%s2328_s0 + $0xf0] sm:$0xf]  ;;  %v1692_v31 = vld [vmem:[%s2328_s0 + $0xf4] sm:$0xf0] }
  0xe7   :  { %1376 = vst [vmem:[%s2329_s3 + $0x38] sm:$0xff] %v1344_v32  ;;  %v737_v35 = vpop.f32.mrf.mxu2 }
  0xe8   :  { %v826_v36 = vpop.f32.mrf.mxu3  ;;  %v561_v37 = vpop.f32.mrf.mxu0 }
  0xe9   :  { %v827_v38 = vadd.f32 %v826_v36, %v737_v35  ;;  %v650_v40 = vpop.f32.mrf.mxu1  ;;  %v1181_v36 = vpop.permute.xlu1 %1180 }
  0xea   :  { %v651_v47 = vadd.f32 %v650_v40, %v561_v37 }
  0xeb   :  { %v1290_v41 = vmul.f32 %v1156_v34, %v827_v38  ;;  %v1529_v34 = vld [vmem:[%s2328_s0 + $0xf8] sm:$0xf0]  ;;  %v1528_v38 = vor.u32 %v1692_v31, %v1527_v30 }
  0xec   :  { %v1291_v56 = vmul.f32 %v1161_v48, %v651_v47 }
  0xed   :  { %v1345_v44 = vpack.c.bf16 %v1290_v41, %v1289_v39  ;;  %v1532_v41 = vor.u32 %v1691_v33, %v1529_v34 }
  0xef   :  { %1377 = vst [vmem:[%s2329_s3 + $0x40] sm:$0xff] %v1345_v44  ;;  %v739_v49 = vpop.f32.mrf.mxu2 }
  0xf0   :  { %v828_v51 = vpop.f32.mrf.mxu3  ;;  %v564_v52 = vpop.f32.mrf.mxu0 }
  0xf1   :  { %v829_v54 = vadd.f32 %v828_v51, %v739_v49  ;;  %v653_v55 = vpop.f32.mrf.mxu1  ;;  %v1196_v4 = vpop.permute.xlu1 %1195 }
  0xf2   :  { %v654_v59 = vadd.f32 %v653_v55, %v564_v52 }
  0xf3   :  { %v1292_v57 = vmul.f32 %v1161_v48, %v829_v54  ;;  %603 = vmatmul.bf16.gmra.mxu0 %v1512_v50  ;;  %v1186_v48 = vpop.permute.xlu2 %1185 }
  0xf4   :  { %692 = vmatmul.bf16.gmra.mxu1 %v1516_v53  ;;  %781 = vmatmul.bf16.gmra.mxu2 %v1512_v50  ;;  %v1293_v1 = vmul.f32 %v1166_v60, %v654_v59 }
  0xf5   :  { %v1346_v58 = vpack.c.bf16 %v1292_v57, %v1291_v56  ;;  %870 = vmatmul.bf16.gmra.mxu3 %v1516_v53 }
  0xf7   :  { %1378 = vst [vmem:[%s2329_s3 + $0x48] sm:$0xff] %v1346_v58  ;;  %v742_v61 = vpop.f32.mrf.mxu2  ;;  %v1191_v58 = vpop.permute.xlu0 %1190 }
  0xf8   :  { %v831_v62 = vpop.f32.mrf.mxu3  ;;  %v566_v63 = vpop.f32.mrf.mxu0 }
  0xf9   :  { %v832_v0 = vadd.f32 %v831_v62, %v742_v61  ;;  %v655_v2 = vpop.f32.mrf.mxu1 }
  0xfa   :  { %v656_v9 = vadd.f32 %v655_v2, %v566_v63 }
  0xfb   :  { %v1294_v3 = vmul.f32 %v1166_v60, %v832_v0 }
  0xfc   :  { %v1295_v18 = vmul.f32 %v1171_v10, %v656_v9 }
  0xfd   :  { %v1347_v6 = vpack.c.bf16 %v1294_v3, %v1293_v1 }
  0xff   :  { %1379 = vst [vmem:[%s2329_s3 + $0x50] sm:$0xff] %v1347_v6  ;;  %v744_v11 = vpop.f32.mrf.mxu2 }
 0x100   :  { %v833_v13 = vpop.f32.mrf.mxu3  ;;  %v569_v14 = vpop.f32.mrf.mxu0 }
 0x101   :  { %v834_v16 = vadd.f32 %v833_v13, %v744_v11  ;;  %v658_v17 = vpop.f32.mrf.mxu1 }
 0x102   :  { %v659_v21 = vadd.f32 %v658_v17, %v569_v14  ;;  %v1201_v14 = vpop.permute.xlu2 %1200 }
 0x103   :  { %v1296_v19 = vmul.f32 %v1171_v10, %v834_v16  ;;  %608 = vmatmul.bf16.gmra.mxu0 %v1520_v12 }
 0x104   :  { %697 = vmatmul.bf16.gmra.mxu1 %v1524_v15  ;;  %786 = vmatmul.bf16.gmra.mxu2 %v1520_v12  ;;  %v1297_v27 = vmul.f32 %v1176_v22, %v659_v21 }
 0x105   :  { %v1348_v20 = vpack.c.bf16 %v1296_v19, %v1295_v18  ;;  %875 = vmatmul.bf16.gmra.mxu3 %v1524_v15 }
 0x107   :  { %1380 = vst [vmem:[%s2329_s3 + $0x58] sm:$0xff] %v1348_v20  ;;  %v747_v23 = vpop.f32.mrf.mxu2 }
 0x108   :  { %v836_v24 = vpop.f32.mrf.mxu3  ;;  %v571_v25 = vpop.f32.mrf.mxu0 }
 0x109   :  { %v837_v26 = vadd.f32 %v836_v24, %v747_v23  ;;  %v660_v28 = vpop.f32.mrf.mxu1  ;;  %v1206_v24 = vpop.permute.xlu0 %1205 }
 0x10a   :  { %v661_v35 = vadd.f32 %v660_v28, %v571_v25 }
 0x10b   :  { %v1298_v29 = vmul.f32 %v1176_v22, %v837_v26 }
 0x10c   :  { %v1299_v44 = vmul.f32 %v1181_v36, %v661_v35 }
 0x10d   :  { %v1349_v32 = vpack.c.bf16 %v1298_v29, %v1297_v27 }
 0x10f   :  { %1381 = vst [vmem:[%s2329_s3 + $0x60] sm:$0xff] %v1349_v32  ;;  %v749_v37 = vpop.f32.mrf.mxu2 }
 0x110   :  { %v838_v39 = vpop.f32.mrf.mxu3  ;;  %v574_v40 = vpop.f32.mrf.mxu0 }
 0x111   :  { %v839_v42 = vadd.f32 %v838_v39, %v749_v37  ;;  %v663_v43 = vpop.f32.mrf.mxu1  ;;  %v1211_v39 = vpop.permute.xlu1 %1210 }
 0x112   :  { %v664_v47 = vadd.f32 %v663_v43, %v574_v40 }
 0x113   :  { %v1300_v45 = vmul.f32 %v1181_v36, %v839_v42  ;;  %613 = vmatmul.bf16.gmra.mxu0 %v1528_v38 }
 0x114   :  { %702 = vmatmul.bf16.gmra.mxu1 %v1532_v41  ;;  %791 = vmatmul.bf16.gmra.mxu2 %v1528_v38  ;;  %v1301_v53 = vmul.f32 %v1186_v48, %v664_v47 }
 0x115   :  { %v1350_v46 = vpack.c.bf16 %v1300_v45, %v1299_v44  ;;  %880 = vmatmul.bf16.gmra.mxu3 %v1532_v41  ;;  %v1216_v44 = vpop.permute.xlu2 %1215 }
 0x117   :  { %1382 = vst [vmem:[%s2329_s3 + $0x68] sm:$0xff] %v1350_v46  ;;  %v752_v49 = vpop.f32.mrf.mxu2 }
 0x118   :  { %v841_v50 = vpop.f32.mrf.mxu3  ;;  %v576_v51 = vpop.f32.mrf.mxu0 }
 0x119   :  { %v842_v52 = vadd.f32 %v841_v50, %v752_v49  ;;  %v665_v54 = vpop.f32.mrf.mxu1 }
 0x11a   :  { %v666_v57 = vadd.f32 %v665_v54, %v576_v51 }
 0x11b   :  { %v1302_v55 = vmul.f32 %v1186_v48, %v842_v52 }
 0x11c   :  { %v1303_v0 = vmul.f32 %v1191_v58, %v666_v57 }
 0x11d   :  { %v1351_v56 = vpack.c.bf16 %v1302_v55, %v1301_v53 }
 0x11f   :  { %1383 = vst [vmem:[%s2329_s3 + $0x70] sm:$0xff] %v1351_v56  ;;  %v754_v59 = vpop.f32.mrf.mxu2 }
 0x120   :  { %v843_v60 = vpop.f32.mrf.mxu3  ;;  %v579_v61 = vpop.f32.mrf.mxu0 }
 0x121   :  { %v844_v62 = vadd.f32 %v843_v60, %v754_v59  ;;  %v668_v63 = vpop.f32.mrf.mxu1  ;;  %v1221_v59 = vpop.permute.xlu0 %1220 }
 0x122   :  { %v669_v3 = vadd.f32 %v668_v63, %v579_v61 }
 0x123   :  { %v1304_v1 = vmul.f32 %v1191_v58, %v844_v62 }
 0x124   :  { %v1305_v9 = vmul.f32 %v1196_v4, %v669_v3 }
 0x125   :  { %v1352_v2 = vpack.c.bf16 %v1304_v1, %v1303_v0 }
 0x127   :  { %1384 = vst [vmem:[%s2329_s3 + $0x78] sm:$0xff] %v1352_v2  ;;  %v757_v5 = vpop.f32.mrf.mxu2 }
 0x128   :  { %v846_v6 = vpop.f32.mrf.mxu3  ;;  %v581_v7 = vpop.f32.mrf.mxu0 }
 0x129   :  { %v847_v8 = vadd.f32 %v846_v6, %v757_v5  ;;  %v670_v10 = vpop.f32.mrf.mxu1  ;;  %v1226_v5 = vpop.permute.xlu1 %1225 }
 0x12a   :  { %v671_v13 = vadd.f32 %v670_v10, %v581_v7 }
 0x12b   :  { %v1306_v11 = vmul.f32 %v1196_v4, %v847_v8 }
 0x12c   :  { %v1307_v20 = vmul.f32 %v1201_v14, %v671_v13 }
 0x12d   :  { %v1353_v12 = vpack.c.bf16 %v1306_v11, %v1305_v9 }
 0x12f   :  { %1385 = vst [vmem:[%s2329_s3 + $0x80] sm:$0xff] %v1353_v12  ;;  %v759_v15 = vpop.f32.mrf.mxu2 }
 0x130   :  { %v848_v16 = vpop.f32.mrf.mxu3  ;;  %v584_v17 = vpop.f32.mrf.mxu0 }
 0x131   :  { %v849_v18 = vadd.f32 %v848_v16, %v759_v15  ;;  %v673_v19 = vpop.f32.mrf.mxu1  ;;  %v1231_v15 = vpop.permute.xlu2 %1230 }
 0x132   :  { %v674_v23 = vadd.f32 %v673_v19, %v584_v17 }
 0x133   :  { %v1308_v21 = vmul.f32 %v1201_v14, %v849_v18 }
 0x134   :  { %v1309_v28 = vmul.f32 %v1206_v24, %v674_v23 }
 0x135   :  { %v1354_v22 = vpack.c.bf16 %v1308_v21, %v1307_v20 }
 0x137   :  { %1386 = vst [vmem:[%s2329_s3 + $0x88] sm:$0xff] %v1354_v22  ;;  %v762_v25 = vpop.f32.mrf.mxu2 }
 0x138   :  { %v851_v26 = vpop.f32.mrf.mxu3  ;;  %v586_v27 = vpop.f32.mrf.mxu0 }
 0x139   :  { %v852_v29 = vadd.f32 %v851_v26, %v762_v25  ;;  %v675_v30 = vpop.f32.mrf.mxu1  ;;  %v1236_v25 = vpop.permute.xlu0 %1235 }
 0x13a   :  { %v676_v33 = vadd.f32 %v675_v30, %v586_v27 }
 0x13b   :  { %v1310_v31 = vmul.f32 %v1206_v24, %v852_v29 }
 0x13c   :  { %v1311_v40 = vmul.f32 %v1211_v39, %v676_v33 }
 0x13d   :  { %v1355_v32 = vpack.c.bf16 %v1310_v31, %v1309_v28 }
 0x13f   :  { %1387 = vst [vmem:[%s2329_s3 + $0x90] sm:$0xff] %v1355_v32  ;;  %v764_v34 = vpop.f32.mrf.mxu2 }
 0x140   :  { %v853_v35 = vpop.f32.mrf.mxu3  ;;  %v589_v36 = vpop.f32.mrf.mxu0 }
 0x141   :  { %v854_v37 = vadd.f32 %v853_v35, %v764_v34  ;;  %v678_v38 = vpop.f32.mrf.mxu1  ;;  %v1241_v35 = vpop.permute.xlu1 %1240 }
 0x142   :  { %v679_v43 = vadd.f32 %v678_v38, %v589_v36 }
 0x143   :  { %v1312_v41 = vmul.f32 %v1211_v39, %v854_v37 }
 0x144   :  { %v1313_v48 = vmul.f32 %v1216_v44, %v679_v43 }
 0x145   :  { %v1356_v42 = vpack.c.bf16 %v1312_v41, %v1311_v40 }
 0x147   :  { %1388 = vst [vmem:[%s2329_s3 + $0x98] sm:$0xff] %v1356_v42  ;;  %v767_v45 = vpop.f32.mrf.mxu2 }
 0x148   :  { %v856_v46 = vpop.f32.mrf.mxu3  ;;  %v591_v47 = vpop.f32.mrf.mxu0 }
 0x149   :  { %v857_v49 = vadd.f32 %v856_v46, %v767_v45  ;;  %v680_v50 = vpop.f32.mrf.mxu1  ;;  %v1246_v45 = vpop.permute.xlu2 %1245 }
 0x14a   :  { %v681_v53 = vadd.f32 %v680_v50, %v591_v47 }
 0x14b   :  { %v1314_v51 = vmul.f32 %v1216_v44, %v857_v49 }
 0x14c   :  { %v1315_v60 = vmul.f32 %v1221_v59, %v681_v53 }
 0x14d   :  { %v1357_v52 = vpack.c.bf16 %v1314_v51, %v1313_v48 }
 0x14f   :  { %1389 = vst [vmem:[%s2329_s3 + $0xa0] sm:$0xff] %v1357_v52  ;;  %v769_v54 = vpop.f32.mrf.mxu2 }
 0x150   :  { %v858_v55 = vpop.f32.mrf.mxu3  ;;  %v594_v56 = vpop.f32.mrf.mxu0 }
 0x151   :  { %v859_v57 = vadd.f32 %v858_v55, %v769_v54  ;;  %v683_v58 = vpop.f32.mrf.mxu1  ;;  %v1251_v55 = vpop.permute.xlu0 %1250 }
 0x152   :  { %v684_v63 = vadd.f32 %v683_v58, %v594_v56 }
 0x153   :  { %v1316_v61 = vmul.f32 %v1221_v59, %v859_v57 }
 0x154   :  { %v1317_v6 = vmul.f32 %v1226_v5, %v684_v63 }
 0x155   :  { %v1358_v62 = vpack.c.bf16 %v1316_v61, %v1315_v60 }
 0x157   :  { %1390 = vst [vmem:[%s2329_s3 + $0xa8] sm:$0xff] %v1358_v62  ;;  %v772_v0 = vpop.f32.mrf.mxu2 }
 0x158   :  { %v861_v1 = vpop.f32.mrf.mxu3  ;;  %v596_v2 = vpop.f32.mrf.mxu0 }
 0x159   :  { %v862_v3 = vadd.f32 %v861_v1, %v772_v0  ;;  %v685_v4 = vpop.f32.mrf.mxu1  ;;  %v1256_v1 = vpop.permute.xlu1 %1255 }
 0x15a   :  { %v686_v9 = vadd.f32 %v685_v4, %v596_v2 }
 0x15b   :  { %v1318_v7 = vmul.f32 %v1226_v5, %v862_v3 }
 0x15c   :  { %v1319_v16 = vmul.f32 %v1231_v15, %v686_v9 }
 0x15d   :  { %v1359_v8 = vpack.c.bf16 %v1318_v7, %v1317_v6 }
 0x15f   :  { %1391 = vst [vmem:[%s2329_s3 + $0xb0] sm:$0xff] %v1359_v8  ;;  %v774_v10 = vpop.f32.mrf.mxu2  ;;  %v1261_v8 = vpop.permute.xlu2 %1260 }
 0x160   :  { %v863_v11 = vpop.f32.mrf.mxu3  ;;  %v599_v12 = vpop.f32.mrf.mxu0 }
 0x161   :  { %v864_v13 = vadd.f32 %v863_v11, %v774_v10  ;;  %v688_v14 = vpop.f32.mrf.mxu1 }
 0x162   :  { %v689_v19 = vadd.f32 %v688_v14, %v599_v12 }
 0x163   :  { %v1320_v17 = vmul.f32 %v1231_v15, %v864_v13 }
 0x164   :  { %v1321_v26 = vmul.f32 %v1236_v25, %v689_v19  ;;  %v1266_v19 = vpop.permute.xlu0 %1265 }
 0x165   :  { %v1360_v18 = vpack.c.bf16 %v1320_v17, %v1319_v16 }
 0x167   :  { %1392 = vst [vmem:[%s2329_s3 + $0xb8] sm:$0xff] %v1360_v18  ;;  %v777_v20 = vpop.f32.mrf.mxu2 }
 0x168   :  { %v866_v21 = vpop.f32.mrf.mxu3  ;;  %v601_v22 = vpop.f32.mrf.mxu0 }
 0x169   :  { %v867_v23 = vadd.f32 %v866_v21, %v777_v20  ;;  %v690_v24 = vpop.f32.mrf.mxu1 }
 0x16a   :  { %v691_v29 = vadd.f32 %v690_v24, %v601_v22 }
 0x16b   :  { %v1322_v27 = vmul.f32 %v1236_v25, %v867_v23 }
 0x16c   :  { %v1323_v36 = vmul.f32 %v1241_v35, %v691_v29  ;;  %v1271_v29 = vpop.permute.xlu1 %1270 }
 0x16d   :  { %v1361_v28 = vpack.c.bf16 %v1322_v27, %v1321_v26 }
 0x16f   :  { %1393 = vst [vmem:[%s2329_s3 + $0xc0] sm:$0xff] %v1361_v28  ;;  %v779_v30 = vpop.f32.mrf.mxu2 }
 0x170   :  { %v868_v31 = vpop.f32.mrf.mxu3  ;;  %v604_v32 = vpop.f32.mrf.mxu0 }
 0x171   :  { %v869_v33 = vadd.f32 %v868_v31, %v779_v30  ;;  %v693_v34 = vpop.f32.mrf.mxu1 }
 0x172   :  { %v694_v39 = vadd.f32 %v693_v34, %v604_v32 }
 0x173   :  { %v1324_v37 = vmul.f32 %v1241_v35, %v869_v33 }
 0x174   :  { %v1325_v46 = vmul.f32 %v1246_v45, %v694_v39 }
 0x175   :  { %v1362_v38 = vpack.c.bf16 %v1324_v37, %v1323_v36 }
 0x177   :  { %1394 = vst [vmem:[%s2329_s3 + $0xc8] sm:$0xff] %v1362_v38  ;;  %v782_v40 = vpop.f32.mrf.mxu2 }
 0x178   :  { %v871_v41 = vpop.f32.mrf.mxu3  ;;  %v606_v42 = vpop.f32.mrf.mxu0 }
 0x179   :  { %v872_v43 = vadd.f32 %v871_v41, %v782_v40  ;;  %v695_v44 = vpop.f32.mrf.mxu1 }
 0x17a   :  { %v696_v49 = vadd.f32 %v695_v44, %v606_v42 }
 0x17b   :  { %v1326_v47 = vmul.f32 %v1246_v45, %v872_v43 }
 0x17c   :  { %v1327_v56 = vmul.f32 %v1251_v55, %v696_v49 }
 0x17d   :  { %v1363_v48 = vpack.c.bf16 %v1326_v47, %v1325_v46 }
 0x17f   :  { %1395 = vst [vmem:[%s2329_s3 + $0xd0] sm:$0xff] %v1363_v48  ;;  %v784_v50 = vpop.f32.mrf.mxu2 }
 0x180   :  { %v873_v51 = vpop.f32.mrf.mxu3  ;;  %v609_v52 = vpop.f32.mrf.mxu0 }
 0x181   :  { %v874_v53 = vadd.f32 %v873_v51, %v784_v50  ;;  %v698_v54 = vpop.f32.mrf.mxu1 }
 0x182   :  { %v699_v59 = vadd.f32 %v698_v54, %v609_v52 }
 0x183   :  { %v1328_v57 = vmul.f32 %v1251_v55, %v874_v53 }
 0x184   :  { %v1329_v2 = vmul.f32 %v1256_v1, %v699_v59 }
 0x185   :  { %v1364_v58 = vpack.c.bf16 %v1328_v57, %v1327_v56 }
 0x187   :  { %1396 = vst [vmem:[%s2329_s3 + $0xd8] sm:$0xff] %v1364_v58  ;;  %v787_v60 = vpop.f32.mrf.mxu2 }
 0x188   :  { %v876_v61 = vpop.f32.mrf.mxu3  ;;  %v611_v62 = vpop.f32.mrf.mxu0 }
 0x189   :  { %v877_v63 = vadd.f32 %v876_v61, %v787_v60  ;;  %v700_v0 = vpop.f32.mrf.mxu1 }
 0x18a   :  { %v701_v5 = vadd.f32 %v700_v0, %v611_v62 }
 0x18b   :  { %v1330_v3 = vmul.f32 %v1256_v1, %v877_v63 }
 0x18c   :  { %v1331_v12 = vmul.f32 %v1261_v8, %v701_v5 }
 0x18d   :  { %v1365_v4 = vpack.c.bf16 %v1330_v3, %v1329_v2 }
 0x18f   :  { %1397 = vst [vmem:[%s2329_s3 + $0xe0] sm:$0xff] %v1365_v4  ;;  %v789_v6 = vpop.f32.mrf.mxu2 }
 0x190   :  { %v878_v7 = vpop.f32.mrf.mxu3  ;;  %v614_v10 = vpop.f32.mrf.mxu0 }
 0x191   :  { %v879_v9 = vadd.f32 %v878_v7, %v789_v6  ;;  %v703_v11 = vpop.f32.mrf.mxu1 }
 0x192   :  { %v704_v15 = vadd.f32 %v703_v11, %v614_v10 }
 0x193   :  { %v1332_v13 = vmul.f32 %v1261_v8, %v879_v9 }
 0x194   :  { %v1333_v20 = vmul.f32 %v1266_v19, %v704_v15 }
 0x195   :  { %v1366_v14 = vpack.c.bf16 %v1332_v13, %v1331_v12 }
 0x197   :  { %1398 = vst [vmem:[%s2329_s3 + $0xe8] sm:$0xff] %v1366_v14  ;;  %v792_v16 = vpop.f32.mrf.mxu2 }
 0x198   :  { %v881_v17 = vpop.f32.mrf.mxu3  ;;  %v616_v22 = vpop.f32.mrf.mxu0 }
 0x199   :  { %v882_v18 = vadd.f32 %v881_v17, %v792_v16  ;;  %v705_v23 = vpop.f32.mrf.mxu1 }
 0x19a   :  { %v706_v25 = vadd.f32 %v705_v23, %v616_v22 }
 0x19b   :  { %v1334_v21 = vmul.f32 %v1266_v19, %v882_v18 }
 0x19c   :  { %v1335_v30 = vmul.f32 %v1271_v29, %v706_v25 }
 0x19d   :  { %v1367_v24 = vpack.c.bf16 %v1334_v21, %v1333_v20 }
 0x19f   :  { %1399 = vst [vmem:[%s2329_s3 + $0xf0] sm:$0xff] %v1367_v24  ;;  %v794_v26 = vpop.f32.mrf.mxu2 }
 0x1a0   :  { %v883_v27 = vpop.f32.mrf.mxu3 }
 0x1a1   :  { %v884_v28 = vadd.f32 %v883_v27, %v794_v26 }
 0x1a3   :  { %v1336_v31 = vmul.f32 %v1271_v29, %v884_v28 }
 0x1a5   :  { %v1368_v32 = vpack.c.bf16 %v1336_v31, %v1335_v30 }
 0x1a7   :  { %1400 = vst [vmem:[%s2329_s3 + $0xf8] sm:$0xff] %v1368_v32 }

// kernel: gcn_forward_padded.7
= control target key start
LH: loop header
LB: loop body
LE: loop exit
PB: predicated region body
PF: predicated region fallthrough
CT: control target
= control target key end

     0   :  { %s2437_s0 = inlined_call_operand.vmem [shape: bf16[256,256], index: 0, kind: input, shape index: {}]   ;;  %s2438_s1 = inlined_call_operand.vmem [shape: bf16[256,256], index: 1, kind: input, shape index: {}]   ;;  %s2439_s2 = inlined_call_operand.vmem [shape: f32[256,1], index: 2, kind: input, shape index: {}]   ;;  %s2440_s3 = inlined_call_operand.vmem [shape: f32[1,256], index: 3, kind: input, shape index: {}]   ;;  %s2441_s4 = inlined_call_operand.hbm [shape: f32[256,256], index: 4, kind: output, shape index: {}]  }
   0x1   :  { %v1687_v0 = vld [vmem:[%s2438_s1 + $0x70] sm:$0xf]  ;;  %v1772_v1 = vld [vmem:[%s2438_s1 + $0x74] sm:$0xf0]  ;;  %v1771_v5 = vld [vmem:[%s2438_s1 + $0x74] sm:$0xf] }
   0x2   :  { %v1751_v2 = vld [vmem:[%s2438_s1 + $0xf0] sm:$0xf]  ;;  %v1688_v3 = vor.u32 %v1772_v1, %v1687_v0  ;;  %v1788_v4 = vld [vmem:[%s2438_s1 + $0xf4] sm:$0xf0]  ;;  %v1689_v6 = vld [vmem:[%s2438_s1 + $0x78] sm:$0xf0] }
   0x3   :  { %v1752_v7 = vor.u32 %v1788_v4, %v1751_v2  ;;  %v1692_v8 = vor.u32 %v1771_v5, %v1689_v6  ;;  %v1787_v9 = vld [vmem:[%s2438_s1 + $0xf4] sm:$0xf]  ;;  %v1753_v10 = vld [vmem:[%s2438_s1 + $0xf8] sm:$0xf0]  ;;  %v1679_v11 = vld [vmem:[%s2438_s1 + $0x60] sm:$0xf] }
   0x4   :  { %540 = vmatpush.bf16.msra.mxu0 %v1688_v3  ;;  %v1756_v12 = vor.u32 %v1787_v9, %v1753_v10  ;;  %v1770_v13 = vld [vmem:[%s2438_s1 + $0x64] sm:$0xf0]  ;;  %v1743_v14 = vld [vmem:[%s2438_s1 + $0xe0] sm:$0xf]  ;;  %v1769_v18 = vld [vmem:[%s2438_s1 + $0x64] sm:$0xf] }
   0x5   :  { %v1786_v15 = vld [vmem:[%s2438_s1 + $0xe4] sm:$0xf0]  ;;  %629 = vmatpush.bf16.msra.mxu1 %v1752_v7  ;;  %718 = vmatpush.bf16.msra.mxu2 %v1692_v8  ;;  %v1680_v16 = vor.u32 %v1770_v13, %v1679_v11  ;;  %v1681_v19 = vld [vmem:[%s2438_s1 + $0x68] sm:$0xf0]  ;;  %v1785_v20 = vld [vmem:[%s2438_s1 + $0xe4] sm:$0xf] }
   0x6   :  { %v1744_v17 = vor.u32 %v1786_v15, %v1743_v14  ;;  %807 = vmatpush.bf16.msra.mxu3 %v1756_v12  ;;  %v1684_v21 = vor.u32 %v1769_v18, %v1681_v19  ;;  %v1745_v22 = vld [vmem:[%s2438_s1 + $0xe8] sm:$0xf0]  ;;  %v1671_v23 = vld [vmem:[%s2438_s1 + $0x50] sm:$0xf]  ;;  %v1768_v24 = vld [vmem:[%s2438_s1 + $0x54] sm:$0xf0] }
   0x7   :  { %v1748_v25 = vor.u32 %v1785_v20, %v1745_v22  ;;  %v1735_v26 = vld [vmem:[%s2438_s1 + $0xd0] sm:$0xf]  ;;  %v1784_v27 = vld [vmem:[%s2438_s1 + $0xd4] sm:$0xf0]  ;;  %v1767_v28 = vld [vmem:[%s2438_s1 + $0x54] sm:$0xf]  ;;  %v1672_v29 = vor.u32 %v1768_v24, %v1671_v23 }
   0x8   :  { %541 = vmatpush.bf16.msra.mxu0 %v1680_v16  ;;  %v1673_v30 = vld [vmem:[%s2438_s1 + $0x58] sm:$0xf0]  ;;  %v1783_v31 = vld [vmem:[%s2438_s1 + $0xd4] sm:$0xf]  ;;  %v1736_v33 = vor.u32 %v1784_v27, %v1735_v26  ;;  %v1663_v35 = vld [vmem:[%s2438_s1 + $0x40] sm:$0xf] }
   0x9   :  { %v1737_v32 = vld [vmem:[%s2438_s1 + $0xd8] sm:$0xf0]  ;;  %630 = vmatpush.bf16.msra.mxu1 %v1744_v17  ;;  %719 = vmatpush.bf16.msra.mxu2 %v1684_v21  ;;  %v1676_v34 = vor.u32 %v1767_v28, %v1673_v30  ;;  %v1766_v36 = vld [vmem:[%s2438_s1 + $0x44] sm:$0xf0]  ;;  %v1727_v37 = vld [vmem:[%s2438_s1 + $0xc0] sm:$0xf] }
   0xa   :  { %808 = vmatpush.bf16.msra.mxu3 %v1748_v25  ;;  %v1740_v38 = vor.u32 %v1783_v31, %v1737_v32  ;;  %v1782_v39 = vld [vmem:[%s2438_s1 + $0xc4] sm:$0xf0]  ;;  %v1765_v40 = vld [vmem:[%s2438_s1 + $0x44] sm:$0xf]  ;;  %v1665_v41 = vld [vmem:[%s2438_s1 + $0x48] sm:$0xf0]  ;;  %v1664_v44 = vor.u32 %v1766_v36, %v1663_v35 }
   0xb   :  { %v1781_v42 = vld [vmem:[%s2438_s1 + $0xc4] sm:$0xf]  ;;  %v1729_v43 = vld [vmem:[%s2438_s1 + $0xc8] sm:$0xf0]  ;;  %v1728_v45 = vor.u32 %v1782_v39, %v1727_v37  ;;  %v1668_v46 = vor.u32 %v1765_v40, %v1665_v41  ;;  %v1655_v47 = vld [vmem:[%s2438_s1 + $0x30] sm:$0xf] }
   0xc   :  { %542 = vmatpush.bf16.msra.mxu0 %v1672_v29  ;;  %v1764_v48 = vld [vmem:[%s2438_s1 + $0x34] sm:$0xf0]  ;;  %v1719_v49 = vld [vmem:[%s2438_s1 + $0xb0] sm:$0xf]  ;;  %v1732_v50 = vor.u32 %v1781_v42, %v1729_v43  ;;  %v1763_v52 = vld [vmem:[%s2438_s1 + $0x34] sm:$0xf] }
   0xd   :  { %631 = vmatpush.bf16.msra.mxu1 %v1736_v33  ;;  %720 = vmatpush.bf16.msra.mxu2 %v1676_v34  ;;  %v1780_v51 = vld [vmem:[%s2438_s1 + $0xb4] sm:$0xf0]  ;;  %v1657_v53 = vld [vmem:[%s2438_s1 + $0x38] sm:$0xf0]  ;;  %v1779_v54 = vld [vmem:[%s2438_s1 + $0xb4] sm:$0xf]  ;;  %v1656_v56 = vor.u32 %v1764_v48, %v1655_v47 }
   0xe   :  { %809 = vmatpush.bf16.msra.mxu3 %v1740_v38  ;;  %v1721_v55 = vld [vmem:[%s2438_s1 + $0xb8] sm:$0xf0]  ;;  %v1720_v57 = vor.u32 %v1780_v51, %v1719_v49  ;;  %v1660_v58 = vor.u32 %v1763_v52, %v1657_v53  ;;  %v1647_v59 = vld [vmem:[%s2438_s1 + $0x20] sm:$0xf]  ;;  %v1762_v60 = vld [vmem:[%s2438_s1 + $0x24] sm:$0xf0] }
   0xf   :  { %v1711_v61 = vld [vmem:[%s2438_s1 + $0xa0] sm:$0xf]  ;;  %v1724_v62 = vor.u32 %v1779_v54, %v1721_v55  ;;  %v1778_v63 = vld [vmem:[%s2438_s1 + $0xa4] sm:$0xf0]  ;;  %v1761_v0 = vld [vmem:[%s2438_s1 + $0x24] sm:$0xf]  ;;  %v1648_v4 = vor.u32 %v1762_v60, %v1647_v59 }
  0x10   :  { %543 = vmatpush.bf16.msra.mxu0 %v1664_v44  ;;  %v1649_v1 = vld [vmem:[%s2438_s1 + $0x28] sm:$0xf0]  ;;  %v1777_v2 = vld [vmem:[%s2438_s1 + $0xa4] sm:$0xf]  ;;  %v1712_v5 = vor.u32 %v1778_v63, %v1711_v61  ;;  %v1639_v7 = vld [vmem:[%s2438_s1 + $0x10] sm:$0xf] }
  0x11   :  { %632 = vmatpush.bf16.msra.mxu1 %v1728_v45  ;;  %721 = vmatpush.bf16.msra.mxu2 %v1668_v46  ;;  %v1713_v3 = vld [vmem:[%s2438_s1 + $0xa8] sm:$0xf0]  ;;  %v1652_v6 = vor.u32 %v1761_v0, %v1649_v1  ;;  %v1760_v8 = vld [vmem:[%s2438_s1 + $0x14] sm:$0xf0]  ;;  %v1703_v9 = vld [vmem:[%s2438_s1 + $0x90] sm:$0xf] }
  0x12   :  { %810 = vmatpush.bf16.msra.mxu3 %v1732_v50  ;;  %v1716_v10 = vor.u32 %v1777_v2, %v1713_v3  ;;  %v1776_v11 = vld [vmem:[%s2438_s1 + $0x94] sm:$0xf0]  ;;  %v1759_v12 = vld [vmem:[%s2438_s1 + $0x14] sm:$0xf]  ;;  %v1641_v13 = vld [vmem:[%s2438_s1 + $0x18] sm:$0xf0]  ;;  %v1640_v17 = vor.u32 %v1760_v8, %v1639_v7 }
  0x13   :  { %v1775_v14 = vld [vmem:[%s2438_s1 + $0x94] sm:$0xf]  ;;  %v1705_v15 = vld [vmem:[%s2438_s1 + $0x98] sm:$0xf0]  ;;  %v1027_v16 = vld [vmem:[%s2439_s2] sm:$0xff]  ;;  %v1854_v20 = vmov 0   ;;  %v1704_v21 = vor.u32 %v1776_v11, %v1703_v9  ;;  %v1644_v22 = vor.u32 %v1759_v12, %v1641_v13 }
  0x14   :  { %544 = vmatpush.bf16.msra.mxu0 %v1656_v56  ;;  %v1631_v18 = vld [vmem:[%s2438_s1] sm:$0xf]  ;;  %v1758_v19 = vld [vmem:[%s2438_s1 + $0x4] sm:$0xf0]  ;;  %1825 = vset.pattern.permute.xlu0 %v1854_v20  ;;  %v1029_v25 = vld [vmem:[%s2439_s2 + $0x10] sm:$0xff]  ;;  %v1708_v26 = vor.u32 %v1775_v14, %v1705_v15 }
  0x15   :  { %633 = vmatpush.bf16.msra.mxu1 %v1720_v57  ;;  %722 = vmatpush.bf16.msra.mxu2 %v1660_v58  ;;  %v1695_v23 = vld [vmem:[%s2438_s1 + $0x80] sm:$0xf]  ;;  %v1774_v24 = vld [vmem:[%s2438_s1 + $0x84] sm:$0xf0]  ;;  %v1757_v27 = vld [vmem:[%s2438_s1 + $0x4] sm:$0xf] }
  0x16   :  { %811 = vmatpush.bf16.msra.mxu3 %v1724_v62  ;;  %v1633_v28 = vld [vmem:[%s2438_s1 + $0x8] sm:$0xf0]  ;;  %1125 = vperm.xlu0 %1825, %v1027_v16  }
  0x18   :  { %545 = vmatpush.bf16.msra.mxu0 %v1648_v4 }
  0x19   :  { %634 = vmatpush.bf16.msra.mxu1 %v1712_v5  ;;  %723 = vmatpush.bf16.msra.mxu2 %v1652_v6 }
  0x1a   :  { %812 = vmatpush.bf16.msra.mxu3 %v1716_v10 }
  0x1b   :  { %9 = vsyncpa [#allocation4], 0  ;;  %v1773_v29 = vld [vmem:[%s2438_s1 + $0x84] sm:$0xf]  ;;  %v1697_v30 = vld [vmem:[%s2438_s1 + $0x88] sm:$0xf0]  ;;  %1826 = vset.pattern.permute.xlu1 %v1854_v20  ;;  %1827 = vset.pattern.permute.xlu2 %v1854_v20  ;;  %v1632_v31 = vor.u32 %v1758_v19, %v1631_v18  ;;  %v1696_v34 = vor.u32 %v1774_v24, %v1695_v23  ;;  %v1636_v35 = vor.u32 %v1757_v27, %v1633_v28 }
  0x1c   :  { %546 = vmatpush.bf16.msra.mxu0 %v1640_v17  ;;  %v1503_v32 = vld [vmem:[%s2437_s0] sm:$0xf]  ;;  %v1790_v33 = vld [vmem:[%s2437_s0 + $0x4] sm:$0xf0]  ;;  %1135 = vperm.xlu1 %1826, %v1029_v25   ;;  %v1789_v36 = vld [vmem:[%s2437_s0 + $0x4] sm:$0xf]  ;;  %v1700_v38 = vor.u32 %v1773_v29, %v1697_v30 }
  0x1d   :  { %635 = vmatpush.bf16.msra.mxu1 %v1704_v21  ;;  %724 = vmatpush.bf16.msra.mxu2 %v1644_v22  ;;  %v1505_v37 = vld [vmem:[%s2437_s0 + $0x8] sm:$0xf0]  ;;  %v1504_v39 = vor.u32 %v1790_v33, %v1503_v32  ;;  %v1030_v42 = vld [vmem:[%s2439_s2 + $0x18] sm:$0xff]  ;;  %v1511_v43 = vld [vmem:[%s2437_s0 + $0x10] sm:$0xf]  ;;  %s1856_s17 = smov 256  }
  0x1e   :  { %813 = vmatpush.bf16.msra.mxu3 %v1708_v26  ;;  %v1028_v40 = vld [vmem:[%s2439_s2 + $0x8] sm:$0xff]  ;;  %v1508_v41 = vor.u32 %v1789_v36, %v1505_v37  ;;  %v1792_v44 = vld [vmem:[%s2437_s0 + $0x14] sm:$0xf0]  ;;  %v1791_v45 = vld [vmem:[%s2437_s0 + $0x14] sm:$0xf] }
  0x1f   :  { %1130 = vperm.xlu0 %1825, %v1028_v40   ;;  %v1513_v46 = vld [vmem:[%s2437_s0 + $0x18] sm:$0xf0]  ;;  %v1512_v47 = vor.u32 %v1792_v44, %v1511_v43  ;;  %v1519_v49 = vld [vmem:[%s2437_s0 + $0x20] sm:$0xf]  ;;  %v1794_v50 = vld [vmem:[%s2437_s0 + $0x24] sm:$0xf0] }
  0x20   :  { %547 = vmatpush.bf16.msra.mxu0 %v1632_v31  ;;  %v1516_v48 = vor.u32 %v1791_v45, %v1513_v46  ;;  %v1793_v51 = vld [vmem:[%s2437_s0 + $0x24] sm:$0xf]  ;;  %v1521_v52 = vld [vmem:[%s2437_s0 + $0x28] sm:$0xf0]  ;;  %v1520_v53 = vor.u32 %v1794_v50, %v1519_v49  ;;  %v1033_v55 = vld [vmem:[%s2439_s2 + $0x30] sm:$0xff] }
  0x21   :  { %636 = vmatpush.bf16.msra.mxu1 %v1696_v34  ;;  %725 = vmatpush.bf16.msra.mxu2 %v1636_v35  ;;  %v1524_v54 = vor.u32 %v1793_v51, %v1521_v52  ;;  %v1031_v56 = vld [vmem:[%s2439_s2 + $0x20] sm:$0xff]  ;;  %v1034_v57 = vld [vmem:[%s2439_s2 + $0x38] sm:$0xff]  ;;  %v1032_v58 = vld [vmem:[%s2439_s2 + $0x28] sm:$0xff] }
  0x22   :  { %814 = vmatpush.bf16.msra.mxu3 %v1700_v38  ;;  %1145 = vperm.xlu2 %1827, %v1031_v56   ;;  %v1527_v59 = vld [vmem:[%s2437_s0 + $0x30] sm:$0xf]  ;;  %v1796_v60 = vld [vmem:[%s2437_s0 + $0x34] sm:$0xf0]  ;;  %v1795_v61 = vld [vmem:[%s2437_s0 + $0x34] sm:$0xf] }
  0x23   :  { %548 = vmatmul.bf16.vlgmr.msra.gmra.mxu0 %v1504_v39  ;;  %v1529_v62 = vld [vmem:[%s2437_s0 + $0x38] sm:$0xf0]  ;;  %v1528_v63 = vor.u32 %v1796_v60, %v1527_v59  ;;  %v1036_v1 = vld [vmem:[%s2439_s2 + $0x48] sm:$0xff]  ;;  %v1535_v2 = vld [vmem:[%s2437_s0 + $0x40] sm:$0xf] }
  0x24   :  { %637 = vmatmul.bf16.vlgmr.msra.gmra.mxu1 %v1508_v41  ;;  %726 = vmatmul.bf16.vlgmr.msra.gmra.mxu2 %v1504_v39  ;;  %v1532_v0 = vor.u32 %v1795_v61, %v1529_v62  ;;  %v1798_v3 = vld [vmem:[%s2437_s0 + $0x44] sm:$0xf0]  ;;  %v1797_v4 = vld [vmem:[%s2437_s0 + $0x44] sm:$0xf]  ;;  %v1537_v5 = vld [vmem:[%s2437_s0 + $0x48] sm:$0xf0] }
  0x25   :  { %815 = vmatmul.bf16.vlgmr.msra.gmra.mxu3 %v1508_v41  ;;  %1140 = vperm.xlu1 %1826, %v1030_v42   ;;  %v1536_v6 = vor.u32 %v1798_v3, %v1535_v2  ;;  %v1540_v7 = vor.u32 %v1797_v4, %v1537_v5  ;;  %v1037_v8 = vld [vmem:[%s2439_s2 + $0x50] sm:$0xff]  ;;  %v1035_v9 = vld [vmem:[%s2439_s2 + $0x40] sm:$0xff]  ;;  %v1800_v11 = vld [vmem:[%s2437_s0 + $0x54] sm:$0xf0] }
  0x26   :  { %v1543_v10 = vld [vmem:[%s2437_s0 + $0x50] sm:$0xf]  ;;  %v1799_v12 = vld [vmem:[%s2437_s0 + $0x54] sm:$0xf]  ;;  %v1545_v13 = vld [vmem:[%s2437_s0 + $0x58] sm:$0xf0] }
  0x27   :  { %1155 = vperm.xlu0 %1825, %v1033_v55   ;;  %v1544_v14 = vor.u32 %v1800_v11, %v1543_v10  ;;  %v1548_v15 = vor.u32 %v1799_v12, %v1545_v13  ;;  %v1039_v16 = vld [vmem:[%s2439_s2 + $0x60] sm:$0xff]  ;;  %v1040_v17 = vld [vmem:[%s2439_s2 + $0x68] sm:$0xff]  ;;  %v1038_v18 = vld [vmem:[%s2439_s2 + $0x58] sm:$0xff] }
  0x28   :  { %v1551_v19 = vld [vmem:[%s2437_s0 + $0x60] sm:$0xf]  ;;  %v1802_v20 = vld [vmem:[%s2437_s0 + $0x64] sm:$0xf0]  ;;  %v1801_v21 = vld [vmem:[%s2437_s0 + $0x64] sm:$0xf] }
  0x29   :  { %v1553_v22 = vld [vmem:[%s2437_s0 + $0x68] sm:$0xf0]  ;;  %v1552_v23 = vor.u32 %v1802_v20, %v1551_v19  ;;  %v1042_v25 = vld [vmem:[%s2439_s2 + $0x78] sm:$0xff]  ;;  %v1559_v26 = vld [vmem:[%s2437_s0 + $0x70] sm:$0xf] }
  0x2a   :  { %1150 = vperm.xlu2 %1827, %v1032_v58   ;;  %v1556_v24 = vor.u32 %v1801_v21, %v1553_v22  ;;  %v1804_v27 = vld [vmem:[%s2437_s0 + $0x74] sm:$0xf0]  ;;  %v1803_v28 = vld [vmem:[%s2437_s0 + $0x74] sm:$0xf]  ;;  %v1561_v29 = vld [vmem:[%s2437_s0 + $0x78] sm:$0xf0] }
  0x2b   :  { %v1560_v30 = vor.u32 %v1804_v27, %v1559_v26  ;;  %v1564_v31 = vor.u32 %v1803_v28, %v1561_v29  ;;  %v1043_v32 = vld [vmem:[%s2439_s2 + $0x80] sm:$0xff]  ;;  %v1806_v34 = vld [vmem:[%s2437_s0 + $0x84] sm:$0xf0]  ;;  %v1569_v36 = vld [vmem:[%s2437_s0 + $0x88] sm:$0xf0] }
  0x2c   :  { %v1567_v33 = vld [vmem:[%s2437_s0 + $0x80] sm:$0xf]  ;;  %v1805_v35 = vld [vmem:[%s2437_s0 + $0x84] sm:$0xf]  ;;  %v1041_v40 = vld [vmem:[%s2439_s2 + $0x70] sm:$0xff] }
  0x2d   :  { %1160 = vperm.xlu1 %1826, %v1034_v57   ;;  %v1347_v37 = vld [vmem:[%s2440_s3] sm:$0x3]  ;;  %v1568_v39 = vor.u32 %v1806_v34, %v1567_v33  ;;  %v1046_v41 = vld [vmem:[%s2439_s2 + $0x98] sm:$0xff]  ;;  %v1045_v42 = vld [vmem:[%s2439_s2 + $0x90] sm:$0xff]  ;;  %v1572_v44 = vor.u32 %v1805_v35, %v1569_v36  ;;  %s1487_s3 = sshll.u32 %s2441_s4, 4  ;;  %s1488_s3 = int_to_ptr.hbm [resolvable:$true] %s1487_s3 }
  0x2e   :  { %v1049_v51 = vld [vmem:[%s2439_s2 + $0xb0] sm:$0xff]  ;;  %v1048_v52 = vld [vmem:[%s2439_s2 + $0xa8] sm:$0xff]  ;;  %v2252_v56 = vperm.slane %v1347_v37, 1  ;;  %v1577_v2 = vld [vmem:[%s2437_s0 + $0x98] sm:$0xf0] }
  0x2f   :  { %1170 = vperm.xlu0 %1825, %v1036_v1   ;;  %v1575_v62 = vld [vmem:[%s2437_s0 + $0x90] sm:$0xf]  ;;  %v1807_v1 = vld [vmem:[%s2437_s0 + $0x94] sm:$0xf]  ;;  %v1055_v21 = vld [vmem:[%s2439_s2 + $0xe0] sm:$0xff] }
  0x30   :  { %v1580_v11 = vor.u32 %v1807_v1, %v1577_v2  ;;  %v1054_v22 = vld [vmem:[%s2439_s2 + $0xd8] sm:$0xff]  ;;  %v1809_v34 = vld [vmem:[%s2437_s0 + $0xa4] sm:$0xf]  ;;  %v1585_v35 = vld [vmem:[%s2437_s0 + $0xa8] sm:$0xf0] }
  0x31   :  { %v1812_v1 = vld [vmem:[%s2437_s0 + $0xb4] sm:$0xf0] }
  0x32   :  { %1165 = vperm.xlu2 %1827, %v1035_v9  }
  0x33   :  { %553 = vmatmul.bf16.gmra.mxu0 %v1512_v47 }
  0x34   :  { %642 = vmatmul.bf16.gmra.mxu1 %v1516_v48  ;;  %731 = vmatmul.bf16.gmra.mxu2 %v1512_v47  ;;  %v2243_v47 = vperm.slane %v1347_v37, 0 }
  0x35   :  { %820 = vmatmul.bf16.gmra.mxu3 %v1516_v48  ;;  %1175 = vperm.xlu1 %1826, %v1037_v8   ;;  %v1051_v8 = vld [vmem:[%s2439_s2 + $0xc0] sm:$0xff] }
  0x37   :  { %1185 = vperm.xlu0 %1825, %v1039_v16  }
  0x3a   :  { %1180 = vperm.xlu2 %1827, %v1038_v18  }
  0x3d   :  { %1190 = vperm.xlu1 %1826, %v1040_v17  }
  0x3f   :  { %1200 = vperm.xlu0 %1825, %v1042_v25  }
  0x42   :  { %1195 = vperm.xlu2 %1827, %v1041_v40   ;;  %v1058_v40 = vld [vmem:[%s2439_s2 + $0xf8] sm:$0xff] }
  0x43   :  { %558 = vmatmul.bf16.gmra.mxu0 %v1520_v53 }
  0x44   :  { %647 = vmatmul.bf16.gmra.mxu1 %v1524_v54  ;;  %736 = vmatmul.bf16.gmra.mxu2 %v1520_v53 }
  0x45   :  { %825 = vmatmul.bf16.gmra.mxu3 %v1524_v54  ;;  %1205 = vperm.xlu1 %1826, %v1043_v32   ;;  %v1810_v32 = vld [vmem:[%s2437_s0 + $0xa4] sm:$0xf0] }
  0x47   :  { %1215 = vperm.xlu0 %1825, %v1045_v42  }
  0x4d   :  { %1220 = vperm.xlu1 %1826, %v1046_v41   ;;  %v1057_v41 = vld [vmem:[%s2439_s2 + $0xf0] sm:$0xff] }
  0x4f   :  { %1230 = vperm.xlu0 %1825, %v1048_v52  }
  0x53   :  { %563 = vmatmul.bf16.gmra.mxu0 %v1528_v63 }
  0x54   :  { %652 = vmatmul.bf16.gmra.mxu1 %v1532_v0  ;;  %741 = vmatmul.bf16.gmra.mxu2 %v1528_v63  ;;  %v1808_v63 = vld [vmem:[%s2437_s0 + $0x94] sm:$0xf0] }
  0x55   :  { %830 = vmatmul.bf16.gmra.mxu3 %v1532_v0  ;;  %1235 = vperm.xlu1 %1826, %v1049_v51  }
  0x57   :  { %1245 = vperm.xlu0 %1825, %v1051_v8   ;;  %v1050_v8 = vld [vmem:[%s2439_s2 + $0xb8] sm:$0xff] }
  0x5f   :  { %1260 = vperm.xlu0 %1825, %v1054_v22  }
  0x63   :  { %568 = vmatmul.bf16.gmra.mxu0 %v1536_v6 }
  0x64   :  { %657 = vmatmul.bf16.gmra.mxu1 %v1540_v7  ;;  %746 = vmatmul.bf16.gmra.mxu2 %v1536_v6  ;;  %v1576_v6 = vor.u32 %v1808_v63, %v1575_v62 }
  0x65   :  { %835 = vmatmul.bf16.gmra.mxu3 %v1540_v7  ;;  %v1052_v7 = vld [vmem:[%s2439_s2 + $0xc8] sm:$0xff] }
  0x66   :  { %1250 = vperm.xlu1 %1826, %v1052_v7  }
  0x67   :  { %1275 = vperm.xlu0 %1825, %v1057_v41  }
  0x6e   :  { %1265 = vperm.xlu1 %1826, %v1055_v21   ;;  %v1053_v21 = vld [vmem:[%s2439_s2 + $0xd0] sm:$0xff] }
  0x73   :  { %573 = vmatmul.bf16.gmra.mxu0 %v1544_v14 }
  0x74   :  { %662 = vmatmul.bf16.gmra.mxu1 %v1548_v15  ;;  %751 = vmatmul.bf16.gmra.mxu2 %v1544_v14  ;;  %v1044_v14 = vld [vmem:[%s2439_s2 + $0x88] sm:$0xff] }
  0x75   :  { %840 = vmatmul.bf16.gmra.mxu3 %v1548_v15  ;;  %1210 = vperm.xlu2 %1827, %v1044_v14  }
  0x76   :  { %1280 = vperm.xlu1 %1826, %v1058_v40  }
  0x83   :  { %578 = vmatmul.bf16.gmra.mxu0 %v1552_v23 }
  0x84   :  { %667 = vmatmul.bf16.gmra.mxu1 %v1556_v24  ;;  %756 = vmatmul.bf16.gmra.mxu2 %v1552_v23 }
  0x85   :  { %845 = vmatmul.bf16.gmra.mxu3 %v1556_v24 }
  0x88   :  { %v1126_v38 = vpop.permute.xlu0 %1125 }
  0x8e   :  { %v1136_v5 = vpop.permute.xlu1 %1135 }
  0x91   :  { %v1131_v58 = vpop.permute.xlu0 %1130 }
  0x93   :  { %583 = vmatmul.bf16.gmra.mxu0 %v1560_v30 }
  0x94   :  { %672 = vmatmul.bf16.gmra.mxu1 %v1564_v31  ;;  %761 = vmatmul.bf16.gmra.mxu2 %v1560_v30 }
  0x95   :  { %850 = vmatmul.bf16.gmra.mxu3 %v1564_v31  ;;  %v1583_v31 = vld [vmem:[%s2437_s0 + $0xa0] sm:$0xf] }
  0x97   :  { %v1141_v27 = vpop.permute.xlu1 %1140 }
  0x99   :  { %v1156_v14 = vpop.permute.xlu0 %1155 }
  0xa0   :  { %v549_v43 = vpop.f32.mrf.mxu0 }
  0xa1   :  { %v638_v45 = vpop.f32.mrf.mxu1 }
  0xa2   :  { %v639_v46 = vadd.f32 %v638_v45, %v549_v43 }
  0xa3   :  { %588 = vmatmul.bf16.gmra.mxu0 %v1568_v39 }
  0xa4   :  { %v1283_v48 = vmul.f32 %v1126_v38, %v639_v46  ;;  %677 = vmatmul.bf16.gmra.mxu1 %v1572_v44  ;;  %766 = vmatmul.bf16.gmra.mxu2 %v1568_v39  ;;  %v1584_v39 = vor.u32 %v1810_v32, %v1583_v31  ;;  %v1814_v31 = vld [vmem:[%s2437_s0 + $0xc4] sm:$0xf0] }
  0xa5   :  { %855 = vmatmul.bf16.gmra.mxu3 %v1572_v44  ;;  %v1588_v44 = vor.u32 %v1809_v34, %v1585_v35  ;;  %v1601_v34 = vld [vmem:[%s2437_s0 + $0xc8] sm:$0xf0] }
  0xa6   :  { %v1353_v49 = vadd.f32 %v2243_v47, %v1283_v48 }
  0xa7   :  { %v727_v50 = vpop.f32.mrf.mxu2 }
  0xa8   :  { %1417 = vst [vmem:[#allocation3] sm:$0xff] %v1353_v49  ;;  %v816_v53 = vpop.f32.mrf.mxu3  ;;  %v551_v54 = vpop.f32.mrf.mxu0 }
  0xa9   :  { %v817_v55 = vadd.f32 %v816_v53, %v727_v50  ;;  %v640_v57 = vpop.f32.mrf.mxu1 }
  0xaa   :  { %v641_v59 = vadd.f32 %v640_v57, %v551_v54  ;;  %v1047_v54 = vld [vmem:[%s2439_s2 + $0xa0] sm:$0xff] }
  0xab   :  { %v1284_v60 = vmul.f32 %v1126_v38, %v817_v55  ;;  %v1146_v38 = vpop.permute.xlu2 %1145  ;;  %1225 = vperm.xlu2 %1827, %v1047_v54  }
  0xac   :  { %v1285_v61 = vmul.f32 %v1131_v58, %v641_v59 }
  0xad   :  { %v1354_v0 = vadd.f32 %v2252_v56, %v1284_v60 }
  0xae   :  { %v1355_v3 = vadd.f32 %v2243_v47, %v1285_v61 }
  0xaf   :  { %1418 = vst [vmem:[#allocation3 + $0x8] sm:$0xff] %v1354_v0  ;;  %v729_v4 = vpop.f32.mrf.mxu2  ;;  %v1591_v0 = vld [vmem:[%s2437_s0 + $0xb0] sm:$0xf] }
  0xb0   :  { %1419 = vst [vmem:[#allocation3 + $0x10] sm:$0xff] %v1355_v3  ;;  %v818_v9 = vpop.f32.mrf.mxu3  ;;  %v554_v10 = vpop.f32.mrf.mxu0  ;;  %v1811_v3 = vld [vmem:[%s2437_s0 + $0xb4] sm:$0xf]  ;;  %v1592_v7 = vor.u32 %v1812_v1, %v1591_v0  ;;  %v1609_v1 = vld [vmem:[%s2437_s0 + $0xd8] sm:$0xf0] }
  0xb1   :  { %v819_v12 = vadd.f32 %v818_v9, %v729_v4  ;;  %v643_v13 = vpop.f32.mrf.mxu1  ;;  %v1593_v4 = vld [vmem:[%s2437_s0 + $0xb8] sm:$0xf0]  ;;  %v1815_v0 = vld [vmem:[%s2437_s0 + $0xd4] sm:$0xf] }
  0xb2   :  { %v644_v15 = vadd.f32 %v643_v13, %v554_v10 }
  0xb3   :  { %v1286_v16 = vmul.f32 %v1131_v58, %v819_v12  ;;  %593 = vmatmul.bf16.gmra.mxu0 %v1576_v6  ;;  %v1151_v60 = vpop.permute.xlu2 %1150  ;;  %1240 = vperm.xlu2 %1827, %v1050_v8  }
  0xb4   :  { %v1287_v17 = vmul.f32 %v1136_v5, %v644_v15  ;;  %682 = vmatmul.bf16.gmra.mxu1 %v1580_v11  ;;  %771 = vmatmul.bf16.gmra.mxu2 %v1576_v6 }
  0xb5   :  { %v1356_v18 = vadd.f32 %v2252_v56, %v1286_v16  ;;  %860 = vmatmul.bf16.gmra.mxu3 %v1580_v11  ;;  %v1596_v11 = vor.u32 %v1811_v3, %v1593_v4 }
  0xb6   :  { %v1357_v19 = vadd.f32 %v2243_v47, %v1287_v17 }
  0xb7   :  { %1420 = vst [vmem:[#allocation3 + $0x18] sm:$0xff] %v1356_v18  ;;  %v732_v20 = vpop.f32.mrf.mxu2 }
  0xb8   :  { %1421 = vst [vmem:[#allocation3 + $0x20] sm:$0xff] %v1357_v19  ;;  %v821_v23 = vpop.f32.mrf.mxu3  ;;  %v556_v24 = vpop.f32.mrf.mxu0 }
  0xb9   :  { %v822_v25 = vadd.f32 %v821_v23, %v732_v20  ;;  %v645_v26 = vpop.f32.mrf.mxu1 }
  0xba   :  { %v646_v28 = vadd.f32 %v645_v26, %v556_v24  ;;  %v1161_v26 = vpop.permute.xlu1 %1160 }
  0xbb   :  { %v1288_v29 = vmul.f32 %v1136_v5, %v822_v25  ;;  %1255 = vperm.xlu2 %1827, %v1053_v21  }
  0xbc   :  { %v1289_v30 = vmul.f32 %v1141_v27, %v646_v28 }
  0xbd   :  { %v1358_v33 = vadd.f32 %v2252_v56, %v1288_v29 }
  0xbe   :  { %v1359_v36 = vadd.f32 %v2243_v47, %v1289_v30  ;;  %v1599_v30 = vld [vmem:[%s2437_s0 + $0xc0] sm:$0xf] }
  0xbf   :  { %1422 = vst [vmem:[#allocation3 + $0x28] sm:$0xff] %v1358_v33  ;;  %v734_v37 = vpop.f32.mrf.mxu2  ;;  %v1813_v33 = vld [vmem:[%s2437_s0 + $0xc4] sm:$0xf] }
  0xc0   :  { %1423 = vst [vmem:[#allocation3 + $0x30] sm:$0xff] %v1359_v36  ;;  %v823_v42 = vpop.f32.mrf.mxu3  ;;  %v559_v43 = vpop.f32.mrf.mxu0  ;;  %v1604_v41 = vor.u32 %v1813_v33, %v1601_v34 }
  0xc1   :  { %v824_v45 = vadd.f32 %v823_v42, %v734_v37  ;;  %v648_v46 = vpop.f32.mrf.mxu1  ;;  %v1600_v37 = vor.u32 %v1814_v31, %v1599_v30 }
  0xc2   :  { %v649_v48 = vadd.f32 %v648_v46, %v559_v43 }
  0xc3   :  { %v1290_v49 = vmul.f32 %v1141_v27, %v824_v45  ;;  %598 = vmatmul.bf16.gmra.mxu0 %v1584_v39 }
  0xc4   :  { %v1291_v50 = vmul.f32 %v1146_v38, %v649_v48  ;;  %687 = vmatmul.bf16.gmra.mxu1 %v1588_v44  ;;  %776 = vmatmul.bf16.gmra.mxu2 %v1584_v39 }
  0xc5   :  { %v1360_v51 = vadd.f32 %v2252_v56, %v1290_v49  ;;  %865 = vmatmul.bf16.gmra.mxu3 %v1588_v44  ;;  %v1166_v44 = vpop.permute.xlu2 %1165 }
  0xc6   :  { %v1361_v52 = vadd.f32 %v2243_v47, %v1291_v50 }
  0xc7   :  { %1424 = vst [vmem:[#allocation3 + $0x38] sm:$0xff] %v1360_v51  ;;  %v737_v53 = vpop.f32.mrf.mxu2 }
  0xc8   :  { %1425 = vst [vmem:[#allocation3 + $0x40] sm:$0xff] %v1361_v52  ;;  %v826_v55 = vpop.f32.mrf.mxu3  ;;  %v561_v57 = vpop.f32.mrf.mxu0 }
  0xc9   :  { %v827_v58 = vadd.f32 %v826_v55, %v737_v53  ;;  %v650_v59 = vpop.f32.mrf.mxu1 }
  0xca   :  { %v651_v61 = vadd.f32 %v650_v59, %v561_v57  ;;  %v1171_v57 = vpop.permute.xlu0 %1170 }
  0xcb   :  { %v1292_v62 = vmul.f32 %v1146_v38, %v827_v58  ;;  %v1056_v38 = vld [vmem:[%s2439_s2 + $0xe8] sm:$0xff]  ;;  %s1857_s2 = smov 16  }
  0xcc   :  { %v1293_v63 = vmul.f32 %v1151_v60, %v651_v61  ;;  %1270 = vperm.xlu2 %1827, %v1056_v38   ;;  %v1607_v61 = vld [vmem:[%s2437_s0 + $0xd0] sm:$0xf] }
  0xcd   :  { %v1362_v2 = vadd.f32 %v2252_v56, %v1292_v62  ;;  %v1816_v62 = vld [vmem:[%s2437_s0 + $0xd4] sm:$0xf0]  ;;  %v1181_v21 = vpop.permute.xlu2 %1180 }
  0xce   :  { %v1363_v5 = vadd.f32 %v2243_v47, %v1293_v63  ;;  %v1608_v4 = vor.u32 %v1816_v62, %v1607_v61 }
  0xcf   :  { %1426 = vst [vmem:[#allocation3 + $0x48] sm:$0xff] %v1362_v2  ;;  %v739_v6 = vpop.f32.mrf.mxu2 }
  0xd0   :  { %1427 = vst [vmem:[#allocation3 + $0x50] sm:$0xff] %v1363_v5  ;;  %v828_v9 = vpop.f32.mrf.mxu3  ;;  %v564_v10 = vpop.f32.mrf.mxu0 }
  0xd1   :  { %v829_v12 = vadd.f32 %v828_v9, %v739_v6  ;;  %v653_v13 = vpop.f32.mrf.mxu1 }
  0xd2   :  { %v654_v15 = vadd.f32 %v653_v13, %v564_v10  ;;  %v1176_v10 = vpop.permute.xlu1 %1175  ;;  %v1186_v38 = vpop.permute.xlu0 %1185 }
  0xd3   :  { %v1294_v16 = vmul.f32 %v1151_v60, %v829_v12  ;;  %603 = vmatmul.bf16.gmra.mxu0 %v1592_v7 }
  0xd4   :  { %692 = vmatmul.bf16.gmra.mxu1 %v1596_v11  ;;  %781 = vmatmul.bf16.gmra.mxu2 %v1592_v7  ;;  %v1295_v17 = vmul.f32 %v1156_v14, %v654_v15  ;;  %v1612_v7 = vor.u32 %v1815_v0, %v1609_v1 }
  0xd5   :  { %v1364_v18 = vadd.f32 %v2252_v56, %v1294_v16  ;;  %870 = vmatmul.bf16.gmra.mxu3 %v1596_v11 }
  0xd6   :  { %v1365_v19 = vadd.f32 %v2243_v47, %v1295_v17 }
  0xd7   :  { %1428 = vst [vmem:[#allocation3 + $0x58] sm:$0xff] %v1364_v18  ;;  %v742_v20 = vpop.f32.mrf.mxu2 }
  0xd8   :  { %v831_v22 = vpop.f32.mrf.mxu3  ;;  %1429 = vst [vmem:[#allocation3 + $0x60] sm:$0xff] %v1365_v19  ;;  %v566_v23 = vpop.f32.mrf.mxu0 }
  0xd9   :  { %v832_v24 = vadd.f32 %v831_v22, %v742_v20  ;;  %v655_v25 = vpop.f32.mrf.mxu1 }
  0xda   :  { %v656_v27 = vadd.f32 %v655_v25, %v566_v23  ;;  %v1615_v25 = vld [vmem:[%s2437_s0 + $0xe0] sm:$0xf] }
  0xdb   :  { %v1296_v28 = vmul.f32 %v1156_v14, %v832_v24 }
  0xdc   :  { %v1297_v29 = vmul.f32 %v1161_v26, %v656_v27 }
  0xdd   :  { %v1366_v32 = vadd.f32 %v2252_v56, %v1296_v28  ;;  %v1817_v28 = vld [vmem:[%s2437_s0 + $0xe4] sm:$0xf] }
  0xde   :  { %v1367_v35 = vadd.f32 %v2243_v47, %v1297_v29  ;;  %v1617_v29 = vld [vmem:[%s2437_s0 + $0xe8] sm:$0xf0] }
  0xdf   :  { %1430 = vst [vmem:[#allocation3 + $0x68] sm:$0xff] %v1366_v32  ;;  %v744_v36 = vpop.f32.mrf.mxu2 }
  0xe0   :  { %1431 = vst [vmem:[#allocation3 + $0x70] sm:$0xff] %v1367_v35  ;;  %v833_v39 = vpop.f32.mrf.mxu3  ;;  %v569_v40 = vpop.f32.mrf.mxu0  ;;  %v1620_v35 = vor.u32 %v1817_v28, %v1617_v29 }
  0xe1   :  { %v834_v42 = vadd.f32 %v833_v39, %v744_v36  ;;  %v658_v43 = vpop.f32.mrf.mxu1 }
  0xe2   :  { %v659_v45 = vadd.f32 %v658_v43, %v569_v40 }
  0xe3   :  { %v1298_v46 = vmul.f32 %v1161_v26, %v834_v42  ;;  %608 = vmatmul.bf16.gmra.mxu0 %v1600_v37  ;;  %v1818_v26 = vld [vmem:[%s2437_s0 + $0xe4] sm:$0xf0] }
  0xe4   :  { %697 = vmatmul.bf16.gmra.mxu1 %v1604_v41  ;;  %786 = vmatmul.bf16.gmra.mxu2 %v1600_v37  ;;  %v1299_v48 = vmul.f32 %v1166_v44, %v659_v45  ;;  %v1616_v32 = vor.u32 %v1818_v26, %v1615_v25 }
  0xe5   :  { %v1368_v49 = vadd.f32 %v2252_v56, %v1298_v46  ;;  %875 = vmatmul.bf16.gmra.mxu3 %v1604_v41 }
  0xe6   :  { %v1369_v50 = vadd.f32 %v2243_v47, %v1299_v48 }
  0xe7   :  { %1432 = vst [vmem:[#allocation3 + $0x78] sm:$0xff] %v1368_v49  ;;  %v747_v51 = vpop.f32.mrf.mxu2 }
  0xe8   :  { %v836_v52 = vpop.f32.mrf.mxu3  ;;  %1433 = vst [vmem:[#allocation3 + $0x80] sm:$0xff] %v1369_v50  ;;  %v571_v53 = vpop.f32.mrf.mxu0 }
  0xe9   :  { %v837_v54 = vadd.f32 %v836_v52, %v747_v51  ;;  %v660_v55 = vpop.f32.mrf.mxu1  ;;  %v1191_v50 = vpop.permute.xlu1 %1190 }
  0xea   :  { %v661_v58 = vadd.f32 %v660_v55, %v571_v53  ;;  %v1820_v55 = vld [vmem:[%s2437_s0 + $0xf4] sm:$0xf0] }
  0xeb   :  { %v1300_v59 = vmul.f32 %v1166_v44, %v837_v54  ;;  %v1623_v54 = vld [vmem:[%s2437_s0 + $0xf0] sm:$0xf] }
  0xec   :  { %v1301_v60 = vmul.f32 %v1171_v57, %v661_v58  ;;  %v1819_v58 = vld [vmem:[%s2437_s0 + $0xf4] sm:$0xf]  ;;  %v1624_v62 = vor.u32 %v1820_v55, %v1623_v54 }
  0xed   :  { %v1370_v63 = vadd.f32 %v2252_v56, %v1300_v59  ;;  %v1625_v59 = vld [vmem:[%s2437_s0 + $0xf8] sm:$0xf0]  ;;  %s1855_s0 = smov [#allocation3]  }
  0xee   :  { %v1371_v2 = vadd.f32 %v2243_v47, %v1301_v60  ;;  %v1628_v1 = vor.u32 %v1819_v58, %v1625_v59  ;;  %s1485_s14 = sshll.u32 %s1855_s0, 4  ;;  %s1486_s14 = int_to_ptr.vmem [resolvable:$true] %s1485_s14 }
  0xef   :  { %1434 = vst [vmem:[#allocation3 + $0x88] sm:$0xff] %v1370_v63  ;;  %v749_v3 = vpop.f32.mrf.mxu2 }
  0xf0   :  { %1435 = vst [vmem:[#allocation3 + $0x90] sm:$0xff] %v1371_v2  ;;  %v838_v5 = vpop.f32.mrf.mxu3  ;;  %v574_v6 = vpop.f32.mrf.mxu0 }
  0xf1   :  { %v839_v8 = vadd.f32 %v838_v5, %v749_v3  ;;  %v663_v9 = vpop.f32.mrf.mxu1  ;;  %v1206_v26 = vpop.permute.xlu1 %1205 }
  0xf2   :  { %v664_v11 = vadd.f32 %v663_v9, %v574_v6 }
  0xf3   :  { %v1302_v12 = vmul.f32 %v1171_v57, %v839_v8  ;;  %613 = vmatmul.bf16.gmra.mxu0 %v1608_v4 }
  0xf4   :  { %702 = vmatmul.bf16.gmra.mxu1 %v1612_v7  ;;  %791 = vmatmul.bf16.gmra.mxu2 %v1608_v4  ;;  %v1303_v13 = vmul.f32 %v1176_v10, %v664_v11  ;;  %v1196_v4 = vpop.permute.xlu2 %1195 }
  0xf5   :  { %v1372_v14 = vadd.f32 %v2252_v56, %v1302_v12  ;;  %880 = vmatmul.bf16.gmra.mxu3 %v1612_v7 }
  0xf6   :  { %v1373_v15 = vadd.f32 %v2243_v47, %v1303_v13 }
  0xf7   :  { %1436 = vst [vmem:[#allocation3 + $0x98] sm:$0xff] %v1372_v14  ;;  %v752_v16 = vpop.f32.mrf.mxu2 }
  0xf8   :  { %v841_v17 = vpop.f32.mrf.mxu3  ;;  %1437 = vst [vmem:[#allocation3 + $0xa0] sm:$0xff] %v1373_v15  ;;  %v576_v18 = vpop.f32.mrf.mxu0 }
  0xf9   :  { %v842_v19 = vadd.f32 %v841_v17, %v752_v16  ;;  %v665_v20 = vpop.f32.mrf.mxu1  ;;  %v1201_v15 = vpop.permute.xlu0 %1200 }
  0xfa   :  { %v666_v22 = vadd.f32 %v665_v20, %v576_v18 }
  0xfb   :  { %v1304_v23 = vmul.f32 %v1176_v10, %v842_v19 }
  0xfc   :  { %v1305_v24 = vmul.f32 %v1181_v21, %v666_v22 }
  0xfd   :  { %v1374_v27 = vadd.f32 %v2252_v56, %v1304_v23 }
  0xfe   :  { %v1375_v30 = vadd.f32 %v2243_v47, %v1305_v24 }
  0xff   :  { %1438 = vst [vmem:[#allocation3 + $0xa8] sm:$0xff] %v1374_v27  ;;  %v754_v31 = vpop.f32.mrf.mxu2 }
 0x100   :  { %1439 = vst [vmem:[#allocation3 + $0xb0] sm:$0xff] %v1375_v30  ;;  %v843_v33 = vpop.f32.mrf.mxu3  ;;  %v579_v34 = vpop.f32.mrf.mxu0 }
 0x101   :  { %v844_v36 = vadd.f32 %v843_v33, %v754_v31  ;;  %v668_v37 = vpop.f32.mrf.mxu1 }
 0x102   :  { %v669_v39 = vadd.f32 %v668_v37, %v579_v34  ;;  %v1211_v37 = vpop.permute.xlu2 %1210 }
 0x103   :  { %v1306_v40 = vmul.f32 %v1181_v21, %v844_v36  ;;  %618 = vmatmul.bf16.gmra.mxu0 %v1616_v32 }
 0x104   :  { %707 = vmatmul.bf16.gmra.mxu1 %v1620_v35  ;;  %796 = vmatmul.bf16.gmra.mxu2 %v1616_v32  ;;  %v1307_v41 = vmul.f32 %v1186_v38, %v669_v39 }
 0x105   :  { %v1376_v42 = vadd.f32 %v2252_v56, %v1306_v40  ;;  %885 = vmatmul.bf16.gmra.mxu3 %v1620_v35 }
 0x106   :  { %v1377_v43 = vadd.f32 %v2243_v47, %v1307_v41 }
 0x107   :  { %1440 = vst [vmem:[#allocation3 + $0xb8] sm:$0xff] %v1376_v42  ;;  %v757_v44 = vpop.f32.mrf.mxu2 }
 0x108   :  { %v846_v45 = vpop.f32.mrf.mxu3  ;;  %1441 = vst [vmem:[#allocation3 + $0xc0] sm:$0xff] %v1377_v43  ;;  %v581_v46 = vpop.f32.mrf.mxu0 }
 0x109   :  { %v847_v48 = vadd.f32 %v846_v45, %v757_v44  ;;  %v670_v49 = vpop.f32.mrf.mxu1 }
 0x10a   :  { %v671_v51 = vadd.f32 %v670_v49, %v581_v46 }
 0x10b   :  { %v1308_v52 = vmul.f32 %v1186_v38, %v847_v48 }
 0x10c   :  { %v1309_v53 = vmul.f32 %v1191_v50, %v671_v51  ;;  %v1216_v51 = vpop.permute.xlu0 %1215 }
 0x10d   :  { %v1378_v57 = vadd.f32 %v2252_v56, %v1308_v52 }
 0x10e   :  { %v1379_v60 = vadd.f32 %v2243_v47, %v1309_v53 }
 0x10f   :  { %1442 = vst [vmem:[#allocation3 + $0xc8] sm:$0xff] %v1378_v57  ;;  %v759_v61 = vpop.f32.mrf.mxu2 }
 0x110   :  { %1443 = vst [vmem:[#allocation3 + $0xd0] sm:$0xff] %v1379_v60  ;;  %v848_v63 = vpop.f32.mrf.mxu3  ;;  %v584_v0 = vpop.f32.mrf.mxu0 }
 0x111   :  { %v849_v2 = vadd.f32 %v848_v63, %v759_v61  ;;  %v673_v3 = vpop.f32.mrf.mxu1 }
 0x112   :  { %v674_v5 = vadd.f32 %v673_v3, %v584_v0 }
 0x113   :  { %v1310_v6 = vmul.f32 %v1191_v50, %v849_v2  ;;  %623 = vmatmul.bf16.gmra.mxu0 %v1624_v62 }
 0x114   :  { %712 = vmatmul.bf16.gmra.mxu1 %v1628_v1  ;;  %801 = vmatmul.bf16.gmra.mxu2 %v1624_v62  ;;  %v1311_v7 = vmul.f32 %v1196_v4, %v674_v5  ;;  %v1221_v62 = vpop.permute.xlu1 %1220 }
 0x115   :  { %v1380_v8 = vadd.f32 %v2252_v56, %v1310_v6  ;;  %890 = vmatmul.bf16.gmra.mxu3 %v1628_v1 }
 0x116   :  { %v1381_v9 = vadd.f32 %v2243_v47, %v1311_v7 }
 0x117   :  { %1444 = vst [vmem:[#allocation3 + $0xd8] sm:$0xff] %v1380_v8  ;;  %v762_v10 = vpop.f32.mrf.mxu2 }
 0x118   :  { %v851_v11 = vpop.f32.mrf.mxu3  ;;  %1445 = vst [vmem:[#allocation3 + $0xe0] sm:$0xff] %v1381_v9  ;;  %v586_v12 = vpop.f32.mrf.mxu0 }
 0x119   :  { %v852_v13 = vadd.f32 %v851_v11, %v762_v10  ;;  %v675_v14 = vpop.f32.mrf.mxu1  ;;  %v1226_v10 = vpop.permute.xlu2 %1225 }
 0x11a   :  { %v676_v16 = vadd.f32 %v675_v14, %v586_v12 }
 0x11b   :  { %v1312_v17 = vmul.f32 %v1196_v4, %v852_v13 }
 0x11c   :  { %v1313_v18 = vmul.f32 %v1201_v15, %v676_v16 }
 0x11d   :  { %v1382_v19 = vadd.f32 %v2252_v56, %v1312_v17 }
 0x11e   :  { %v1383_v20 = vadd.f32 %v2243_v47, %v1313_v18 }
 0x11f   :  { %1446 = vst [vmem:[#allocation3 + $0xe8] sm:$0xff] %v1382_v19  ;;  %v764_v21 = vpop.f32.mrf.mxu2 }
 0x120   :  { %1447 = vst [vmem:[#allocation3 + $0xf0] sm:$0xff] %v1383_v20  ;;  %v853_v22 = vpop.f32.mrf.mxu3  ;;  %v589_v23 = vpop.f32.mrf.mxu0 }
 0x121   :  { %v854_v24 = vadd.f32 %v853_v22, %v764_v21  ;;  %v678_v25 = vpop.f32.mrf.mxu1  ;;  %v1231_v20 = vpop.permute.xlu0 %1230 }
 0x122   :  { %v679_v27 = vadd.f32 %v678_v25, %v589_v23 }
 0x123   :  { %v1314_v28 = vmul.f32 %v1201_v15, %v854_v24 }
 0x124   :  { %v1315_v29 = vmul.f32 %v1206_v26, %v679_v27 }
 0x125   :  { %v1384_v30 = vadd.f32 %v2252_v56, %v1314_v28 }
 0x126   :  { %v1385_v31 = vadd.f32 %v2243_v47, %v1315_v29 }
 0x127   :  { %1448 = vst [vmem:[#allocation3 + $0xf8] sm:$0xff] %v1384_v30  ;;  %v767_v32 = vpop.f32.mrf.mxu2 }
 0x128   :  { %v856_v33 = vpop.f32.mrf.mxu3  ;;  %1449 = vst [vmem:[#allocation3 + $0x100] sm:$0xff] %v1385_v31  ;;  %v591_v34 = vpop.f32.mrf.mxu0 }
 0x129   :  { %v857_v35 = vadd.f32 %v856_v33, %v767_v32  ;;  %v680_v36 = vpop.f32.mrf.mxu1  ;;  %v1236_v31 = vpop.permute.xlu1 %1235 }
 0x12a   :  { %v681_v38 = vadd.f32 %v680_v36, %v591_v34 }
 0x12b   :  { %v1316_v39 = vmul.f32 %v1206_v26, %v857_v35 }
 0x12c   :  { %v1317_v40 = vmul.f32 %v1211_v37, %v681_v38 }
 0x12d   :  { %v1386_v41 = vadd.f32 %v2252_v56, %v1316_v39 }
 0x12e   :  { %v1387_v42 = vadd.f32 %v2243_v47, %v1317_v40 }
 0x12f   :  { %1450 = vst [vmem:[#allocation3 + $0x108] sm:$0xff] %v1386_v41  ;;  %v769_v43 = vpop.f32.mrf.mxu2 }
 0x130   :  { %1451 = vst [vmem:[#allocation3 + $0x110] sm:$0xff] %v1387_v42  ;;  %v858_v44 = vpop.f32.mrf.mxu3  ;;  %v594_v45 = vpop.f32.mrf.mxu0 }
 0x131   :  { %v859_v46 = vadd.f32 %v858_v44, %v769_v43  ;;  %v683_v48 = vpop.f32.mrf.mxu1  ;;  %v1241_v42 = vpop.permute.xlu2 %1240 }
 0x132   :  { %v684_v49 = vadd.f32 %v683_v48, %v594_v45 }
 0x133   :  { %v1318_v50 = vmul.f32 %v1211_v37, %v859_v46 }
 0x134   :  { %v1319_v52 = vmul.f32 %v1216_v51, %v684_v49 }
 0x135   :  { %v1388_v53 = vadd.f32 %v2252_v56, %v1318_v50 }
 0x136   :  { %v1389_v54 = vadd.f32 %v2243_v47, %v1319_v52 }
 0x137   :  { %1452 = vst [vmem:[#allocation3 + $0x118] sm:$0xff] %v1388_v53  ;;  %v772_v55 = vpop.f32.mrf.mxu2 }
 0x138   :  { %1453 = vst [vmem:[#allocation3 + $0x120] sm:$0xff] %v1389_v54  ;;  %v861_v57 = vpop.f32.mrf.mxu3  ;;  %v596_v58 = vpop.f32.mrf.mxu0 }
 0x139   :  { %v862_v59 = vadd.f32 %v861_v57, %v772_v55  ;;  %v685_v60 = vpop.f32.mrf.mxu1  ;;  %v1246_v54 = vpop.permute.xlu0 %1245 }
 0x13a   :  { %v686_v61 = vadd.f32 %v685_v60, %v596_v58 }
 0x13b   :  { %v1320_v63 = vmul.f32 %v1216_v51, %v862_v59 }
 0x13c   :  { %v1321_v0 = vmul.f32 %v1221_v62, %v686_v61 }
 0x13d   :  { %v1390_v1 = vadd.f32 %v2252_v56, %v1320_v63 }
 0x13e   :  { %v1391_v2 = vadd.f32 %v2243_v47, %v1321_v0 }
 0x13f   :  { %1454 = vst [vmem:[#allocation3 + $0x128] sm:$0xff] %v1390_v1  ;;  %v774_v3 = vpop.f32.mrf.mxu2 }
 0x140   :  { %1455 = vst [vmem:[#allocation3 + $0x130] sm:$0xff] %v1391_v2  ;;  %v863_v4 = vpop.f32.mrf.mxu3  ;;  %v599_v5 = vpop.f32.mrf.mxu0 }
 0x141   :  { %v864_v6 = vadd.f32 %v863_v4, %v774_v3  ;;  %v688_v7 = vpop.f32.mrf.mxu1  ;;  %v1251_v2 = vpop.permute.xlu1 %1250 }
 0x142   :  { %v689_v8 = vadd.f32 %v688_v7, %v599_v5 }
 0x143   :  { %v1322_v9 = vmul.f32 %v1221_v62, %v864_v6 }
 0x144   :  { %v1323_v11 = vmul.f32 %v1226_v10, %v689_v8 }
 0x145   :  { %v1392_v12 = vadd.f32 %v2252_v56, %v1322_v9 }
 0x146   :  { %v1393_v13 = vadd.f32 %v2243_v47, %v1323_v11 }
 0x147   :  { %1456 = vst [vmem:[#allocation3 + $0x138] sm:$0xff] %v1392_v12  ;;  %v777_v14 = vpop.f32.mrf.mxu2 }
 0x148   :  { %1457 = vst [vmem:[#allocation3 + $0x140] sm:$0xff] %v1393_v13  ;;  %v866_v15 = vpop.f32.mrf.mxu3  ;;  %v601_v16 = vpop.f32.mrf.mxu0 }
 0x149   :  { %v867_v17 = vadd.f32 %v866_v15, %v777_v14  ;;  %v690_v18 = vpop.f32.mrf.mxu1  ;;  %v1256_v13 = vpop.permute.xlu2 %1255 }
 0x14a   :  { %v691_v19 = vadd.f32 %v690_v18, %v601_v16 }
 0x14b   :  { %v1324_v21 = vmul.f32 %v1226_v10, %v867_v17 }
 0x14c   :  { %v1325_v22 = vmul.f32 %v1231_v20, %v691_v19 }
 0x14d   :  { %v1394_v23 = vadd.f32 %v2252_v56, %v1324_v21 }
 0x14e   :  { %v1395_v24 = vadd.f32 %v2243_v47, %v1325_v22 }
 0x14f   :  { %1458 = vst [vmem:[#allocation3 + $0x148] sm:$0xff] %v1394_v23  ;;  %v779_v25 = vpop.f32.mrf.mxu2 }
 0x150   :  { %1459 = vst [vmem:[#allocation3 + $0x150] sm:$0xff] %v1395_v24  ;;  %v868_v26 = vpop.f32.mrf.mxu3  ;;  %v604_v27 = vpop.f32.mrf.mxu0 }
 0x151   :  { %v869_v28 = vadd.f32 %v868_v26, %v779_v25  ;;  %v693_v29 = vpop.f32.mrf.mxu1  ;;  %v1261_v24 = vpop.permute.xlu0 %1260 }
 0x152   :  { %v694_v30 = vadd.f32 %v693_v29, %v604_v27 }
 0x153   :  { %v1326_v32 = vmul.f32 %v1231_v20, %v869_v28 }
 0x154   :  { %v1327_v33 = vmul.f32 %v1236_v31, %v694_v30 }
 0x155   :  { %v1396_v34 = vadd.f32 %v2252_v56, %v1326_v32 }
 0x156   :  { %v1397_v35 = vadd.f32 %v2243_v47, %v1327_v33 }
 0x157   :  { %1460 = vst [vmem:[#allocation3 + $0x158] sm:$0xff] %v1396_v34  ;;  %v782_v36 = vpop.f32.mrf.mxu2 }
 0x158   :  { %1461 = vst [vmem:[#allocation3 + $0x160] sm:$0xff] %v1397_v35  ;;  %v871_v37 = vpop.f32.mrf.mxu3  ;;  %v606_v38 = vpop.f32.mrf.mxu0 }
 0x159   :  { %v872_v39 = vadd.f32 %v871_v37, %v782_v36  ;;  %v695_v40 = vpop.f32.mrf.mxu1  ;;  %v1266_v35 = vpop.permute.xlu1 %1265 }
 0x15a   :  { %v696_v41 = vadd.f32 %v695_v40, %v606_v38 }
 0x15b   :  { %v1328_v43 = vmul.f32 %v1236_v31, %v872_v39 }
 0x15c   :  { %v1329_v44 = vmul.f32 %v1241_v42, %v696_v41 }
 0x15d   :  { %v1398_v45 = vadd.f32 %v2252_v56, %v1328_v43 }
 0x15e   :  { %v1399_v46 = vadd.f32 %v2243_v47, %v1329_v44 }
 0x15f   :  { %1462 = vst [vmem:[#allocation3 + $0x168] sm:$0xff] %v1398_v45  ;;  %v784_v48 = vpop.f32.mrf.mxu2 }
 0x160   :  { %1463 = vst [vmem:[#allocation3 + $0x170] sm:$0xff] %v1399_v46  ;;  %v873_v49 = vpop.f32.mrf.mxu3  ;;  %v609_v50 = vpop.f32.mrf.mxu0 }
 0x161   :  { %v874_v51 = vadd.f32 %v873_v49, %v784_v48  ;;  %v698_v52 = vpop.f32.mrf.mxu1  ;;  %v1271_v46 = vpop.permute.xlu2 %1270 }
 0x162   :  { %v699_v53 = vadd.f32 %v698_v52, %v609_v50 }
 0x163   :  { %v1330_v55 = vmul.f32 %v1241_v42, %v874_v51 }
 0x164   :  { %v1331_v57 = vmul.f32 %v1246_v54, %v699_v53 }
 0x165   :  { %v1400_v58 = vadd.f32 %v2252_v56, %v1330_v55 }
 0x166   :  { %v1401_v59 = vadd.f32 %v2243_v47, %v1331_v57 }
 0x167   :  { %1464 = vst [vmem:[#allocation3 + $0x178] sm:$0xff] %v1400_v58  ;;  %v787_v60 = vpop.f32.mrf.mxu2 }
 0x168   :  { %1465 = vst [vmem:[#allocation3 + $0x180] sm:$0xff] %v1401_v59  ;;  %v876_v61 = vpop.f32.mrf.mxu3  ;;  %v611_v62 = vpop.f32.mrf.mxu0 }
 0x169   :  { %v877_v63 = vadd.f32 %v876_v61, %v787_v60  ;;  %v700_v0 = vpop.f32.mrf.mxu1  ;;  %v1276_v59 = vpop.permute.xlu0 %1275 }
 0x16a   :  { %v701_v1 = vadd.f32 %v700_v0, %v611_v62 }
 0x16b   :  { %v1332_v3 = vmul.f32 %v1246_v54, %v877_v63 }
 0x16c   :  { %v1333_v4 = vmul.f32 %v1251_v2, %v701_v1 }
 0x16d   :  { %v1402_v5 = vadd.f32 %v2252_v56, %v1332_v3 }
 0x16e   :  { %v1403_v6 = vadd.f32 %v2243_v47, %v1333_v4 }
 0x16f   :  { %1466 = vst [vmem:[#allocation3 + $0x188] sm:$0xff] %v1402_v5  ;;  %v789_v7 = vpop.f32.mrf.mxu2 }
 0x170   :  { %1467 = vst [vmem:[#allocation3 + $0x190] sm:$0xff] %v1403_v6  ;;  %v878_v8 = vpop.f32.mrf.mxu3  ;;  %v614_v9 = vpop.f32.mrf.mxu0 }
 0x171   :  { %v879_v10 = vadd.f32 %v878_v8, %v789_v7  ;;  %v703_v11 = vpop.f32.mrf.mxu1  ;;  %v1281_v6 = vpop.permute.xlu1 %1280 }
 0x172   :  { %v704_v12 = vadd.f32 %v703_v11, %v614_v9 }
 0x173   :  { %v1334_v14 = vmul.f32 %v1251_v2, %v879_v10 }
 0x174   :  { %v1335_v15 = vmul.f32 %v1256_v13, %v704_v12 }
 0x175   :  { %v1404_v16 = vadd.f32 %v2252_v56, %v1334_v14 }
 0x176   :  { %v1405_v17 = vadd.f32 %v2243_v47, %v1335_v15 }
 0x177   :  { %1468 = vst [vmem:[#allocation3 + $0x198] sm:$0xff] %v1404_v16  ;;  %v792_v18 = vpop.f32.mrf.mxu2 }
 0x178   :  { %1469 = vst [vmem:[#allocation3 + $0x1a0] sm:$0xff] %v1405_v17  ;;  %v881_v19 = vpop.f32.mrf.mxu3  ;;  %v616_v20 = vpop.f32.mrf.mxu0 }
 0x179   :  { %v882_v21 = vadd.f32 %v881_v19, %v792_v18  ;;  %v705_v22 = vpop.f32.mrf.mxu1 }
 0x17a   :  { %v706_v23 = vadd.f32 %v705_v22, %v616_v20 }
 0x17b   :  { %v1336_v25 = vmul.f32 %v1256_v13, %v882_v21 }
 0x17c   :  { %v1337_v26 = vmul.f32 %v1261_v24, %v706_v23 }
 0x17d   :  { %v1406_v27 = vadd.f32 %v2252_v56, %v1336_v25 }
 0x17e   :  { %v1407_v28 = vadd.f32 %v2243_v47, %v1337_v26 }
 0x17f   :  { %1470 = vst [vmem:[#allocation3 + $0x1a8] sm:$0xff] %v1406_v27  ;;  %v794_v29 = vpop.f32.mrf.mxu2 }
 0x180   :  { %1471 = vst [vmem:[#allocation3 + $0x1b0] sm:$0xff] %v1407_v28  ;;  %v883_v30 = vpop.f32.mrf.mxu3  ;;  %v619_v31 = vpop.f32.mrf.mxu0 }
 0x181   :  { %v884_v32 = vadd.f32 %v883_v30, %v794_v29  ;;  %v708_v33 = vpop.f32.mrf.mxu1 }
 0x182   :  { %v709_v34 = vadd.f32 %v708_v33, %v619_v31 }
 0x183   :  { %v1338_v36 = vmul.f32 %v1261_v24, %v884_v32 }
 0x184   :  { %v1339_v37 = vmul.f32 %v1266_v35, %v709_v34 }
 0x185   :  { %v1408_v38 = vadd.f32 %v2252_v56, %v1338_v36 }
 0x186   :  { %v1409_v39 = vadd.f32 %v2243_v47, %v1339_v37 }
 0x187   :  { %1472 = vst [vmem:[#allocation3 + $0x1b8] sm:$0xff] %v1408_v38  ;;  %v797_v40 = vpop.f32.mrf.mxu2 }
 0x188   :  { %1473 = vst [vmem:[#allocation3 + $0x1c0] sm:$0xff] %v1409_v39  ;;  %v886_v41 = vpop.f32.mrf.mxu3  ;;  %v621_v42 = vpop.f32.mrf.mxu0 }
 0x189   :  { %v887_v43 = vadd.f32 %v886_v41, %v797_v40  ;;  %v710_v44 = vpop.f32.mrf.mxu1 }
 0x18a   :  { %v711_v45 = vadd.f32 %v710_v44, %v621_v42 }
 0x18b   :  { %v1340_v48 = vmul.f32 %v1266_v35, %v887_v43 }
 0x18c   :  { %v1341_v49 = vmul.f32 %v1271_v46, %v711_v45 }
 0x18d   :  { %v1410_v50 = vadd.f32 %v2252_v56, %v1340_v48 }
 0x18e   :  { %v1411_v51 = vadd.f32 %v2243_v47, %v1341_v49 }
 0x18f   :  { %1474 = vst [vmem:[#allocation3 + $0x1c8] sm:$0xff] %v1410_v50  ;;  %v799_v52 = vpop.f32.mrf.mxu2 }
 0x190   :  { %1475 = vst [vmem:[#allocation3 + $0x1d0] sm:$0xff] %v1411_v51  ;;  %v888_v53 = vpop.f32.mrf.mxu3  ;;  %v624_v54 = vpop.f32.mrf.mxu0 }
 0x191   :  { %v889_v55 = vadd.f32 %v888_v53, %v799_v52  ;;  %v713_v57 = vpop.f32.mrf.mxu1 }
 0x192   :  { %v714_v58 = vadd.f32 %v713_v57, %v624_v54 }
 0x193   :  { %v1342_v60 = vmul.f32 %v1271_v46, %v889_v55 }
 0x194   :  { %v1343_v61 = vmul.f32 %v1276_v59, %v714_v58 }
 0x195   :  { %v1412_v62 = vadd.f32 %v2252_v56, %v1342_v60 }
 0x196   :  { %v1413_v63 = vadd.f32 %v2243_v47, %v1343_v61 }
 0x197   :  { %1476 = vst [vmem:[#allocation3 + $0x1d8] sm:$0xff] %v1412_v62  ;;  %v802_v0 = vpop.f32.mrf.mxu2 }
 0x198   :  { %1477 = vst [vmem:[#allocation3 + $0x1e0] sm:$0xff] %v1413_v63  ;;  %v891_v1 = vpop.f32.mrf.mxu3  ;;  %v626_v2 = vpop.f32.mrf.mxu0 }
 0x199   :  { %v892_v3 = vadd.f32 %v891_v1, %v802_v0  ;;  %v715_v4 = vpop.f32.mrf.mxu1 }
 0x19a   :  { %v716_v5 = vadd.f32 %v715_v4, %v626_v2 }
 0x19b   :  { %v1344_v7 = vmul.f32 %v1276_v59, %v892_v3 }
 0x19c   :  { %v1345_v8 = vmul.f32 %v1281_v6, %v716_v5 }
 0x19d   :  { %v1414_v9 = vadd.f32 %v2252_v56, %v1344_v7 }
 0x19e   :  { %v1415_v10 = vadd.f32 %v2243_v47, %v1345_v8 }
 0x19f   :  { %1478 = vst [vmem:[#allocation3 + $0x1e8] sm:$0xff] %v1414_v9  ;;  %v804_v11 = vpop.f32.mrf.mxu2 }
 0x1a0   :  { %1479 = vst [vmem:[#allocation3 + $0x1f0] sm:$0xff] %v1415_v10  ;;  %v893_v12 = vpop.f32.mrf.mxu3 }
 0x1a1   :  { %v894_v13 = vadd.f32 %v893_v12, %v804_v11 }
 0x1a3   :  { %v1346_v14 = vmul.f32 %v1281_v6, %v894_v13 }
 0x1a5   :  { %v1416_v15 = vadd.f32 %v2252_v56, %v1346_v14 }
 0x1a7   :  { %1480 = vst [vmem:[#allocation3 + $0x1f8] sm:$0xff] %v1416_v15 }
 0x1a8   :  { %1493 = dma.vmem_to_hbm [thread:$0]  %s1486_s14, 8192, %s1488_s3, [#allocation4], %s1856_s17, %s1856_s17, %s1857_s2  }
 0x1a9   :  { %1852 = dma.done.wait [#allocation4], 8192  }
 0x1aa   :  { %1853 = vsyncadd [#allocation4], 4294959104 }
 0x1ab   :  { %1498 = vsyncpa [#allocation4], 1 }

</bundles_post_ra>
